<compile_context>
chip_gen: v7x
topology: tpu7x:2x2x1
jax: 0.10.0
libtpu: 0.0.40
codegen_flags: <defaults>
</compile_context>

<pallas_src>
import jax
import jax.numpy as jnp
from jax import lax
from jax.experimental import pallas as pl
from jax.experimental.pallas import tpu as pltpu

H = 32          # hidden size
H3 = 3 * H      # stacked gate width (96 lanes, fits one vreg lane tile)
S = 8           # source sequence length
ML = 8          # max decode length
V_IN = 16       # input vocab
V_OUT = 16      # output vocab
SOS = 0
EOS = 1         # decoder always runs ML steps (matches reference forward)


def seq2seq_kernel(tokens_ref,                        # (S,) int32  [SMEM]
                   enc_emb_ref,                       # (V_IN, H)
                   enc_wih_ref, enc_whh_ref,          # (H, 3H) each
                   enc_bi_ref, enc_bhn_ref,           # (1, 3H), (1, H)
                   dec_emb_ref,                       # (V_OUT, H)
                   wa_ref, ba_ref, ua_ref, bu_ref, va_ref, bv_ref,
                   dec_wih_e_ref, dec_wih_c_ref,      # (H, 3H) each
                   dec_whh_ref,                       # (H, 3H)
                   dec_bi_ref, dec_bhn_ref,           # (1, 3H), (1, H)
                   wo_ref, bo_ref,                    # (H, V_OUT), (1, V_OUT)
                   ids_ref,                           # out: (1, ML) int32
                   x_scr, keys_scr):                  # VMEM scratch (S, H) f32 each
    # ---------------- encoder: embedding gather (token ids from SMEM) --------
    for t in range(S):                                # S is small: static unroll
        tok = tokens_ref[t]
        x_scr[pl.ds(t, 1), :] = enc_emb_ref[pl.ds(tok, 1), :]

    enc_wih = enc_wih_ref[...]
    enc_whh = enc_whh_ref[...]
    enc_bhn = enc_bhn_ref[...]

    # all encoder input gates in ONE (S,H)x(H,3H) matmul, off the recurrence path
    gi_all = (jnp.dot(x_scr[...], enc_wih, preferred_element_type=jnp.float32)
              + enc_bi_ref[...])                      # (S, 3H)

    h = jnp.zeros((1, H), jnp.float32)
    for t in range(S):
        gi = gi_all[t:t + 1, :]                       # (1, 3H)
        gh = jnp.dot(h, enc_whh, preferred_element_type=jnp.float32)   # (1, 3H)
        r = jax.nn.sigmoid(gi[:, 0:H] + gh[:, 0:H])
        z = jax.nn.sigmoid(gi[:, H:2 * H] + gh[:, H:2 * H])
        n = jnp.tanh(gi[:, 2 * H:H3] + r * (gh[:, 2 * H:H3] + enc_bhn))
        h = (1.0 - z) * n + z * h
        keys_scr[pl.ds(t, 1), :] = h                  # encoder outputs = attn keys

    # ---------------- decoder: Bahdanau attention + GRU, greedy feedback -----
    keys = keys_scr[...]                              # (S, H)
    wa, ba = wa_ref[...], ba_ref[...]
    ua, bu = ua_ref[...], bu_ref[...]
    va, bv = va_ref[...], bv_ref[...]
    dec_wih_e, dec_wih_c = dec_wih_e_ref[...], dec_wih_c_ref[...]
    dec_whh = dec_whh_ref[...]
    dec_bi, dec_bhn = dec_bi_ref[...], dec_bhn_ref[...]
    wo, bo = wo_ref[...], bo_ref[...]
    emb = dec_emb_ref[...]

    # Ua(keys) is step-invariant: hoist out of the decode loop.
    ukeys = jnp.dot(keys, ua, preferred_element_type=jnp.float32) + bu    # (S, H)
    iota_v = lax.broadcasted_iota(jnp.int32, (1, V_OUT), 1)
    iota_ml = lax.broadcasted_iota(jnp.int32, (1, ML), 1)

    x_emb = emb[SOS:SOS + 1, :]                       # embedding of SOS
    ids_acc = jnp.zeros((1, ML), jnp.int32)

    for step in range(ML):                            # ML is small: static unroll
        # --- attention: scores = Va(tanh(Wa(q) + Ua(keys))), softmax over S ---
        q = jnp.dot(h, wa, preferred_element_type=jnp.float32) + ba       # (1, H)
        e = jnp.tanh(q + ukeys)                                           # (S, H)
        scores = jnp.dot(e, va, preferred_element_type=jnp.float32) + bv  # (S, 1)
        mx_s = jnp.max(scores, axis=0, keepdims=True)
        ex = jnp.exp(scores - mx_s)
        inv = pl.reciprocal(jnp.sum(ex, axis=0, keepdims=True), approx=True)
        attn = ex * inv                                                   # (S, 1)
        context = jnp.sum(attn * keys, axis=0, keepdims=True)             # (1, H)

        # --- GRU cell on concat(embedded, context): stacked (H,3H) gate matmuls
        gi = (jnp.dot(x_emb, dec_wih_e, preferred_element_type=jnp.float32)
              + jnp.dot(context, dec_wih_c, preferred_element_type=jnp.float32)
              + dec_bi)                                                   # (1, 3H)
        gh = jnp.dot(h, dec_whh, preferred_element_type=jnp.float32)      # (1, 3H)
        r = jax.nn.sigmoid(gi[:, 0:H] + gh[:, 0:H])
        z = jax.nn.sigmoid(gi[:, H:2 * H] + gh[:, H:2 * H])
        n = jnp.tanh(gi[:, 2 * H:H3] + r * (gh[:, 2 * H:H3] + dec_bhn))
        h = (1.0 - z) * n + z * h

        # --- output projection + greedy argmax (first-max, same as topk(1)) ---
        logits = jnp.dot(h, wo, preferred_element_type=jnp.float32) + bo  # (1, V_OUT)
        mx_l = jnp.max(logits, axis=-1, keepdims=True)
        masked = jnp.where(logits >= mx_l, iota_v, V_OUT)
        idx = jnp.min(masked, axis=-1, keepdims=True)                     # (1, 1) int32
        ids_acc = jnp.where(iota_ml == step, idx, ids_acc)

        # --- greedy feedback: one-hot(argmax) @ embedding table ---------------
        # TODO(synk): a scalar-indexed emb-row read would drop this tiny matmul,
        # but vector->scalar extraction is avoided for lowering robustness.
        onehot = (iota_v == idx).astype(jnp.float32)                      # (1, V_OUT)
        x_emb = jnp.dot(onehot, emb, preferred_element_type=jnp.float32)  # (1, H)

    ids_ref[...] = ids_acc                            # single store of all ids


def _vmem():
    return pl.BlockSpec(memory_space=pltpu.MemorySpace.VMEM)


def _smem():
    return pl.BlockSpec(memory_space=pltpu.MemorySpace.SMEM)


def run_seq2seq(tokens, p):
    return pl.pallas_call(
        seq2seq_kernel,
        out_shape=jax.ShapeDtypeStruct((1, ML), jnp.int32),
        in_specs=[_smem()] + [_vmem()] * 19,
        out_specs=_vmem(),
        scratch_shapes=[pltpu.VMEM((S, H), jnp.float32),   # gathered src embeddings
                        pltpu.VMEM((S, H), jnp.float32)],  # encoder outputs / keys
    )(tokens, p["enc_emb"],
      p["enc_wih"], p["enc_whh"], p["enc_bi"], p["enc_bhn"],
      p["dec_emb"],
      p["wa"], p["ba"], p["ua"], p["bu"], p["va"], p["bv"],
      p["dec_wih_e"], p["dec_wih_c"], p["dec_whh"], p["dec_bi"], p["dec_bhn"],
      p["wo"], p["bo"])


# -------- offline parameter packing (PyTorch layout -> kernel layout) --------
def _stack_gates(w):
    """PyTorch GRU weight (3H, in), gate order [r,z,n] -> stacked (in, 3H)."""
    w3 = w.reshape(3, H, -1)
    return jnp.concatenate([w3[0].T, w3[1].T, w3[2].T], axis=1)


def _fold_bias(b_ih, b_hh):
    """Fold b_hh into b_ih for r/z (legal pre-activation add); keep b_hn apart
    because PyTorch applies it inside r * (W_hn h + b_hn)."""
    bi = b_ih.reshape(3, H)
    bh = b_hh.reshape(3, H)
    stacked = jnp.concatenate([bi[0] + bh[0], bi[1] + bh[1], bi[2]]).reshape(1, H3)
    return stacked, bh[2].reshape(1, H)


def pack_params(raw):
    enc_bi, enc_bhn = _fold_bias(raw["enc_b_ih"], raw["enc_b_hh"])
    dec_bi, dec_bhn = _fold_bias(raw["dec_b_ih"], raw["dec_b_hh"])
    # decoder GRU input is concat(embedded, context): split the 2H input columns
    w3 = raw["dec_w_ih"].reshape(3, H, 2 * H)
    dec_wih_e = jnp.concatenate([w3[0][:, :H].T, w3[1][:, :H].T, w3[2][:, :H].T], axis=1)
    dec_wih_c = jnp.concatenate([w3[0][:, H:].T, w3[1][:, H:].T, w3[2][:, H:].T], axis=1)
    return {
        "enc_emb": raw["enc_emb"],
        "enc_wih": _stack_gates(raw["enc_w_ih"]),
        "enc_whh": _stack_gates(raw["enc_w_hh"]),
        "enc_bi": enc_bi, "enc_bhn": enc_bhn,
        "dec_emb": raw["dec_emb"],
        "wa": raw["wa"].T, "ba": raw["ba"].reshape(1, H),
        "ua": raw["ua"].T, "bu": raw["bu"].reshape(1, H),
        "va": raw["va"].T, "bv": raw["bv"].reshape(1, 1),
        "dec_wih_e": dec_wih_e, "dec_wih_c": dec_wih_c,
        "dec_whh": _stack_gates(raw["dec_w_hh"]),
        "dec_bi": dec_bi, "dec_bhn": dec_bhn,
        "wo": raw["wo"].T, "bo": raw["bo"].reshape(1, V_OUT),
    }


def init_params(key):
    ks = jax.random.split(key, 18)
    s = 1.0 / jnp.sqrt(jnp.float32(H))
    n = lambda k, shape: jax.random.normal(k, shape, jnp.float32) * s
    raw = {
        # encoder embedding + GRU (PyTorch layout)
        "enc_emb": n(ks[0], (V_IN, H)),
        "enc_w_ih": n(ks[1], (H3, H)), "enc_w_hh": n(ks[2], (H3, H)),
        "enc_b_ih": n(ks[3], (H3,)), "enc_b_hh": n(ks[4], (H3,)),
        # decoder embedding
        "dec_emb": n(ks[5], (V_OUT, H)),
        # Bahdanau attention Linears (torch weight is (out, in))
        "wa": n(ks[6], (H, H)), "ba": n(ks[7], (H,)),
        "ua": n(ks[8], (H, H)), "bu": n(ks[9], (H,)),
        "va": n(ks[10], (1, H)), "bv": n(ks[11], (1,)),
        # decoder GRU (input = concat(emb, context) -> 2H)
        "dec_w_ih": n(ks[12], (H3, 2 * H)), "dec_w_hh": n(ks[13], (H3, H)),
        "dec_b_ih": n(ks[14], (H3,)), "dec_b_hh": n(ks[15], (H3,)),
        # output projection
        "wo": n(ks[16], (V_OUT, H)), "bo": n(ks[17], (V_OUT,)),
    }
    return pack_params(raw)


@jax.jit
def model_forward(params, input_tensor):
    # torch: input_tensor.view(1, -1); embedding gather happens in-kernel
    tokens = input_tensor.reshape(-1).astype(jnp.int32)          # (S,)
    ids = run_seq2seq(tokens, params)                            # (1, ML) int32
    # torch: _, topi = decoder_outputs.topk(1); decoded_ids = topi.squeeze()
    return ids[0]                                                # (ML,)


if __name__ == "__main__":
    key = jax.random.PRNGKey(0)
    k_tok, k_par = jax.random.split(key)
    input_tensor = jax.random.randint(k_tok, (S,), 2, V_IN, dtype=jnp.int32)
    params = init_params(k_par)

    decoded_ids = jax.block_until_ready(model_forward(params, input_tensor))

    assert decoded_ids.shape == (ML,)
    assert decoded_ids.dtype == jnp.int32
    assert bool(jnp.all((decoded_ids >= 0) & (decoded_ids < V_OUT)))
    print("KERNEL_OK")
</pallas_src>

<mosaic_0001>
module attributes {stable_mosaic.version = 11 : i64} {
  func.func @seq2seq_kernel(%arg0: memref<8xi32, #tpu.memory_space<smem>>, %arg1: memref<16x32xf32, #tpu.memory_space<vmem>>, %arg2: memref<32x96xf32, #tpu.memory_space<vmem>>, %arg3: memref<32x96xf32, #tpu.memory_space<vmem>>, %arg4: memref<1x96xf32, #tpu.memory_space<vmem>>, %arg5: memref<1x32xf32, #tpu.memory_space<vmem>>, %arg6: memref<16x32xf32, #tpu.memory_space<vmem>>, %arg7: memref<32x32xf32, #tpu.memory_space<vmem>>, %arg8: memref<1x32xf32, #tpu.memory_space<vmem>>, %arg9: memref<32x32xf32, #tpu.memory_space<vmem>>, %arg10: memref<1x32xf32, #tpu.memory_space<vmem>>, %arg11: memref<32x1xf32, #tpu.memory_space<vmem>>, %arg12: memref<1x1xf32, #tpu.memory_space<vmem>>, %arg13: memref<32x96xf32, #tpu.memory_space<vmem>>, %arg14: memref<32x96xf32, #tpu.memory_space<vmem>>, %arg15: memref<32x96xf32, #tpu.memory_space<vmem>>, %arg16: memref<1x96xf32, #tpu.memory_space<vmem>>, %arg17: memref<1x32xf32, #tpu.memory_space<vmem>>, %arg18: memref<32x16xf32, #tpu.memory_space<vmem>>, %arg19: memref<1x16xf32, #tpu.memory_space<vmem>>, %arg20: memref<1x8xi32, #tpu.memory_space<vmem>>, %arg21: memref<8x32xf32, #tpu.memory_space<vmem>>, %arg22: memref<8x32xf32, #tpu.memory_space<vmem>>) attributes {dimension_semantics = [], scalar_prefetch = 0 : i64, scratch_operands = 2 : i64, tpu.core_type = #tpu.core_type<tc>} {
    %c0 = arith.constant 0 : index
    %0 = memref.load %arg0[%c0] : memref<8xi32, #tpu.memory_space<smem>>
    %1 = arith.index_cast %0 : i32 to index
    %c0_0 = arith.constant 0 : index
    %2 = vector.load %arg1[%1, %c0_0] : memref<16x32xf32, #tpu.memory_space<vmem>>, vector<1x32xf32>
    %c0_1 = arith.constant 0 : index
    %c0_2 = arith.constant 0 : index
    %3 = vector.load %arg21[%c0_1, %c0_2] : memref<8x32xf32, #tpu.memory_space<vmem>>, vector<1x32xf32>
    tpu.vector_store %arg21[%c0_1, %c0_2], %2 {strides = array<i32>} : memref<8x32xf32, #tpu.memory_space<vmem>>, vector<1x32xf32>,
    %c1 = arith.constant 1 : index
    %4 = memref.load %arg0[%c1] : memref<8xi32, #tpu.memory_space<smem>>
    %5 = arith.index_cast %4 : i32 to index
    %c0_3 = arith.constant 0 : index
    %6 = vector.load %arg1[%5, %c0_3] : memref<16x32xf32, #tpu.memory_space<vmem>>, vector<1x32xf32>
    %c1_4 = arith.constant 1 : index
    %c0_5 = arith.constant 0 : index
    %7 = vector.load %arg21[%c1_4, %c0_5] : memref<8x32xf32, #tpu.memory_space<vmem>>, vector<1x32xf32>
    tpu.vector_store %arg21[%c1_4, %c0_5], %6 {strides = array<i32>} : memref<8x32xf32, #tpu.memory_space<vmem>>, vector<1x32xf32>,
    %c2 = arith.constant 2 : index
    %8 = memref.load %arg0[%c2] : memref<8xi32, #tpu.memory_space<smem>>
    %9 = arith.index_cast %8 : i32 to index
    %c0_6 = arith.constant 0 : index
    %10 = vector.load %arg1[%9, %c0_6] : memref<16x32xf32, #tpu.memory_space<vmem>>, vector<1x32xf32>
    %c2_7 = arith.constant 2 : index
    %c0_8 = arith.constant 0 : index
    %11 = vector.load %arg21[%c2_7, %c0_8] : memref<8x32xf32, #tpu.memory_space<vmem>>, vector<1x32xf32>
    tpu.vector_store %arg21[%c2_7, %c0_8], %10 {strides = array<i32>} : memref<8x32xf32, #tpu.memory_space<vmem>>, vector<1x32xf32>,
    %c3 = arith.constant 3 : index
    %12 = memref.load %arg0[%c3] : memref<8xi32, #tpu.memory_space<smem>>
    %13 = arith.index_cast %12 : i32 to index
    %c0_9 = arith.constant 0 : index
    %14 = vector.load %arg1[%13, %c0_9] : memref<16x32xf32, #tpu.memory_space<vmem>>, vector<1x32xf32>
    %c3_10 = arith.constant 3 : index
    %c0_11 = arith.constant 0 : index
    %15 = vector.load %arg21[%c3_10, %c0_11] : memref<8x32xf32, #tpu.memory_space<vmem>>, vector<1x32xf32>
    tpu.vector_store %arg21[%c3_10, %c0_11], %14 {strides = array<i32>} : memref<8x32xf32, #tpu.memory_space<vmem>>, vector<1x32xf32>,
    %c4 = arith.constant 4 : index
    %16 = memref.load %arg0[%c4] : memref<8xi32, #tpu.memory_space<smem>>
    %17 = arith.index_cast %16 : i32 to index
    %c0_12 = arith.constant 0 : index
    %18 = vector.load %arg1[%17, %c0_12] : memref<16x32xf32, #tpu.memory_space<vmem>>, vector<1x32xf32>
    %c4_13 = arith.constant 4 : index
    %c0_14 = arith.constant 0 : index
    %19 = vector.load %arg21[%c4_13, %c0_14] : memref<8x32xf32, #tpu.memory_space<vmem>>, vector<1x32xf32>
    tpu.vector_store %arg21[%c4_13, %c0_14], %18 {strides = array<i32>} : memref<8x32xf32, #tpu.memory_space<vmem>>, vector<1x32xf32>,
    %c5 = arith.constant 5 : index
    %20 = memref.load %arg0[%c5] : memref<8xi32, #tpu.memory_space<smem>>
    %21 = arith.index_cast %20 : i32 to index
    %c0_15 = arith.constant 0 : index
    %22 = vector.load %arg1[%21, %c0_15] : memref<16x32xf32, #tpu.memory_space<vmem>>, vector<1x32xf32>
    %c5_16 = arith.constant 5 : index
    %c0_17 = arith.constant 0 : index
    %23 = vector.load %arg21[%c5_16, %c0_17] : memref<8x32xf32, #tpu.memory_space<vmem>>, vector<1x32xf32>
    tpu.vector_store %arg21[%c5_16, %c0_17], %22 {strides = array<i32>} : memref<8x32xf32, #tpu.memory_space<vmem>>, vector<1x32xf32>,
    %c6 = arith.constant 6 : index
    %24 = memref.load %arg0[%c6] : memref<8xi32, #tpu.memory_space<smem>>
    %25 = arith.index_cast %24 : i32 to index
    %c0_18 = arith.constant 0 : index
    %26 = vector.load %arg1[%25, %c0_18] : memref<16x32xf32, #tpu.memory_space<vmem>>, vector<1x32xf32>
    %c6_19 = arith.constant 6 : index
    %c0_20 = arith.constant 0 : index
    %27 = vector.load %arg21[%c6_19, %c0_20] : memref<8x32xf32, #tpu.memory_space<vmem>>, vector<1x32xf32>
    tpu.vector_store %arg21[%c6_19, %c0_20], %26 {strides = array<i32>} : memref<8x32xf32, #tpu.memory_space<vmem>>, vector<1x32xf32>,
    %c7 = arith.constant 7 : index
    %28 = memref.load %arg0[%c7] : memref<8xi32, #tpu.memory_space<smem>>
    %29 = arith.index_cast %28 : i32 to index
    %c0_21 = arith.constant 0 : index
    %30 = vector.load %arg1[%29, %c0_21] : memref<16x32xf32, #tpu.memory_space<vmem>>, vector<1x32xf32>
    %c7_22 = arith.constant 7 : index
    %c0_23 = arith.constant 0 : index
    %31 = vector.load %arg21[%c7_22, %c0_23] : memref<8x32xf32, #tpu.memory_space<vmem>>, vector<1x32xf32>
    tpu.vector_store %arg21[%c7_22, %c0_23], %30 {strides = array<i32>} : memref<8x32xf32, #tpu.memory_space<vmem>>, vector<1x32xf32>,
    %c0_24 = arith.constant 0 : index
    %c0_25 = arith.constant 0 : index
    %32 = vector.load %arg2[%c0_24, %c0_25] : memref<32x96xf32, #tpu.memory_space<vmem>>, vector<32x96xf32>
    %c0_26 = arith.constant 0 : index
    %c0_27 = arith.constant 0 : index
    %33 = vector.load %arg3[%c0_26, %c0_27] : memref<32x96xf32, #tpu.memory_space<vmem>>, vector<32x96xf32>
    %c0_28 = arith.constant 0 : index
    %c0_29 = arith.constant 0 : index
    %34 = vector.load %arg5[%c0_28, %c0_29] : memref<1x32xf32, #tpu.memory_space<vmem>>, vector<1x32xf32>
    %c0_30 = arith.constant 0 : index
    %c0_31 = arith.constant 0 : index
    %35 = vector.load %arg21[%c0_30, %c0_31] : memref<8x32xf32, #tpu.memory_space<vmem>>, vector<8x32xf32>
    %cst = arith.constant dense<0.000000e+00> : vector<8x96xf32>
    %36 = tpu.matmul %35, %32, %cst {dimension_numbers = #tpu.dot_dimension_numbers<[1], [0], [0], [1], [0, 0, 1, 1], [], []>} : vector<8x32xf32>, vector<32x96xf32>, vector<8x96xf32> -> vector<8x96xf32>
    %c0_32 = arith.constant 0 : index
    %c0_33 = arith.constant 0 : index
    %37 = vector.load %arg4[%c0_32, %c0_33] : memref<1x96xf32, #tpu.memory_space<vmem>>, vector<1x96xf32>
    %38 = vector.broadcast %37 : vector<1x96xf32> to vector<8x96xf32>
    %39 = arith.addf %36, %38 : vector<8x96xf32>
    %cst_34 = arith.constant 0.000000e+00 : f32
    %40 = vector.broadcast %cst_34 : f32 to vector<1x32xf32>
    %41 = vector.extract_strided_slice %39 {offsets = [0, 0], sizes = [1, 96], strides = [1, 1]} : vector<8x96xf32> to vector<1x96xf32>
    %cst_35 = arith.constant dense<0.000000e+00> : vector<1x96xf32>
    %42 = tpu.matmul %40, %33, %cst_35 {dimension_numbers = #tpu.dot_dimension_numbers<[1], [0], [0], [1], [0, 0, 1, 1], [], []>} : vector<1x32xf32>, vector<32x96xf32>, vector<1x96xf32> -> vector<1x96xf32>
    %43 = vector.extract_strided_slice %41 {offsets = [0, 0], sizes = [1, 32], strides = [1, 1]} : vector<1x96xf32> to vector<1x32xf32>
    %44 = vector.extract_strided_slice %42 {offsets = [0, 0], sizes = [1, 32], strides = [1, 1]} : vector<1x96xf32> to vector<1x32xf32>
    %45 = arith.addf %43, %44 : vector<1x32xf32>
    %46 = arith.negf %45 : vector<1x32xf32>
    %47 = math.exp %46 : vector<1x32xf32>
    %cst_36 = arith.constant 1.000000e+00 : f32
    %48 = vector.broadcast %cst_36 : f32 to vector<1x32xf32>
    %49 = arith.addf %48, %47 : vector<1x32xf32>
    %50 = arith.divf %48, %49 : vector<1x32xf32>
    %51 = vector.extract_strided_slice %41 {offsets = [0, 32], sizes = [1, 32], strides = [1, 1]} : vector<1x96xf32> to vector<1x32xf32>
    %52 = vector.extract_strided_slice %42 {offsets = [0, 32], sizes = [1, 32], strides = [1, 1]} : vector<1x96xf32> to vector<1x32xf32>
    %53 = arith.addf %51, %52 : vector<1x32xf32>
    %54 = arith.negf %53 : vector<1x32xf32>
    %55 = math.exp %54 : vector<1x32xf32>
    %cst_37 = arith.constant 1.000000e+00 : f32
    %56 = vector.broadcast %cst_37 : f32 to vector<1x32xf32>
    %57 = arith.addf %56, %55 : vector<1x32xf32>
    %58 = arith.divf %56, %57 : vector<1x32xf32>
    %59 = vector.extract_strided_slice %41 {offsets = [0, 64], sizes = [1, 32], strides = [1, 1]} : vector<1x96xf32> to vector<1x32xf32>
    %60 = vector.extract_strided_slice %42 {offsets = [0, 64], sizes = [1, 32], strides = [1, 1]} : vector<1x96xf32> to vector<1x32xf32>
    %61 = arith.addf %60, %34 : vector<1x32xf32>
    %62 = arith.mulf %50, %61 : vector<1x32xf32>
    %63 = arith.addf %59, %62 : vector<1x32xf32>
    %64 = math.tanh %63 : vector<1x32xf32>
    %cst_38 = arith.constant 1.000000e+00 : f32
    %65 = vector.broadcast %cst_38 : f32 to vector<1x32xf32>
    %66 = arith.subf %65, %58 : vector<1x32xf32>
    %67 = arith.mulf %66, %64 : vector<1x32xf32>
    %68 = arith.mulf %58, %40 : vector<1x32xf32>
    %69 = arith.addf %67, %68 : vector<1x32xf32>
    %c0_39 = arith.constant 0 : index
    %c0_40 = arith.constant 0 : index
    %70 = vector.load %arg22[%c0_39, %c0_40] : memref<8x32xf32, #tpu.memory_space<vmem>>, vector<1x32xf32>
    tpu.vector_store %arg22[%c0_39, %c0_40], %69 {strides = array<i32>} : memref<8x32xf32, #tpu.memory_space<vmem>>, vector<1x32xf32>,
    %71 = vector.extract_strided_slice %39 {offsets = [1, 0], sizes = [1, 96], strides = [1, 1]} : vector<8x96xf32> to vector<1x96xf32>
    %cst_41 = arith.constant dense<0.000000e+00> : vector<1x96xf32>
    %72 = tpu.matmul %69, %33, %cst_41 {dimension_numbers = #tpu.dot_dimension_numbers<[1], [0], [0], [1], [0, 0, 1, 1], [], []>} : vector<1x32xf32>, vector<32x96xf32>, vector<1x96xf32> -> vector<1x96xf32>
    %73 = vector.extract_strided_slice %71 {offsets = [0, 0], sizes = [1, 32], strides = [1, 1]} : vector<1x96xf32> to vector<1x32xf32>
    %74 = vector.extract_strided_slice %72 {offsets = [0, 0], sizes = [1, 32], strides = [1, 1]} : vector<1x96xf32> to vector<1x32xf32>
    %75 = arith.addf %73, %74 : vector<1x32xf32>
    %76 = arith.negf %75 : vector<1x32xf32>
    %77 = math.exp %76 : vector<1x32xf32>
    %cst_42 = arith.constant 1.000000e+00 : f32
    %78 = vector.broadcast %cst_42 : f32 to vector<1x32xf32>
    %79 = arith.addf %78, %77 : vector<1x32xf32>
    %80 = arith.divf %78, %79 : vector<1x32xf32>
    %81 = vector.extract_strided_slice %71 {offsets = [0, 32], sizes = [1, 32], strides = [1, 1]} : vector<1x96xf32> to vector<1x32xf32>
    %82 = vector.extract_strided_slice %72 {offsets = [0, 32], sizes = [1, 32], strides = [1, 1]} : vector<1x96xf32> to vector<1x32xf32>
    %83 = arith.addf %81, %82 : vector<1x32xf32>
    %84 = arith.negf %83 : vector<1x32xf32>
    %85 = math.exp %84 : vector<1x32xf32>
    %cst_43 = arith.constant 1.000000e+00 : f32
    %86 = vector.broadcast %cst_43 : f32 to vector<1x32xf32>
    %87 = arith.addf %86, %85 : vector<1x32xf32>
    %88 = arith.divf %86, %87 : vector<1x32xf32>
    %89 = vector.extract_strided_slice %71 {offsets = [0, 64], sizes = [1, 32], strides = [1, 1]} : vector<1x96xf32> to vector<1x32xf32>
    %90 = vector.extract_strided_slice %72 {offsets = [0, 64], sizes = [1, 32], strides = [1, 1]} : vector<1x96xf32> to vector<1x32xf32>
    %91 = arith.addf %90, %34 : vector<1x32xf32>
    %92 = arith.mulf %80, %91 : vector<1x32xf32>
    %93 = arith.addf %89, %92 : vector<1x32xf32>
    %94 = math.tanh %93 : vector<1x32xf32>
    %cst_44 = arith.constant 1.000000e+00 : f32
    %95 = vector.broadcast %cst_44 : f32 to vector<1x32xf32>
    %96 = arith.subf %95, %88 : vector<1x32xf32>
    %97 = arith.mulf %96, %94 : vector<1x32xf32>
    %98 = arith.mulf %88, %69 : vector<1x32xf32>
    %99 = arith.addf %97, %98 : vector<1x32xf32>
    %c1_45 = arith.constant 1 : index
    %c0_46 = arith.constant 0 : index
    %100 = vector.load %arg22[%c1_45, %c0_46] : memref<8x32xf32, #tpu.memory_space<vmem>>, vector<1x32xf32>
    tpu.vector_store %arg22[%c1_45, %c0_46], %99 {strides = array<i32>} : memref<8x32xf32, #tpu.memory_space<vmem>>, vector<1x32xf32>,
    %101 = vector.extract_strided_slice %39 {offsets = [2, 0], sizes = [1, 96], strides = [1, 1]} : vector<8x96xf32> to vector<1x96xf32>
    %cst_47 = arith.constant dense<0.000000e+00> : vector<1x96xf32>
    %102 = tpu.matmul %99, %33, %cst_47 {dimension_numbers = #tpu.dot_dimension_numbers<[1], [0], [0], [1], [0, 0, 1, 1], [], []>} : vector<1x32xf32>, vector<32x96xf32>, vector<1x96xf32> -> vector<1x96xf32>
    %103 = vector.extract_strided_slice %101 {offsets = [0, 0], sizes = [1, 32], strides = [1, 1]} : vector<1x96xf32> to vector<1x32xf32>
    %104 = vector.extract_strided_slice %102 {offsets = [0, 0], sizes = [1, 32], strides = [1, 1]} : vector<1x96xf32> to vector<1x32xf32>
    %105 = arith.addf %103, %104 : vector<1x32xf32>
    %106 = arith.negf %105 : vector<1x32xf32>
    %107 = math.exp %106 : vector<1x32xf32>
    %cst_48 = arith.constant 1.000000e+00 : f32
    %108 = vector.broadcast %cst_48 : f32 to vector<1x32xf32>
    %109 = arith.addf %108, %107 : vector<1x32xf32>
    %110 = arith.divf %108, %109 : vector<1x32xf32>
    %111 = vector.extract_strided_slice %101 {offsets = [0, 32], sizes = [1, 32], strides = [1, 1]} : vector<1x96xf32> to vector<1x32xf32>
    %112 = vector.extract_strided_slice %102 {offsets = [0, 32], sizes = [1, 32], strides = [1, 1]} : vector<1x96xf32> to vector<1x32xf32>
    %113 = arith.addf %111, %112 : vector<1x32xf32>
    %114 = arith.negf %113 : vector<1x32xf32>
    %115 = math.exp %114 : vector<1x32xf32>
    %cst_49 = arith.constant 1.000000e+00 : f32
    %116 = vector.broadcast %cst_49 : f32 to vector<1x32xf32>
    %117 = arith.addf %116, %115 : vector<1x32xf32>
    %118 = arith.divf %116, %117 : vector<1x32xf32>
    %119 = vector.extract_strided_slice %101 {offsets = [0, 64], sizes = [1, 32], strides = [1, 1]} : vector<1x96xf32> to vector<1x32xf32>
    %120 = vector.extract_strided_slice %102 {offsets = [0, 64], sizes = [1, 32], strides = [1, 1]} : vector<1x96xf32> to vector<1x32xf32>
    %121 = arith.addf %120, %34 : vector<1x32xf32>
    %122 = arith.mulf %110, %121 : vector<1x32xf32>
    %123 = arith.addf %119, %122 : vector<1x32xf32>
    %124 = math.tanh %123 : vector<1x32xf32>
    %cst_50 = arith.constant 1.000000e+00 : f32
    %125 = vector.broadcast %cst_50 : f32 to vector<1x32xf32>
    %126 = arith.subf %125, %118 : vector<1x32xf32>
    %127 = arith.mulf %126, %124 : vector<1x32xf32>
    %128 = arith.mulf %118, %99 : vector<1x32xf32>
    %129 = arith.addf %127, %128 : vector<1x32xf32>
    %c2_51 = arith.constant 2 : index
    %c0_52 = arith.constant 0 : index
    %130 = vector.load %arg22[%c2_51, %c0_52] : memref<8x32xf32, #tpu.memory_space<vmem>>, vector<1x32xf32>
    tpu.vector_store %arg22[%c2_51, %c0_52], %129 {strides = array<i32>} : memref<8x32xf32, #tpu.memory_space<vmem>>, vector<1x32xf32>,
    %131 = vector.extract_strided_slice %39 {offsets = [3, 0], sizes = [1, 96], strides = [1, 1]} : vector<8x96xf32> to vector<1x96xf32>
    %cst_53 = arith.constant dense<0.000000e+00> : vector<1x96xf32>
    %132 = tpu.matmul %129, %33, %cst_53 {dimension_numbers = #tpu.dot_dimension_numbers<[1], [0], [0], [1], [0, 0, 1, 1], [], []>} : vector<1x32xf32>, vector<32x96xf32>, vector<1x96xf32> -> vector<1x96xf32>
    %133 = vector.extract_strided_slice %131 {offsets = [0, 0], sizes = [1, 32], strides = [1, 1]} : vector<1x96xf32> to vector<1x32xf32>
    %134 = vector.extract_strided_slice %132 {offsets = [0, 0], sizes = [1, 32], strides = [1, 1]} : vector<1x96xf32> to vector<1x32xf32>
    %135 = arith.addf %133, %134 : vector<1x32xf32>
    %136 = arith.negf %135 : vector<1x32xf32>
    %137 = math.exp %136 : vector<1x32xf32>
    %cst_54 = arith.constant 1.000000e+00 : f32
    %138 = vector.broadcast %cst_54 : f32 to vector<1x32xf32>
    %139 = arith.addf %138, %137 : vector<1x32xf32>
    %140 = arith.divf %138, %139 : vector<1x32xf32>
    %141 = vector.extract_strided_slice %131 {offsets = [0, 32], sizes = [1, 32], strides = [1, 1]} : vector<1x96xf32> to vector<1x32xf32>
    %142 = vector.extract_strided_slice %132 {offsets = [0, 32], sizes = [1, 32], strides = [1, 1]} : vector<1x96xf32> to vector<1x32xf32>
    %143 = arith.addf %141, %142 : vector<1x32xf32>
    %144 = arith.negf %143 : vector<1x32xf32>
    %145 = math.exp %144 : vector<1x32xf32>
    %cst_55 = arith.constant 1.000000e+00 : f32
    %146 = vector.broadcast %cst_55 : f32 to vector<1x32xf32>
    %147 = arith.addf %146, %145 : vector<1x32xf32>
    %148 = arith.divf %146, %147 : vector<1x32xf32>
    %149 = vector.extract_strided_slice %131 {offsets = [0, 64], sizes = [1, 32], strides = [1, 1]} : vector<1x96xf32> to vector<1x32xf32>
    %150 = vector.extract_strided_slice %132 {offsets = [0, 64], sizes = [1, 32], strides = [1, 1]} : vector<1x96xf32> to vector<1x32xf32>
    %151 = arith.addf %150, %34 : vector<1x32xf32>
    %152 = arith.mulf %140, %151 : vector<1x32xf32>
    %153 = arith.addf %149, %152 : vector<1x32xf32>
    %154 = math.tanh %153 : vector<1x32xf32>
    %cst_56 = arith.constant 1.000000e+00 : f32
    %155 = vector.broadcast %cst_56 : f32 to vector<1x32xf32>
    %156 = arith.subf %155, %148 : vector<1x32xf32>
    %157 = arith.mulf %156, %154 : vector<1x32xf32>
    %158 = arith.mulf %148, %129 : vector<1x32xf32>
    %159 = arith.addf %157, %158 : vector<1x32xf32>
    %c3_57 = arith.constant 3 : index
    %c0_58 = arith.constant 0 : index
    %160 = vector.load %arg22[%c3_57, %c0_58] : memref<8x32xf32, #tpu.memory_space<vmem>>, vector<1x32xf32>
    tpu.vector_store %arg22[%c3_57, %c0_58], %159 {strides = array<i32>} : memref<8x32xf32, #tpu.memory_space<vmem>>, vector<1x32xf32>,
    %161 = vector.extract_strided_slice %39 {offsets = [4, 0], sizes = [1, 96], strides = [1, 1]} : vector<8x96xf32> to vector<1x96xf32>
    %cst_59 = arith.constant dense<0.000000e+00> : vector<1x96xf32>
    %162 = tpu.matmul %159, %33, %cst_59 {dimension_numbers = #tpu.dot_dimension_numbers<[1], [0], [0], [1], [0, 0, 1, 1], [], []>} : vector<1x32xf32>, vector<32x96xf32>, vector<1x96xf32> -> vector<1x96xf32>
    %163 = vector.extract_strided_slice %161 {offsets = [0, 0], sizes = [1, 32], strides = [1, 1]} : vector<1x96xf32> to vector<1x32xf32>
    %164 = vector.extract_strided_slice %162 {offsets = [0, 0], sizes = [1, 32], strides = [1, 1]} : vector<1x96xf32> to vector<1x32xf32>
    %165 = arith.addf %163, %164 : vector<1x32xf32>
    %166 = arith.negf %165 : vector<1x32xf32>
    %167 = math.exp %166 : vector<1x32xf32>
    %cst_60 = arith.constant 1.000000e+00 : f32
    %168 = vector.broadcast %cst_60 : f32 to vector<1x32xf32>
    %169 = arith.addf %168, %167 : vector<1x32xf32>
    %170 = arith.divf %168, %169 : vector<1x32xf32>
    %171 = vector.extract_strided_slice %161 {offsets = [0, 32], sizes = [1, 32], strides = [1, 1]} : vector<1x96xf32> to vector<1x32xf32>
    %172 = vector.extract_strided_slice %162 {offsets = [0, 32], sizes = [1, 32], strides = [1, 1]} : vector<1x96xf32> to vector<1x32xf32>
    %173 = arith.addf %171, %172 : vector<1x32xf32>
    %174 = arith.negf %173 : vector<1x32xf32>
    %175 = math.exp %174 : vector<1x32xf32>
    %cst_61 = arith.constant 1.000000e+00 : f32
    %176 = vector.broadcast %cst_61 : f32 to vector<1x32xf32>
    %177 = arith.addf %176, %175 : vector<1x32xf32>
    %178 = arith.divf %176, %177 : vector<1x32xf32>
    %179 = vector.extract_strided_slice %161 {offsets = [0, 64], sizes = [1, 32], strides = [1, 1]} : vector<1x96xf32> to vector<1x32xf32>
    %180 = vector.extract_strided_slice %162 {offsets = [0, 64], sizes = [1, 32], strides = [1, 1]} : vector<1x96xf32> to vector<1x32xf32>
    %181 = arith.addf %180, %34 : vector<1x32xf32>
    %182 = arith.mulf %170, %181 : vector<1x32xf32>
    %183 = arith.addf %179, %182 : vector<1x32xf32>
    %184 = math.tanh %183 : vector<1x32xf32>
    %cst_62 = arith.constant 1.000000e+00 : f32
    %185 = vector.broadcast %cst_62 : f32 to vector<1x32xf32>
    %186 = arith.subf %185, %178 : vector<1x32xf32>
    %187 = arith.mulf %186, %184 : vector<1x32xf32>
    %188 = arith.mulf %178, %159 : vector<1x32xf32>
    %189 = arith.addf %187, %188 : vector<1x32xf32>
    %c4_63 = arith.constant 4 : index
    %c0_64 = arith.constant 0 : index
    %190 = vector.load %arg22[%c4_63, %c0_64] : memref<8x32xf32, #tpu.memory_space<vmem>>, vector<1x32xf32>
    tpu.vector_store %arg22[%c4_63, %c0_64], %189 {strides = array<i32>} : memref<8x32xf32, #tpu.memory_space<vmem>>, vector<1x32xf32>,
    %191 = vector.extract_strided_slice %39 {offsets = [5, 0], sizes = [1, 96], strides = [1, 1]} : vector<8x96xf32> to vector<1x96xf32>
    %cst_65 = arith.constant dense<0.000000e+00> : vector<1x96xf32>
    %192 = tpu.matmul %189, %33, %cst_65 {dimension_numbers = #tpu.dot_dimension_numbers<[1], [0], [0], [1], [0, 0, 1, 1], [], []>} : vector<1x32xf32>, vector<32x96xf32>, vector<1x96xf32> -> vector<1x96xf32>
    %193 = vector.extract_strided_slice %191 {offsets = [0, 0], sizes = [1, 32], strides = [1, 1]} : vector<1x96xf32> to vector<1x32xf32>
    %194 = vector.extract_strided_slice %192 {offsets = [0, 0], sizes = [1, 32], strides = [1, 1]} : vector<1x96xf32> to vector<1x32xf32>
    %195 = arith.addf %193, %194 : vector<1x32xf32>
    %196 = arith.negf %195 : vector<1x32xf32>
    %197 = math.exp %196 : vector<1x32xf32>
    %cst_66 = arith.constant 1.000000e+00 : f32
    %198 = vector.broadcast %cst_66 : f32 to vector<1x32xf32>
    %199 = arith.addf %198, %197 : vector<1x32xf32>
    %200 = arith.divf %198, %199 : vector<1x32xf32>
    %201 = vector.extract_strided_slice %191 {offsets = [0, 32], sizes = [1, 32], strides = [1, 1]} : vector<1x96xf32> to vector<1x32xf32>
    %202 = vector.extract_strided_slice %192 {offsets = [0, 32], sizes = [1, 32], strides = [1, 1]} : vector<1x96xf32> to vector<1x32xf32>
    %203 = arith.addf %201, %202 : vector<1x32xf32>
    %204 = arith.negf %203 : vector<1x32xf32>
    %205 = math.exp %204 : vector<1x32xf32>
    %cst_67 = arith.constant 1.000000e+00 : f32
    %206 = vector.broadcast %cst_67 : f32 to vector<1x32xf32>
    %207 = arith.addf %206, %205 : vector<1x32xf32>
    %208 = arith.divf %206, %207 : vector<1x32xf32>
    %209 = vector.extract_strided_slice %191 {offsets = [0, 64], sizes = [1, 32], strides = [1, 1]} : vector<1x96xf32> to vector<1x32xf32>
    %210 = vector.extract_strided_slice %192 {offsets = [0, 64], sizes = [1, 32], strides = [1, 1]} : vector<1x96xf32> to vector<1x32xf32>
    %211 = arith.addf %210, %34 : vector<1x32xf32>
    %212 = arith.mulf %200, %211 : vector<1x32xf32>
    %213 = arith.addf %209, %212 : vector<1x32xf32>
    %214 = math.tanh %213 : vector<1x32xf32>
    %cst_68 = arith.constant 1.000000e+00 : f32
    %215 = vector.broadcast %cst_68 : f32 to vector<1x32xf32>
    %216 = arith.subf %215, %208 : vector<1x32xf32>
    %217 = arith.mulf %216, %214 : vector<1x32xf32>
    %218 = arith.mulf %208, %189 : vector<1x32xf32>
    %219 = arith.addf %217, %218 : vector<1x32xf32>
    %c5_69 = arith.constant 5 : index
    %c0_70 = arith.constant 0 : index
    %220 = vector.load %arg22[%c5_69, %c0_70] : memref<8x32xf32, #tpu.memory_space<vmem>>, vector<1x32xf32>
    tpu.vector_store %arg22[%c5_69, %c0_70], %219 {strides = array<i32>} : memref<8x32xf32, #tpu.memory_space<vmem>>, vector<1x32xf32>,
    %221 = vector.extract_strided_slice %39 {offsets = [6, 0], sizes = [1, 96], strides = [1, 1]} : vector<8x96xf32> to vector<1x96xf32>
    %cst_71 = arith.constant dense<0.000000e+00> : vector<1x96xf32>
    %222 = tpu.matmul %219, %33, %cst_71 {dimension_numbers = #tpu.dot_dimension_numbers<[1], [0], [0], [1], [0, 0, 1, 1], [], []>} : vector<1x32xf32>, vector<32x96xf32>, vector<1x96xf32> -> vector<1x96xf32>
    %223 = vector.extract_strided_slice %221 {offsets = [0, 0], sizes = [1, 32], strides = [1, 1]} : vector<1x96xf32> to vector<1x32xf32>
    %224 = vector.extract_strided_slice %222 {offsets = [0, 0], sizes = [1, 32], strides = [1, 1]} : vector<1x96xf32> to vector<1x32xf32>
    %225 = arith.addf %223, %224 : vector<1x32xf32>
    %226 = arith.negf %225 : vector<1x32xf32>
    %227 = math.exp %226 : vector<1x32xf32>
    %cst_72 = arith.constant 1.000000e+00 : f32
    %228 = vector.broadcast %cst_72 : f32 to vector<1x32xf32>
    %229 = arith.addf %228, %227 : vector<1x32xf32>
    %230 = arith.divf %228, %229 : vector<1x32xf32>
    %231 = vector.extract_strided_slice %221 {offsets = [0, 32], sizes = [1, 32], strides = [1, 1]} : vector<1x96xf32> to vector<1x32xf32>
    %232 = vector.extract_strided_slice %222 {offsets = [0, 32], sizes = [1, 32], strides = [1, 1]} : vector<1x96xf32> to vector<1x32xf32>
    %233 = arith.addf %231, %232 : vector<1x32xf32>
    %234 = arith.negf %233 : vector<1x32xf32>
    %235 = math.exp %234 : vector<1x32xf32>
    %cst_73 = arith.constant 1.000000e+00 : f32
    %236 = vector.broadcast %cst_73 : f32 to vector<1x32xf32>
    %237 = arith.addf %236, %235 : vector<1x32xf32>
    %238 = arith.divf %236, %237 : vector<1x32xf32>
    %239 = vector.extract_strided_slice %221 {offsets = [0, 64], sizes = [1, 32], strides = [1, 1]} : vector<1x96xf32> to vector<1x32xf32>
    %240 = vector.extract_strided_slice %222 {offsets = [0, 64], sizes = [1, 32], strides = [1, 1]} : vector<1x96xf32> to vector<1x32xf32>
    %241 = arith.addf %240, %34 : vector<1x32xf32>
    %242 = arith.mulf %230, %241 : vector<1x32xf32>
    %243 = arith.addf %239, %242 : vector<1x32xf32>
    %244 = math.tanh %243 : vector<1x32xf32>
    %cst_74 = arith.constant 1.000000e+00 : f32
    %245 = vector.broadcast %cst_74 : f32 to vector<1x32xf32>
    %246 = arith.subf %245, %238 : vector<1x32xf32>
    %247 = arith.mulf %246, %244 : vector<1x32xf32>
    %248 = arith.mulf %238, %219 : vector<1x32xf32>
    %249 = arith.addf %247, %248 : vector<1x32xf32>
    %c6_75 = arith.constant 6 : index
    %c0_76 = arith.constant 0 : index
    %250 = vector.load %arg22[%c6_75, %c0_76] : memref<8x32xf32, #tpu.memory_space<vmem>>, vector<1x32xf32>
    tpu.vector_store %arg22[%c6_75, %c0_76], %249 {strides = array<i32>} : memref<8x32xf32, #tpu.memory_space<vmem>>, vector<1x32xf32>,
    %251 = vector.extract_strided_slice %39 {offsets = [7, 0], sizes = [1, 96], strides = [1, 1]} : vector<8x96xf32> to vector<1x96xf32>
    %cst_77 = arith.constant dense<0.000000e+00> : vector<1x96xf32>
    %252 = tpu.matmul %249, %33, %cst_77 {dimension_numbers = #tpu.dot_dimension_numbers<[1], [0], [0], [1], [0, 0, 1, 1], [], []>} : vector<1x32xf32>, vector<32x96xf32>, vector<1x96xf32> -> vector<1x96xf32>
    %253 = vector.extract_strided_slice %251 {offsets = [0, 0], sizes = [1, 32], strides = [1, 1]} : vector<1x96xf32> to vector<1x32xf32>
    %254 = vector.extract_strided_slice %252 {offsets = [0, 0], sizes = [1, 32], strides = [1, 1]} : vector<1x96xf32> to vector<1x32xf32>
    %255 = arith.addf %253, %254 : vector<1x32xf32>
    %256 = arith.negf %255 : vector<1x32xf32>
    %257 = math.exp %256 : vector<1x32xf32>
    %cst_78 = arith.constant 1.000000e+00 : f32
    %258 = vector.broadcast %cst_78 : f32 to vector<1x32xf32>
    %259 = arith.addf %258, %257 : vector<1x32xf32>
    %260 = arith.divf %258, %259 : vector<1x32xf32>
    %261 = vector.extract_strided_slice %251 {offsets = [0, 32], sizes = [1, 32], strides = [1, 1]} : vector<1x96xf32> to vector<1x32xf32>
    %262 = vector.extract_strided_slice %252 {offsets = [0, 32], sizes = [1, 32], strides = [1, 1]} : vector<1x96xf32> to vector<1x32xf32>
    %263 = arith.addf %261, %262 : vector<1x32xf32>
    %264 = arith.negf %263 : vector<1x32xf32>
    %265 = math.exp %264 : vector<1x32xf32>
    %cst_79 = arith.constant 1.000000e+00 : f32
    %266 = vector.broadcast %cst_79 : f32 to vector<1x32xf32>
    %267 = arith.addf %266, %265 : vector<1x32xf32>
    %268 = arith.divf %266, %267 : vector<1x32xf32>
    %269 = vector.extract_strided_slice %251 {offsets = [0, 64], sizes = [1, 32], strides = [1, 1]} : vector<1x96xf32> to vector<1x32xf32>
    %270 = vector.extract_strided_slice %252 {offsets = [0, 64], sizes = [1, 32], strides = [1, 1]} : vector<1x96xf32> to vector<1x32xf32>
    %271 = arith.addf %270, %34 : vector<1x32xf32>
    %272 = arith.mulf %260, %271 : vector<1x32xf32>
    %273 = arith.addf %269, %272 : vector<1x32xf32>
    %274 = math.tanh %273 : vector<1x32xf32>
    %cst_80 = arith.constant 1.000000e+00 : f32
    %275 = vector.broadcast %cst_80 : f32 to vector<1x32xf32>
    %276 = arith.subf %275, %268 : vector<1x32xf32>
    %277 = arith.mulf %276, %274 : vector<1x32xf32>
    %278 = arith.mulf %268, %249 : vector<1x32xf32>
    %279 = arith.addf %277, %278 : vector<1x32xf32>
    %c7_81 = arith.constant 7 : index
    %c0_82 = arith.constant 0 : index
    %280 = vector.load %arg22[%c7_81, %c0_82] : memref<8x32xf32, #tpu.memory_space<vmem>>, vector<1x32xf32>
    tpu.vector_store %arg22[%c7_81, %c0_82], %279 {strides = array<i32>} : memref<8x32xf32, #tpu.memory_space<vmem>>, vector<1x32xf32>,
    %c0_83 = arith.constant 0 : index
    %c0_84 = arith.constant 0 : index
    %281 = vector.load %arg22[%c0_83, %c0_84] : memref<8x32xf32, #tpu.memory_space<vmem>>, vector<8x32xf32>
    %c0_85 = arith.constant 0 : index
    %c0_86 = arith.constant 0 : index
    %282 = vector.load %arg7[%c0_85, %c0_86] : memref<32x32xf32, #tpu.memory_space<vmem>>, vector<32x32xf32>
    %c0_87 = arith.constant 0 : index
    %c0_88 = arith.constant 0 : index
    %283 = vector.load %arg8[%c0_87, %c0_88] : memref<1x32xf32, #tpu.memory_space<vmem>>, vector<1x32xf32>
    %c0_89 = arith.constant 0 : index
    %c0_90 = arith.constant 0 : index
    %284 = vector.load %arg9[%c0_89, %c0_90] : memref<32x32xf32, #tpu.memory_space<vmem>>, vector<32x32xf32>
    %c0_91 = arith.constant 0 : index
    %c0_92 = arith.constant 0 : index
    %285 = vector.load %arg10[%c0_91, %c0_92] : memref<1x32xf32, #tpu.memory_space<vmem>>, vector<1x32xf32>
    %c0_93 = arith.constant 0 : index
    %c0_94 = arith.constant 0 : index
    %286 = vector.load %arg11[%c0_93, %c0_94] : memref<32x1xf32, #tpu.memory_space<vmem>>, vector<32x1xf32>
    %c0_95 = arith.constant 0 : index
    %c0_96 = arith.constant 0 : index
    %287 = vector.load %arg12[%c0_95, %c0_96] : memref<1x1xf32, #tpu.memory_space<vmem>>, vector<1x1xf32>
    %c0_97 = arith.constant 0 : index
    %c0_98 = arith.constant 0 : index
    %288 = vector.load %arg13[%c0_97, %c0_98] : memref<32x96xf32, #tpu.memory_space<vmem>>, vector<32x96xf32>
    %c0_99 = arith.constant 0 : index
    %c0_100 = arith.constant 0 : index
    %289 = vector.load %arg14[%c0_99, %c0_100] : memref<32x96xf32, #tpu.memory_space<vmem>>, vector<32x96xf32>
    %c0_101 = arith.constant 0 : index
    %c0_102 = arith.constant 0 : index
    %290 = vector.load %arg15[%c0_101, %c0_102] : memref<32x96xf32, #tpu.memory_space<vmem>>, vector<32x96xf32>
    %c0_103 = arith.constant 0 : index
    %c0_104 = arith.constant 0 : index
    %291 = vector.load %arg16[%c0_103, %c0_104] : memref<1x96xf32, #tpu.memory_space<vmem>>, vector<1x96xf32>
    %c0_105 = arith.constant 0 : index
    %c0_106 = arith.constant 0 : index
    %292 = vector.load %arg17[%c0_105, %c0_106] : memref<1x32xf32, #tpu.memory_space<vmem>>, vector<1x32xf32>
    %c0_107 = arith.constant 0 : index
    %c0_108 = arith.constant 0 : index
    %293 = vector.load %arg18[%c0_107, %c0_108] : memref<32x16xf32, #tpu.memory_space<vmem>>, vector<32x16xf32>
    %c0_109 = arith.constant 0 : index
    %c0_110 = arith.constant 0 : index
    %294 = vector.load %arg19[%c0_109, %c0_110] : memref<1x16xf32, #tpu.memory_space<vmem>>, vector<1x16xf32>
    %c0_111 = arith.constant 0 : index
    %c0_112 = arith.constant 0 : index
    %295 = vector.load %arg6[%c0_111, %c0_112] : memref<16x32xf32, #tpu.memory_space<vmem>>, vector<16x32xf32>
    %cst_113 = arith.constant dense<0.000000e+00> : vector<8x32xf32>
    %296 = tpu.matmul %281, %284, %cst_113 {dimension_numbers = #tpu.dot_dimension_numbers<[1], [0], [0], [1], [0, 0, 1, 1], [], []>} : vector<8x32xf32>, vector<32x32xf32>, vector<8x32xf32> -> vector<8x32xf32>
    %297 = vector.broadcast %285 : vector<1x32xf32> to vector<8x32xf32>
    %298 = arith.addf %296, %297 : vector<8x32xf32>
    %299 = tpu.iota {dimensions = array<i32: 1>} : vector<1x16xi32>
    %300 = tpu.iota {dimensions = array<i32: 1>} : vector<1x8xi32>
    %301 = vector.extract_strided_slice %295 {offsets = [0, 0], sizes = [1, 32], strides = [1, 1]} : vector<16x32xf32> to vector<1x32xf32>
    %c0_i32 = arith.constant 0 : i32
    %302 = vector.broadcast %c0_i32 : i32 to vector<1x8xi32>
    %cst_114 = arith.constant dense<0.000000e+00> : vector<1x32xf32>
    %303 = tpu.matmul %279, %282, %cst_114 {dimension_numbers = #tpu.dot_dimension_numbers<[1], [0], [0], [1], [0, 0, 1, 1], [], []>} : vector<1x32xf32>, vector<32x32xf32>, vector<1x32xf32> -> vector<1x32xf32>
    %304 = arith.addf %303, %283 : vector<1x32xf32>
    %305 = vector.broadcast %304 : vector<1x32xf32> to vector<8x32xf32>
    %306 = arith.addf %305, %298 : vector<8x32xf32>
    %307 = math.tanh %306 : vector<8x32xf32>
    %cst_115 = arith.constant dense<0.000000e+00> : vector<8x1xf32>
    %308 = tpu.matmul %307, %286, %cst_115 {dimension_numbers = #tpu.dot_dimension_numbers<[1], [0], [0], [1], [0, 0, 1, 1], [], []>} : vector<8x32xf32>, vector<32x1xf32>, vector<8x1xf32> -> vector<8x1xf32>
    %309 = vector.broadcast %287 : vector<1x1xf32> to vector<8x1xf32>
    %310 = arith.addf %308, %309 : vector<8x1xf32>
    %cst_116 = arith.constant dense<0xFF800000> : vector<1xf32>
    %311 = vector.multi_reduction <maximumf>, %310, %cst_116 [0] : vector<8x1xf32> to vector<1xf32>
    %312 = vector.shape_cast %311 : vector<1xf32> to vector<1x1xf32>
    %313 = vector.broadcast %312 : vector<1x1xf32> to vector<8x1xf32>
    %314 = arith.subf %310, %313 : vector<8x1xf32>
    %315 = math.exp %314 : vector<8x1xf32>
    %cst_117 = arith.constant dense<0.000000e+00> : vector<1xf32>
    %316 = vector.multi_reduction <add>, %315, %cst_117 [0] : vector<8x1xf32> to vector<1xf32>
    %317 = vector.shape_cast %316 : vector<1xf32> to vector<1x1xf32>
    %318 = tpu.reciprocal %317 {approx = true} : vector<1x1xf32> -> vector<1x1xf32>
    %319 = vector.broadcast %318 : vector<1x1xf32> to vector<8x1xf32>
    %320 = arith.mulf %315, %319 : vector<8x1xf32>
    %321 = vector.broadcast %320 : vector<8x1xf32> to vector<8x32xf32>
    %322 = arith.mulf %321, %281 : vector<8x32xf32>
    %cst_118 = arith.constant dense<0.000000e+00> : vector<32xf32>
    %323 = vector.multi_reduction <add>, %322, %cst_118 [0] : vector<8x32xf32> to vector<32xf32>
    %324 = vector.shape_cast %323 : vector<32xf32> to vector<1x32xf32>
    %cst_119 = arith.constant dense<0.000000e+00> : vector<1x96xf32>
    %325 = tpu.matmul %301, %288, %cst_119 {dimension_numbers = #tpu.dot_dimension_numbers<[1], [0], [0], [1], [0, 0, 1, 1], [], []>} : vector<1x32xf32>, vector<32x96xf32>, vector<1x96xf32> -> vector<1x96xf32>
    %cst_120 = arith.constant dense<0.000000e+00> : vector<1x96xf32>
    %326 = tpu.matmul %324, %289, %cst_120 {dimension_numbers = #tpu.dot_dimension_numbers<[1], [0], [0], [1], [0, 0, 1, 1], [], []>} : vector<1x32xf32>, vector<32x96xf32>, vector<1x96xf32> -> vector<1x96xf32>
    %327 = arith.addf %325, %326 : vector<1x96xf32>
    %328 = arith.addf %327, %291 : vector<1x96xf32>
    %cst_121 = arith.constant dense<0.000000e+00> : vector<1x96xf32>
    %329 = tpu.matmul %279, %290, %cst_121 {dimension_numbers = #tpu.dot_dimension_numbers<[1], [0], [0], [1], [0, 0, 1, 1], [], []>} : vector<1x32xf32>, vector<32x96xf32>, vector<1x96xf32> -> vector<1x96xf32>
    %330 = vector.extract_strided_slice %328 {offsets = [0, 0], sizes = [1, 32], strides = [1, 1]} : vector<1x96xf32> to vector<1x32xf32>
    %331 = vector.extract_strided_slice %329 {offsets = [0, 0], sizes = [1, 32], strides = [1, 1]} : vector<1x96xf32> to vector<1x32xf32>
    %332 = arith.addf %330, %331 : vector<1x32xf32>
    %333 = arith.negf %332 : vector<1x32xf32>
    %334 = math.exp %333 : vector<1x32xf32>
    %cst_122 = arith.constant 1.000000e+00 : f32
    %335 = vector.broadcast %cst_122 : f32 to vector<1x32xf32>
    %336 = arith.addf %335, %334 : vector<1x32xf32>
    %337 = arith.divf %335, %336 : vector<1x32xf32>
    %338 = vector.extract_strided_slice %328 {offsets = [0, 32], sizes = [1, 32], strides = [1, 1]} : vector<1x96xf32> to vector<1x32xf32>
    %339 = vector.extract_strided_slice %329 {offsets = [0, 32], sizes = [1, 32], strides = [1, 1]} : vector<1x96xf32> to vector<1x32xf32>
    %340 = arith.addf %338, %339 : vector<1x32xf32>
    %341 = arith.negf %340 : vector<1x32xf32>
    %342 = math.exp %341 : vector<1x32xf32>
    %cst_123 = arith.constant 1.000000e+00 : f32
    %343 = vector.broadcast %cst_123 : f32 to vector<1x32xf32>
    %344 = arith.addf %343, %342 : vector<1x32xf32>
    %345 = arith.divf %343, %344 : vector<1x32xf32>
    %346 = vector.extract_strided_slice %328 {offsets = [0, 64], sizes = [1, 32], strides = [1, 1]} : vector<1x96xf32> to vector<1x32xf32>
    %347 = vector.extract_strided_slice %329 {offsets = [0, 64], sizes = [1, 32], strides = [1, 1]} : vector<1x96xf32> to vector<1x32xf32>
    %348 = arith.addf %347, %292 : vector<1x32xf32>
    %349 = arith.mulf %337, %348 : vector<1x32xf32>
    %350 = arith.addf %346, %349 : vector<1x32xf32>
    %351 = math.tanh %350 : vector<1x32xf32>
    %cst_124 = arith.constant 1.000000e+00 : f32
    %352 = vector.broadcast %cst_124 : f32 to vector<1x32xf32>
    %353 = arith.subf %352, %345 : vector<1x32xf32>
    %354 = arith.mulf %353, %351 : vector<1x32xf32>
    %355 = arith.mulf %345, %279 : vector<1x32xf32>
    %356 = arith.addf %354, %355 : vector<1x32xf32>
    %cst_125 = arith.constant dense<0.000000e+00> : vector<1x16xf32>
    %357 = tpu.matmul %356, %293, %cst_125 {dimension_numbers = #tpu.dot_dimension_numbers<[1], [0], [0], [1], [0, 0, 1, 1], [], []>} : vector<1x32xf32>, vector<32x16xf32>, vector<1x16xf32> -> vector<1x16xf32>
    %358 = arith.addf %357, %294 : vector<1x16xf32>
    %cst_126 = arith.constant dense<0xFF800000> : vector<1xf32>
    %359 = vector.multi_reduction <maximumf>, %358, %cst_126 [1] : vector<1x16xf32> to vector<1xf32>
    %360 = vector.shape_cast %359 : vector<1xf32> to vector<1x1xf32>
    %361 = vector.broadcast %360 : vector<1x1xf32> to vector<1x16xf32>
    %362 = arith.cmpf oge, %358, %361 : vector<1x16xf32>
    %c16_i32 = arith.constant 16 : i32
    %363 = vector.broadcast %c16_i32 : i32 to vector<1x16xi32>
    %364 = arith.select %362, %299, %363 : vector<1x16xi1>, vector<1x16xi32>
    %cst_127 = arith.constant dense<2147483647> : vector<1xi32>
    %365 = vector.multi_reduction <minsi>, %364, %cst_127 [1] : vector<1x16xi32> to vector<1xi32>
    %366 = vector.shape_cast %365 : vector<1xi32> to vector<1x1xi32>
    %c0_i32_128 = arith.constant 0 : i32
    %367 = vector.broadcast %c0_i32_128 : i32 to vector<1x8xi32>
    %368 = arith.cmpi eq, %300, %367 : vector<1x8xi32>
    %369 = vector.shape_cast %366 : vector<1x1xi32> to vector<1x1xi32>
    %370 = vector.broadcast %369 : vector<1x1xi32> to vector<1x8xi32>
    %371 = arith.select %368, %370, %302 : vector<1x8xi1>, vector<1x8xi32>
    %372 = vector.broadcast %366 : vector<1x1xi32> to vector<1x16xi32>
    %373 = arith.cmpi eq, %299, %372 : vector<1x16xi32>
    %374 = arith.extui %373 : vector<1x16xi1> to vector<1x16xi32>
    %375 = arith.sitofp %374 : vector<1x16xi32> to vector<1x16xf32>
    %cst_129 = arith.constant dense<0.000000e+00> : vector<1x32xf32>
    %376 = tpu.matmul %375, %295, %cst_129 {dimension_numbers = #tpu.dot_dimension_numbers<[1], [0], [0], [1], [0, 0, 1, 1], [], []>} : vector<1x16xf32>, vector<16x32xf32>, vector<1x32xf32> -> vector<1x32xf32>
    %cst_130 = arith.constant dense<0.000000e+00> : vector<1x32xf32>
    %377 = tpu.matmul %356, %282, %cst_130 {dimension_numbers = #tpu.dot_dimension_numbers<[1], [0], [0], [1], [0, 0, 1, 1], [], []>} : vector<1x32xf32>, vector<32x32xf32>, vector<1x32xf32> -> vector<1x32xf32>
    %378 = arith.addf %377, %283 : vector<1x32xf32>
    %379 = vector.broadcast %378 : vector<1x32xf32> to vector<8x32xf32>
    %380 = arith.addf %379, %298 : vector<8x32xf32>
    %381 = math.tanh %380 : vector<8x32xf32>
    %cst_131 = arith.constant dense<0.000000e+00> : vector<8x1xf32>
    %382 = tpu.matmul %381, %286, %cst_131 {dimension_numbers = #tpu.dot_dimension_numbers<[1], [0], [0], [1], [0, 0, 1, 1], [], []>} : vector<8x32xf32>, vector<32x1xf32>, vector<8x1xf32> -> vector<8x1xf32>
    %383 = vector.broadcast %287 : vector<1x1xf32> to vector<8x1xf32>
    %384 = arith.addf %382, %383 : vector<8x1xf32>
    %cst_132 = arith.constant dense<0xFF800000> : vector<1xf32>
    %385 = vector.multi_reduction <maximumf>, %384, %cst_132 [0] : vector<8x1xf32> to vector<1xf32>
    %386 = vector.shape_cast %385 : vector<1xf32> to vector<1x1xf32>
    %387 = vector.broadcast %386 : vector<1x1xf32> to vector<8x1xf32>
    %388 = arith.subf %384, %387 : vector<8x1xf32>
    %389 = math.exp %388 : vector<8x1xf32>
    %cst_133 = arith.constant dense<0.000000e+00> : vector<1xf32>
    %390 = vector.multi_reduction <add>, %389, %cst_133 [0] : vector<8x1xf32> to vector<1xf32>
    %391 = vector.shape_cast %390 : vector<1xf32> to vector<1x1xf32>
    %392 = tpu.reciprocal %391 {approx = true} : vector<1x1xf32> -> vector<1x1xf32>
    %393 = vector.broadcast %392 : vector<1x1xf32> to vector<8x1xf32>
    %394 = arith.mulf %389, %393 : vector<8x1xf32>
    %395 = vector.broadcast %394 : vector<8x1xf32> to vector<8x32xf32>
    %396 = arith.mulf %395, %281 : vector<8x32xf32>
    %cst_134 = arith.constant dense<0.000000e+00> : vector<32xf32>
    %397 = vector.multi_reduction <add>, %396, %cst_134 [0] : vector<8x32xf32> to vector<32xf32>
    %398 = vector.shape_cast %397 : vector<32xf32> to vector<1x32xf32>
    %cst_135 = arith.constant dense<0.000000e+00> : vector<1x96xf32>
    %399 = tpu.matmul %376, %288, %cst_135 {dimension_numbers = #tpu.dot_dimension_numbers<[1], [0], [0], [1], [0, 0, 1, 1], [], []>} : vector<1x32xf32>, vector<32x96xf32>, vector<1x96xf32> -> vector<1x96xf32>
    %cst_136 = arith.constant dense<0.000000e+00> : vector<1x96xf32>
    %400 = tpu.matmul %398, %289, %cst_136 {dimension_numbers = #tpu.dot_dimension_numbers<[1], [0], [0], [1], [0, 0, 1, 1], [], []>} : vector<1x32xf32>, vector<32x96xf32>, vector<1x96xf32> -> vector<1x96xf32>
    %401 = arith.addf %399, %400 : vector<1x96xf32>
    %402 = arith.addf %401, %291 : vector<1x96xf32>
    %cst_137 = arith.constant dense<0.000000e+00> : vector<1x96xf32>
    %403 = tpu.matmul %356, %290, %cst_137 {dimension_numbers = #tpu.dot_dimension_numbers<[1], [0], [0], [1], [0, 0, 1, 1], [], []>} : vector<1x32xf32>, vector<32x96xf32>, vector<1x96xf32> -> vector<1x96xf32>
    %404 = vector.extract_strided_slice %402 {offsets = [0, 0], sizes = [1, 32], strides = [1, 1]} : vector<1x96xf32> to vector<1x32xf32>
    %405 = vector.extract_strided_slice %403 {offsets = [0, 0], sizes = [1, 32], strides = [1, 1]} : vector<1x96xf32> to vector<1x32xf32>
    %406 = arith.addf %404, %405 : vector<1x32xf32>
    %407 = arith.negf %406 : vector<1x32xf32>
    %408 = math.exp %407 : vector<1x32xf32>
    %cst_138 = arith.constant 1.000000e+00 : f32
    %409 = vector.broadcast %cst_138 : f32 to vector<1x32xf32>
    %410 = arith.addf %409, %408 : vector<1x32xf32>
    %411 = arith.divf %409, %410 : vector<1x32xf32>
    %412 = vector.extract_strided_slice %402 {offsets = [0, 32], sizes = [1, 32], strides = [1, 1]} : vector<1x96xf32> to vector<1x32xf32>
    %413 = vector.extract_strided_slice %403 {offsets = [0, 32], sizes = [1, 32], strides = [1, 1]} : vector<1x96xf32> to vector<1x32xf32>
    %414 = arith.addf %412, %413 : vector<1x32xf32>
    %415 = arith.negf %414 : vector<1x32xf32>
    %416 = math.exp %415 : vector<1x32xf32>
    %cst_139 = arith.constant 1.000000e+00 : f32
    %417 = vector.broadcast %cst_139 : f32 to vector<1x32xf32>
    %418 = arith.addf %417, %416 : vector<1x32xf32>
    %419 = arith.divf %417, %418 : vector<1x32xf32>
    %420 = vector.extract_strided_slice %402 {offsets = [0, 64], sizes = [1, 32], strides = [1, 1]} : vector<1x96xf32> to vector<1x32xf32>
    %421 = vector.extract_strided_slice %403 {offsets = [0, 64], sizes = [1, 32], strides = [1, 1]} : vector<1x96xf32> to vector<1x32xf32>
    %422 = arith.addf %421, %292 : vector<1x32xf32>
    %423 = arith.mulf %411, %422 : vector<1x32xf32>
    %424 = arith.addf %420, %423 : vector<1x32xf32>
    %425 = math.tanh %424 : vector<1x32xf32>
    %cst_140 = arith.constant 1.000000e+00 : f32
    %426 = vector.broadcast %cst_140 : f32 to vector<1x32xf32>
    %427 = arith.subf %426, %419 : vector<1x32xf32>
    %428 = arith.mulf %427, %425 : vector<1x32xf32>
    %429 = arith.mulf %419, %356 : vector<1x32xf32>
    %430 = arith.addf %428, %429 : vector<1x32xf32>
    %cst_141 = arith.constant dense<0.000000e+00> : vector<1x16xf32>
    %431 = tpu.matmul %430, %293, %cst_141 {dimension_numbers = #tpu.dot_dimension_numbers<[1], [0], [0], [1], [0, 0, 1, 1], [], []>} : vector<1x32xf32>, vector<32x16xf32>, vector<1x16xf32> -> vector<1x16xf32>
    %432 = arith.addf %431, %294 : vector<1x16xf32>
    %cst_142 = arith.constant dense<0xFF800000> : vector<1xf32>
    %433 = vector.multi_reduction <maximumf>, %432, %cst_142 [1] : vector<1x16xf32> to vector<1xf32>
    %434 = vector.shape_cast %433 : vector<1xf32> to vector<1x1xf32>
    %435 = vector.broadcast %434 : vector<1x1xf32> to vector<1x16xf32>
    %436 = arith.cmpf oge, %432, %435 : vector<1x16xf32>
    %c16_i32_143 = arith.constant 16 : i32
    %437 = vector.broadcast %c16_i32_143 : i32 to vector<1x16xi32>
    %438 = arith.select %436, %299, %437 : vector<1x16xi1>, vector<1x16xi32>
    %cst_144 = arith.constant dense<2147483647> : vector<1xi32>
    %439 = vector.multi_reduction <minsi>, %438, %cst_144 [1] : vector<1x16xi32> to vector<1xi32>
    %440 = vector.shape_cast %439 : vector<1xi32> to vector<1x1xi32>
    %c1_i32 = arith.constant 1 : i32
    %441 = vector.broadcast %c1_i32 : i32 to vector<1x8xi32>
    %442 = arith.cmpi eq, %300, %441 : vector<1x8xi32>
    %443 = vector.shape_cast %440 : vector<1x1xi32> to vector<1x1xi32>
    %444 = vector.broadcast %443 : vector<1x1xi32> to vector<1x8xi32>
    %445 = arith.select %442, %444, %371 : vector<1x8xi1>, vector<1x8xi32>
    %446 = vector.broadcast %440 : vector<1x1xi32> to vector<1x16xi32>
    %447 = arith.cmpi eq, %299, %446 : vector<1x16xi32>
    %448 = arith.extui %447 : vector<1x16xi1> to vector<1x16xi32>
    %449 = arith.sitofp %448 : vector<1x16xi32> to vector<1x16xf32>
    %cst_145 = arith.constant dense<0.000000e+00> : vector<1x32xf32>
    %450 = tpu.matmul %449, %295, %cst_145 {dimension_numbers = #tpu.dot_dimension_numbers<[1], [0], [0], [1], [0, 0, 1, 1], [], []>} : vector<1x16xf32>, vector<16x32xf32>, vector<1x32xf32> -> vector<1x32xf32>
    %cst_146 = arith.constant dense<0.000000e+00> : vector<1x32xf32>
    %451 = tpu.matmul %430, %282, %cst_146 {dimension_numbers = #tpu.dot_dimension_numbers<[1], [0], [0], [1], [0, 0, 1, 1], [], []>} : vector<1x32xf32>, vector<32x32xf32>, vector<1x32xf32> -> vector<1x32xf32>
    %452 = arith.addf %451, %283 : vector<1x32xf32>
    %453 = vector.broadcast %452 : vector<1x32xf32> to vector<8x32xf32>
    %454 = arith.addf %453, %298 : vector<8x32xf32>
    %455 = math.tanh %454 : vector<8x32xf32>
    %cst_147 = arith.constant dense<0.000000e+00> : vector<8x1xf32>
    %456 = tpu.matmul %455, %286, %cst_147 {dimension_numbers = #tpu.dot_dimension_numbers<[1], [0], [0], [1], [0, 0, 1, 1], [], []>} : vector<8x32xf32>, vector<32x1xf32>, vector<8x1xf32> -> vector<8x1xf32>
    %457 = vector.broadcast %287 : vector<1x1xf32> to vector<8x1xf32>
    %458 = arith.addf %456, %457 : vector<8x1xf32>
    %cst_148 = arith.constant dense<0xFF800000> : vector<1xf32>
    %459 = vector.multi_reduction <maximumf>, %458, %cst_148 [0] : vector<8x1xf32> to vector<1xf32>
    %460 = vector.shape_cast %459 : vector<1xf32> to vector<1x1xf32>
    %461 = vector.broadcast %460 : vector<1x1xf32> to vector<8x1xf32>
    %462 = arith.subf %458, %461 : vector<8x1xf32>
    %463 = math.exp %462 : vector<8x1xf32>
    %cst_149 = arith.constant dense<0.000000e+00> : vector<1xf32>
    %464 = vector.multi_reduction <add>, %463, %cst_149 [0] : vector<8x1xf32> to vector<1xf32>
    %465 = vector.shape_cast %464 : vector<1xf32> to vector<1x1xf32>
    %466 = tpu.reciprocal %465 {approx = true} : vector<1x1xf32> -> vector<1x1xf32>
    %467 = vector.broadcast %466 : vector<1x1xf32> to vector<8x1xf32>
    %468 = arith.mulf %463, %467 : vector<8x1xf32>
    %469 = vector.broadcast %468 : vector<8x1xf32> to vector<8x32xf32>
    %470 = arith.mulf %469, %281 : vector<8x32xf32>
    %cst_150 = arith.constant dense<0.000000e+00> : vector<32xf32>
    %471 = vector.multi_reduction <add>, %470, %cst_150 [0] : vector<8x32xf32> to vector<32xf32>
    %472 = vector.shape_cast %471 : vector<32xf32> to vector<1x32xf32>
    %cst_151 = arith.constant dense<0.000000e+00> : vector<1x96xf32>
    %473 = tpu.matmul %450, %288, %cst_151 {dimension_numbers = #tpu.dot_dimension_numbers<[1], [0], [0], [1], [0, 0, 1, 1], [], []>} : vector<1x32xf32>, vector<32x96xf32>, vector<1x96xf32> -> vector<1x96xf32>
    %cst_152 = arith.constant dense<0.000000e+00> : vector<1x96xf32>
    %474 = tpu.matmul %472, %289, %cst_152 {dimension_numbers = #tpu.dot_dimension_numbers<[1], [0], [0], [1], [0, 0, 1, 1], [], []>} : vector<1x32xf32>, vector<32x96xf32>, vector<1x96xf32> -> vector<1x96xf32>
    %475 = arith.addf %473, %474 : vector<1x96xf32>
    %476 = arith.addf %475, %291 : vector<1x96xf32>
    %cst_153 = arith.constant dense<0.000000e+00> : vector<1x96xf32>
    %477 = tpu.matmul %430, %290, %cst_153 {dimension_numbers = #tpu.dot_dimension_numbers<[1], [0], [0], [1], [0, 0, 1, 1], [], []>} : vector<1x32xf32>, vector<32x96xf32>, vector<1x96xf32> -> vector<1x96xf32>
    %478 = vector.extract_strided_slice %476 {offsets = [0, 0], sizes = [1, 32], strides = [1, 1]} : vector<1x96xf32> to vector<1x32xf32>
    %479 = vector.extract_strided_slice %477 {offsets = [0, 0], sizes = [1, 32], strides = [1, 1]} : vector<1x96xf32> to vector<1x32xf32>
    %480 = arith.addf %478, %479 : vector<1x32xf32>
    %481 = arith.negf %480 : vector<1x32xf32>
    %482 = math.exp %481 : vector<1x32xf32>
    %cst_154 = arith.constant 1.000000e+00 : f32
    %483 = vector.broadcast %cst_154 : f32 to vector<1x32xf32>
    %484 = arith.addf %483, %482 : vector<1x32xf32>
    %485 = arith.divf %483, %484 : vector<1x32xf32>
    %486 = vector.extract_strided_slice %476 {offsets = [0, 32], sizes = [1, 32], strides = [1, 1]} : vector<1x96xf32> to vector<1x32xf32>
    %487 = vector.extract_strided_slice %477 {offsets = [0, 32], sizes = [1, 32], strides = [1, 1]} : vector<1x96xf32> to vector<1x32xf32>
    %488 = arith.addf %486, %487 : vector<1x32xf32>
    %489 = arith.negf %488 : vector<1x32xf32>
    %490 = math.exp %489 : vector<1x32xf32>
    %cst_155 = arith.constant 1.000000e+00 : f32
    %491 = vector.broadcast %cst_155 : f32 to vector<1x32xf32>
    %492 = arith.addf %491, %490 : vector<1x32xf32>
    %493 = arith.divf %491, %492 : vector<1x32xf32>
    %494 = vector.extract_strided_slice %476 {offsets = [0, 64], sizes = [1, 32], strides = [1, 1]} : vector<1x96xf32> to vector<1x32xf32>
    %495 = vector.extract_strided_slice %477 {offsets = [0, 64], sizes = [1, 32], strides = [1, 1]} : vector<1x96xf32> to vector<1x32xf32>
    %496 = arith.addf %495, %292 : vector<1x32xf32>
    %497 = arith.mulf %485, %496 : vector<1x32xf32>
    %498 = arith.addf %494, %497 : vector<1x32xf32>
    %499 = math.tanh %498 : vector<1x32xf32>
    %cst_156 = arith.constant 1.000000e+00 : f32
    %500 = vector.broadcast %cst_156 : f32 to vector<1x32xf32>
    %501 = arith.subf %500, %493 : vector<1x32xf32>
    %502 = arith.mulf %501, %499 : vector<1x32xf32>
    %503 = arith.mulf %493, %430 : vector<1x32xf32>
    %504 = arith.addf %502, %503 : vector<1x32xf32>
    %cst_157 = arith.constant dense<0.000000e+00> : vector<1x16xf32>
    %505 = tpu.matmul %504, %293, %cst_157 {dimension_numbers = #tpu.dot_dimension_numbers<[1], [0], [0], [1], [0, 0, 1, 1], [], []>} : vector<1x32xf32>, vector<32x16xf32>, vector<1x16xf32> -> vector<1x16xf32>
    %506 = arith.addf %505, %294 : vector<1x16xf32>
    %cst_158 = arith.constant dense<0xFF800000> : vector<1xf32>
    %507 = vector.multi_reduction <maximumf>, %506, %cst_158 [1] : vector<1x16xf32> to vector<1xf32>
    %508 = vector.shape_cast %507 : vector<1xf32> to vector<1x1xf32>
    %509 = vector.broadcast %508 : vector<1x1xf32> to vector<1x16xf32>
    %510 = arith.cmpf oge, %506, %509 : vector<1x16xf32>
    %c16_i32_159 = arith.constant 16 : i32
    %511 = vector.broadcast %c16_i32_159 : i32 to vector<1x16xi32>
    %512 = arith.select %510, %299, %511 : vector<1x16xi1>, vector<1x16xi32>
    %cst_160 = arith.constant dense<2147483647> : vector<1xi32>
    %513 = vector.multi_reduction <minsi>, %512, %cst_160 [1] : vector<1x16xi32> to vector<1xi32>
    %514 = vector.shape_cast %513 : vector<1xi32> to vector<1x1xi32>
    %c2_i32 = arith.constant 2 : i32
    %515 = vector.broadcast %c2_i32 : i32 to vector<1x8xi32>
    %516 = arith.cmpi eq, %300, %515 : vector<1x8xi32>
    %517 = vector.shape_cast %514 : vector<1x1xi32> to vector<1x1xi32>
    %518 = vector.broadcast %517 : vector<1x1xi32> to vector<1x8xi32>
    %519 = arith.select %516, %518, %445 : vector<1x8xi1>, vector<1x8xi32>
    %520 = vector.broadcast %514 : vector<1x1xi32> to vector<1x16xi32>
    %521 = arith.cmpi eq, %299, %520 : vector<1x16xi32>
    %522 = arith.extui %521 : vector<1x16xi1> to vector<1x16xi32>
    %523 = arith.sitofp %522 : vector<1x16xi32> to vector<1x16xf32>
    %cst_161 = arith.constant dense<0.000000e+00> : vector<1x32xf32>
    %524 = tpu.matmul %523, %295, %cst_161 {dimension_numbers = #tpu.dot_dimension_numbers<[1], [0], [0], [1], [0, 0, 1, 1], [], []>} : vector<1x16xf32>, vector<16x32xf32>, vector<1x32xf32> -> vector<1x32xf32>
    %cst_162 = arith.constant dense<0.000000e+00> : vector<1x32xf32>
    %525 = tpu.matmul %504, %282, %cst_162 {dimension_numbers = #tpu.dot_dimension_numbers<[1], [0], [0], [1], [0, 0, 1, 1], [], []>} : vector<1x32xf32>, vector<32x32xf32>, vector<1x32xf32> -> vector<1x32xf32>
    %526 = arith.addf %525, %283 : vector<1x32xf32>
    %527 = vector.broadcast %526 : vector<1x32xf32> to vector<8x32xf32>
    %528 = arith.addf %527, %298 : vector<8x32xf32>
    %529 = math.tanh %528 : vector<8x32xf32>
    %cst_163 = arith.constant dense<0.000000e+00> : vector<8x1xf32>
    %530 = tpu.matmul %529, %286, %cst_163 {dimension_numbers = #tpu.dot_dimension_numbers<[1], [0], [0], [1], [0, 0, 1, 1], [], []>} : vector<8x32xf32>, vector<32x1xf32>, vector<8x1xf32> -> vector<8x1xf32>
    %531 = vector.broadcast %287 : vector<1x1xf32> to vector<8x1xf32>
    %532 = arith.addf %530, %531 : vector<8x1xf32>
    %cst_164 = arith.constant dense<0xFF800000> : vector<1xf32>
    %533 = vector.multi_reduction <maximumf>, %532, %cst_164 [0] : vector<8x1xf32> to vector<1xf32>
    %534 = vector.shape_cast %533 : vector<1xf32> to vector<1x1xf32>
    %535 = vector.broadcast %534 : vector<1x1xf32> to vector<8x1xf32>
    %536 = arith.subf %532, %535 : vector<8x1xf32>
    %537 = math.exp %536 : vector<8x1xf32>
    %cst_165 = arith.constant dense<0.000000e+00> : vector<1xf32>
    %538 = vector.multi_reduction <add>, %537, %cst_165 [0] : vector<8x1xf32> to vector<1xf32>
    %539 = vector.shape_cast %538 : vector<1xf32> to vector<1x1xf32>
    %540 = tpu.reciprocal %539 {approx = true} : vector<1x1xf32> -> vector<1x1xf32>
    %541 = vector.broadcast %540 : vector<1x1xf32> to vector<8x1xf32>
    %542 = arith.mulf %537, %541 : vector<8x1xf32>
    %543 = vector.broadcast %542 : vector<8x1xf32> to vector<8x32xf32>
    %544 = arith.mulf %543, %281 : vector<8x32xf32>
    %cst_166 = arith.constant dense<0.000000e+00> : vector<32xf32>
    %545 = vector.multi_reduction <add>, %544, %cst_166 [0] : vector<8x32xf32> to vector<32xf32>
    %546 = vector.shape_cast %545 : vector<32xf32> to vector<1x32xf32>
    %cst_167 = arith.constant dense<0.000000e+00> : vector<1x96xf32>
    %547 = tpu.matmul %524, %288, %cst_167 {dimension_numbers = #tpu.dot_dimension_numbers<[1], [0], [0], [1], [0, 0, 1, 1], [], []>} : vector<1x32xf32>, vector<32x96xf32>, vector<1x96xf32> -> vector<1x96xf32>
    %cst_168 = arith.constant dense<0.000000e+00> : vector<1x96xf32>
    %548 = tpu.matmul %546, %289, %cst_168 {dimension_numbers = #tpu.dot_dimension_numbers<[1], [0], [0], [1], [0, 0, 1, 1], [], []>} : vector<1x32xf32>, vector<32x96xf32>, vector<1x96xf32> -> vector<1x96xf32>
    %549 = arith.addf %547, %548 : vector<1x96xf32>
    %550 = arith.addf %549, %291 : vector<1x96xf32>
    %cst_169 = arith.constant dense<0.000000e+00> : vector<1x96xf32>
    %551 = tpu.matmul %504, %290, %cst_169 {dimension_numbers = #tpu.dot_dimension_numbers<[1], [0], [0], [1], [0, 0, 1, 1], [], []>} : vector<1x32xf32>, vector<32x96xf32>, vector<1x96xf32> -> vector<1x96xf32>
    %552 = vector.extract_strided_slice %550 {offsets = [0, 0], sizes = [1, 32], strides = [1, 1]} : vector<1x96xf32> to vector<1x32xf32>
    %553 = vector.extract_strided_slice %551 {offsets = [0, 0], sizes = [1, 32], strides = [1, 1]} : vector<1x96xf32> to vector<1x32xf32>
    %554 = arith.addf %552, %553 : vector<1x32xf32>
    %555 = arith.negf %554 : vector<1x32xf32>
    %556 = math.exp %555 : vector<1x32xf32>
    %cst_170 = arith.constant 1.000000e+00 : f32
    %557 = vector.broadcast %cst_170 : f32 to vector<1x32xf32>
    %558 = arith.addf %557, %556 : vector<1x32xf32>
    %559 = arith.divf %557, %558 : vector<1x32xf32>
    %560 = vector.extract_strided_slice %550 {offsets = [0, 32], sizes = [1, 32], strides = [1, 1]} : vector<1x96xf32> to vector<1x32xf32>
    %561 = vector.extract_strided_slice %551 {offsets = [0, 32], sizes = [1, 32], strides = [1, 1]} : vector<1x96xf32> to vector<1x32xf32>
    %562 = arith.addf %560, %561 : vector<1x32xf32>
    %563 = arith.negf %562 : vector<1x32xf32>
    %564 = math.exp %563 : vector<1x32xf32>
    %cst_171 = arith.constant 1.000000e+00 : f32
    %565 = vector.broadcast %cst_171 : f32 to vector<1x32xf32>
    %566 = arith.addf %565, %564 : vector<1x32xf32>
    %567 = arith.divf %565, %566 : vector<1x32xf32>
    %568 = vector.extract_strided_slice %550 {offsets = [0, 64], sizes = [1, 32], strides = [1, 1]} : vector<1x96xf32> to vector<1x32xf32>
    %569 = vector.extract_strided_slice %551 {offsets = [0, 64], sizes = [1, 32], strides = [1, 1]} : vector<1x96xf32> to vector<1x32xf32>
    %570 = arith.addf %569, %292 : vector<1x32xf32>
    %571 = arith.mulf %559, %570 : vector<1x32xf32>
    %572 = arith.addf %568, %571 : vector<1x32xf32>
    %573 = math.tanh %572 : vector<1x32xf32>
    %cst_172 = arith.constant 1.000000e+00 : f32
    %574 = vector.broadcast %cst_172 : f32 to vector<1x32xf32>
    %575 = arith.subf %574, %567 : vector<1x32xf32>
    %576 = arith.mulf %575, %573 : vector<1x32xf32>
    %577 = arith.mulf %567, %504 : vector<1x32xf32>
    %578 = arith.addf %576, %577 : vector<1x32xf32>
    %cst_173 = arith.constant dense<0.000000e+00> : vector<1x16xf32>
    %579 = tpu.matmul %578, %293, %cst_173 {dimension_numbers = #tpu.dot_dimension_numbers<[1], [0], [0], [1], [0, 0, 1, 1], [], []>} : vector<1x32xf32>, vector<32x16xf32>, vector<1x16xf32> -> vector<1x16xf32>
    %580 = arith.addf %579, %294 : vector<1x16xf32>
    %cst_174 = arith.constant dense<0xFF800000> : vector<1xf32>
    %581 = vector.multi_reduction <maximumf>, %580, %cst_174 [1] : vector<1x16xf32> to vector<1xf32>
    %582 = vector.shape_cast %581 : vector<1xf32> to vector<1x1xf32>
    %583 = vector.broadcast %582 : vector<1x1xf32> to vector<1x16xf32>
    %584 = arith.cmpf oge, %580, %583 : vector<1x16xf32>
    %c16_i32_175 = arith.constant 16 : i32
    %585 = vector.broadcast %c16_i32_175 : i32 to vector<1x16xi32>
    %586 = arith.select %584, %299, %585 : vector<1x16xi1>, vector<1x16xi32>
    %cst_176 = arith.constant dense<2147483647> : vector<1xi32>
    %587 = vector.multi_reduction <minsi>, %586, %cst_176 [1] : vector<1x16xi32> to vector<1xi32>
    %588 = vector.shape_cast %587 : vector<1xi32> to vector<1x1xi32>
    %c3_i32 = arith.constant 3 : i32
    %589 = vector.broadcast %c3_i32 : i32 to vector<1x8xi32>
    %590 = arith.cmpi eq, %300, %589 : vector<1x8xi32>
    %591 = vector.shape_cast %588 : vector<1x1xi32> to vector<1x1xi32>
    %592 = vector.broadcast %591 : vector<1x1xi32> to vector<1x8xi32>
    %593 = arith.select %590, %592, %519 : vector<1x8xi1>, vector<1x8xi32>
    %594 = vector.broadcast %588 : vector<1x1xi32> to vector<1x16xi32>
    %595 = arith.cmpi eq, %299, %594 : vector<1x16xi32>
    %596 = arith.extui %595 : vector<1x16xi1> to vector<1x16xi32>
    %597 = arith.sitofp %596 : vector<1x16xi32> to vector<1x16xf32>
    %cst_177 = arith.constant dense<0.000000e+00> : vector<1x32xf32>
    %598 = tpu.matmul %597, %295, %cst_177 {dimension_numbers = #tpu.dot_dimension_numbers<[1], [0], [0], [1], [0, 0, 1, 1], [], []>} : vector<1x16xf32>, vector<16x32xf32>, vector<1x32xf32> -> vector<1x32xf32>
    %cst_178 = arith.constant dense<0.000000e+00> : vector<1x32xf32>
    %599 = tpu.matmul %578, %282, %cst_178 {dimension_numbers = #tpu.dot_dimension_numbers<[1], [0], [0], [1], [0, 0, 1, 1], [], []>} : vector<1x32xf32>, vector<32x32xf32>, vector<1x32xf32> -> vector<1x32xf32>
    %600 = arith.addf %599, %283 : vector<1x32xf32>
    %601 = vector.broadcast %600 : vector<1x32xf32> to vector<8x32xf32>
    %602 = arith.addf %601, %298 : vector<8x32xf32>
    %603 = math.tanh %602 : vector<8x32xf32>
    %cst_179 = arith.constant dense<0.000000e+00> : vector<8x1xf32>
    %604 = tpu.matmul %603, %286, %cst_179 {dimension_numbers = #tpu.dot_dimension_numbers<[1], [0], [0], [1], [0, 0, 1, 1], [], []>} : vector<8x32xf32>, vector<32x1xf32>, vector<8x1xf32> -> vector<8x1xf32>
    %605 = vector.broadcast %287 : vector<1x1xf32> to vector<8x1xf32>
    %606 = arith.addf %604, %605 : vector<8x1xf32>
    %cst_180 = arith.constant dense<0xFF800000> : vector<1xf32>
    %607 = vector.multi_reduction <maximumf>, %606, %cst_180 [0] : vector<8x1xf32> to vector<1xf32>
    %608 = vector.shape_cast %607 : vector<1xf32> to vector<1x1xf32>
    %609 = vector.broadcast %608 : vector<1x1xf32> to vector<8x1xf32>
    %610 = arith.subf %606, %609 : vector<8x1xf32>
    %611 = math.exp %610 : vector<8x1xf32>
    %cst_181 = arith.constant dense<0.000000e+00> : vector<1xf32>
    %612 = vector.multi_reduction <add>, %611, %cst_181 [0] : vector<8x1xf32> to vector<1xf32>
    %613 = vector.shape_cast %612 : vector<1xf32> to vector<1x1xf32>
    %614 = tpu.reciprocal %613 {approx = true} : vector<1x1xf32> -> vector<1x1xf32>
    %615 = vector.broadcast %614 : vector<1x1xf32> to vector<8x1xf32>
    %616 = arith.mulf %611, %615 : vector<8x1xf32>
    %617 = vector.broadcast %616 : vector<8x1xf32> to vector<8x32xf32>
    %618 = arith.mulf %617, %281 : vector<8x32xf32>
    %cst_182 = arith.constant dense<0.000000e+00> : vector<32xf32>
    %619 = vector.multi_reduction <add>, %618, %cst_182 [0] : vector<8x32xf32> to vector<32xf32>
    %620 = vector.shape_cast %619 : vector<32xf32> to vector<1x32xf32>
    %cst_183 = arith.constant dense<0.000000e+00> : vector<1x96xf32>
    %621 = tpu.matmul %598, %288, %cst_183 {dimension_numbers = #tpu.dot_dimension_numbers<[1], [0], [0], [1], [0, 0, 1, 1], [], []>} : vector<1x32xf32>, vector<32x96xf32>, vector<1x96xf32> -> vector<1x96xf32>
    %cst_184 = arith.constant dense<0.000000e+00> : vector<1x96xf32>
    %622 = tpu.matmul %620, %289, %cst_184 {dimension_numbers = #tpu.dot_dimension_numbers<[1], [0], [0], [1], [0, 0, 1, 1], [], []>} : vector<1x32xf32>, vector<32x96xf32>, vector<1x96xf32> -> vector<1x96xf32>
    %623 = arith.addf %621, %622 : vector<1x96xf32>
    %624 = arith.addf %623, %291 : vector<1x96xf32>
    %cst_185 = arith.constant dense<0.000000e+00> : vector<1x96xf32>
    %625 = tpu.matmul %578, %290, %cst_185 {dimension_numbers = #tpu.dot_dimension_numbers<[1], [0], [0], [1], [0, 0, 1, 1], [], []>} : vector<1x32xf32>, vector<32x96xf32>, vector<1x96xf32> -> vector<1x96xf32>
    %626 = vector.extract_strided_slice %624 {offsets = [0, 0], sizes = [1, 32], strides = [1, 1]} : vector<1x96xf32> to vector<1x32xf32>
    %627 = vector.extract_strided_slice %625 {offsets = [0, 0], sizes = [1, 32], strides = [1, 1]} : vector<1x96xf32> to vector<1x32xf32>
    %628 = arith.addf %626, %627 : vector<1x32xf32>
    %629 = arith.negf %628 : vector<1x32xf32>
    %630 = math.exp %629 : vector<1x32xf32>
    %cst_186 = arith.constant 1.000000e+00 : f32
    %631 = vector.broadcast %cst_186 : f32 to vector<1x32xf32>
    %632 = arith.addf %631, %630 : vector<1x32xf32>
    %633 = arith.divf %631, %632 : vector<1x32xf32>
    %634 = vector.extract_strided_slice %624 {offsets = [0, 32], sizes = [1, 32], strides = [1, 1]} : vector<1x96xf32> to vector<1x32xf32>
    %635 = vector.extract_strided_slice %625 {offsets = [0, 32], sizes = [1, 32], strides = [1, 1]} : vector<1x96xf32> to vector<1x32xf32>
    %636 = arith.addf %634, %635 : vector<1x32xf32>
    %637 = arith.negf %636 : vector<1x32xf32>
    %638 = math.exp %637 : vector<1x32xf32>
    %cst_187 = arith.constant 1.000000e+00 : f32
    %639 = vector.broadcast %cst_187 : f32 to vector<1x32xf32>
    %640 = arith.addf %639, %638 : vector<1x32xf32>
    %641 = arith.divf %639, %640 : vector<1x32xf32>
    %642 = vector.extract_strided_slice %624 {offsets = [0, 64], sizes = [1, 32], strides = [1, 1]} : vector<1x96xf32> to vector<1x32xf32>
    %643 = vector.extract_strided_slice %625 {offsets = [0, 64], sizes = [1, 32], strides = [1, 1]} : vector<1x96xf32> to vector<1x32xf32>
    %644 = arith.addf %643, %292 : vector<1x32xf32>
    %645 = arith.mulf %633, %644 : vector<1x32xf32>
    %646 = arith.addf %642, %645 : vector<1x32xf32>
    %647 = math.tanh %646 : vector<1x32xf32>
    %cst_188 = arith.constant 1.000000e+00 : f32
    %648 = vector.broadcast %cst_188 : f32 to vector<1x32xf32>
    %649 = arith.subf %648, %641 : vector<1x32xf32>
    %650 = arith.mulf %649, %647 : vector<1x32xf32>
    %651 = arith.mulf %641, %578 : vector<1x32xf32>
    %652 = arith.addf %650, %651 : vector<1x32xf32>
    %cst_189 = arith.constant dense<0.000000e+00> : vector<1x16xf32>
    %653 = tpu.matmul %652, %293, %cst_189 {dimension_numbers = #tpu.dot_dimension_numbers<[1], [0], [0], [1], [0, 0, 1, 1], [], []>} : vector<1x32xf32>, vector<32x16xf32>, vector<1x16xf32> -> vector<1x16xf32>
    %654 = arith.addf %653, %294 : vector<1x16xf32>
    %cst_190 = arith.constant dense<0xFF800000> : vector<1xf32>
    %655 = vector.multi_reduction <maximumf>, %654, %cst_190 [1] : vector<1x16xf32> to vector<1xf32>
    %656 = vector.shape_cast %655 : vector<1xf32> to vector<1x1xf32>
    %657 = vector.broadcast %656 : vector<1x1xf32> to vector<1x16xf32>
    %658 = arith.cmpf oge, %654, %657 : vector<1x16xf32>
    %c16_i32_191 = arith.constant 16 : i32
    %659 = vector.broadcast %c16_i32_191 : i32 to vector<1x16xi32>
    %660 = arith.select %658, %299, %659 : vector<1x16xi1>, vector<1x16xi32>
    %cst_192 = arith.constant dense<2147483647> : vector<1xi32>
    %661 = vector.multi_reduction <minsi>, %660, %cst_192 [1] : vector<1x16xi32> to vector<1xi32>
    %662 = vector.shape_cast %661 : vector<1xi32> to vector<1x1xi32>
    %c4_i32 = arith.constant 4 : i32
    %663 = vector.broadcast %c4_i32 : i32 to vector<1x8xi32>
    %664 = arith.cmpi eq, %300, %663 : vector<1x8xi32>
    %665 = vector.shape_cast %662 : vector<1x1xi32> to vector<1x1xi32>
    %666 = vector.broadcast %665 : vector<1x1xi32> to vector<1x8xi32>
    %667 = arith.select %664, %666, %593 : vector<1x8xi1>, vector<1x8xi32>
    %668 = vector.broadcast %662 : vector<1x1xi32> to vector<1x16xi32>
    %669 = arith.cmpi eq, %299, %668 : vector<1x16xi32>
    %670 = arith.extui %669 : vector<1x16xi1> to vector<1x16xi32>
    %671 = arith.sitofp %670 : vector<1x16xi32> to vector<1x16xf32>
    %cst_193 = arith.constant dense<0.000000e+00> : vector<1x32xf32>
    %672 = tpu.matmul %671, %295, %cst_193 {dimension_numbers = #tpu.dot_dimension_numbers<[1], [0], [0], [1], [0, 0, 1, 1], [], []>} : vector<1x16xf32>, vector<16x32xf32>, vector<1x32xf32> -> vector<1x32xf32>
    %cst_194 = arith.constant dense<0.000000e+00> : vector<1x32xf32>
    %673 = tpu.matmul %652, %282, %cst_194 {dimension_numbers = #tpu.dot_dimension_numbers<[1], [0], [0], [1], [0, 0, 1, 1], [], []>} : vector<1x32xf32>, vector<32x32xf32>, vector<1x32xf32> -> vector<1x32xf32>
    %674 = arith.addf %673, %283 : vector<1x32xf32>
    %675 = vector.broadcast %674 : vector<1x32xf32> to vector<8x32xf32>
    %676 = arith.addf %675, %298 : vector<8x32xf32>
    %677 = math.tanh %676 : vector<8x32xf32>
    %cst_195 = arith.constant dense<0.000000e+00> : vector<8x1xf32>
    %678 = tpu.matmul %677, %286, %cst_195 {dimension_numbers = #tpu.dot_dimension_numbers<[1], [0], [0], [1], [0, 0, 1, 1], [], []>} : vector<8x32xf32>, vector<32x1xf32>, vector<8x1xf32> -> vector<8x1xf32>
    %679 = vector.broadcast %287 : vector<1x1xf32> to vector<8x1xf32>
    %680 = arith.addf %678, %679 : vector<8x1xf32>
    %cst_196 = arith.constant dense<0xFF800000> : vector<1xf32>
    %681 = vector.multi_reduction <maximumf>, %680, %cst_196 [0] : vector<8x1xf32> to vector<1xf32>
    %682 = vector.shape_cast %681 : vector<1xf32> to vector<1x1xf32>
    %683 = vector.broadcast %682 : vector<1x1xf32> to vector<8x1xf32>
    %684 = arith.subf %680, %683 : vector<8x1xf32>
    %685 = math.exp %684 : vector<8x1xf32>
    %cst_197 = arith.constant dense<0.000000e+00> : vector<1xf32>
    %686 = vector.multi_reduction <add>, %685, %cst_197 [0] : vector<8x1xf32> to vector<1xf32>
    %687 = vector.shape_cast %686 : vector<1xf32> to vector<1x1xf32>
    %688 = tpu.reciprocal %687 {approx = true} : vector<1x1xf32> -> vector<1x1xf32>
    %689 = vector.broadcast %688 : vector<1x1xf32> to vector<8x1xf32>
    %690 = arith.mulf %685, %689 : vector<8x1xf32>
    %691 = vector.broadcast %690 : vector<8x1xf32> to vector<8x32xf32>
    %692 = arith.mulf %691, %281 : vector<8x32xf32>
    %cst_198 = arith.constant dense<0.000000e+00> : vector<32xf32>
    %693 = vector.multi_reduction <add>, %692, %cst_198 [0] : vector<8x32xf32> to vector<32xf32>
    %694 = vector.shape_cast %693 : vector<32xf32> to vector<1x32xf32>
    %cst_199 = arith.constant dense<0.000000e+00> : vector<1x96xf32>
    %695 = tpu.matmul %672, %288, %cst_199 {dimension_numbers = #tpu.dot_dimension_numbers<[1], [0], [0], [1], [0, 0, 1, 1], [], []>} : vector<1x32xf32>, vector<32x96xf32>, vector<1x96xf32> -> vector<1x96xf32>
    %cst_200 = arith.constant dense<0.000000e+00> : vector<1x96xf32>
    %696 = tpu.matmul %694, %289, %cst_200 {dimension_numbers = #tpu.dot_dimension_numbers<[1], [0], [0], [1], [0, 0, 1, 1], [], []>} : vector<1x32xf32>, vector<32x96xf32>, vector<1x96xf32> -> vector<1x96xf32>
    %697 = arith.addf %695, %696 : vector<1x96xf32>
    %698 = arith.addf %697, %291 : vector<1x96xf32>
    %cst_201 = arith.constant dense<0.000000e+00> : vector<1x96xf32>
    %699 = tpu.matmul %652, %290, %cst_201 {dimension_numbers = #tpu.dot_dimension_numbers<[1], [0], [0], [1], [0, 0, 1, 1], [], []>} : vector<1x32xf32>, vector<32x96xf32>, vector<1x96xf32> -> vector<1x96xf32>
    %700 = vector.extract_strided_slice %698 {offsets = [0, 0], sizes = [1, 32], strides = [1, 1]} : vector<1x96xf32> to vector<1x32xf32>
    %701 = vector.extract_strided_slice %699 {offsets = [0, 0], sizes = [1, 32], strides = [1, 1]} : vector<1x96xf32> to vector<1x32xf32>
    %702 = arith.addf %700, %701 : vector<1x32xf32>
    %703 = arith.negf %702 : vector<1x32xf32>
    %704 = math.exp %703 : vector<1x32xf32>
    %cst_202 = arith.constant 1.000000e+00 : f32
    %705 = vector.broadcast %cst_202 : f32 to vector<1x32xf32>
    %706 = arith.addf %705, %704 : vector<1x32xf32>
    %707 = arith.divf %705, %706 : vector<1x32xf32>
    %708 = vector.extract_strided_slice %698 {offsets = [0, 32], sizes = [1, 32], strides = [1, 1]} : vector<1x96xf32> to vector<1x32xf32>
    %709 = vector.extract_strided_slice %699 {offsets = [0, 32], sizes = [1, 32], strides = [1, 1]} : vector<1x96xf32> to vector<1x32xf32>
    %710 = arith.addf %708, %709 : vector<1x32xf32>
    %711 = arith.negf %710 : vector<1x32xf32>
    %712 = math.exp %711 : vector<1x32xf32>
    %cst_203 = arith.constant 1.000000e+00 : f32
    %713 = vector.broadcast %cst_203 : f32 to vector<1x32xf32>
    %714 = arith.addf %713, %712 : vector<1x32xf32>
    %715 = arith.divf %713, %714 : vector<1x32xf32>
    %716 = vector.extract_strided_slice %698 {offsets = [0, 64], sizes = [1, 32], strides = [1, 1]} : vector<1x96xf32> to vector<1x32xf32>
    %717 = vector.extract_strided_slice %699 {offsets = [0, 64], sizes = [1, 32], strides = [1, 1]} : vector<1x96xf32> to vector<1x32xf32>
    %718 = arith.addf %717, %292 : vector<1x32xf32>
    %719 = arith.mulf %707, %718 : vector<1x32xf32>
    %720 = arith.addf %716, %719 : vector<1x32xf32>
    %721 = math.tanh %720 : vector<1x32xf32>
    %cst_204 = arith.constant 1.000000e+00 : f32
    %722 = vector.broadcast %cst_204 : f32 to vector<1x32xf32>
    %723 = arith.subf %722, %715 : vector<1x32xf32>
    %724 = arith.mulf %723, %721 : vector<1x32xf32>
    %725 = arith.mulf %715, %652 : vector<1x32xf32>
    %726 = arith.addf %724, %725 : vector<1x32xf32>
    %cst_205 = arith.constant dense<0.000000e+00> : vector<1x16xf32>
    %727 = tpu.matmul %726, %293, %cst_205 {dimension_numbers = #tpu.dot_dimension_numbers<[1], [0], [0], [1], [0, 0, 1, 1], [], []>} : vector<1x32xf32>, vector<32x16xf32>, vector<1x16xf32> -> vector<1x16xf32>
    %728 = arith.addf %727, %294 : vector<1x16xf32>
    %cst_206 = arith.constant dense<0xFF800000> : vector<1xf32>
    %729 = vector.multi_reduction <maximumf>, %728, %cst_206 [1] : vector<1x16xf32> to vector<1xf32>
    %730 = vector.shape_cast %729 : vector<1xf32> to vector<1x1xf32>
    %731 = vector.broadcast %730 : vector<1x1xf32> to vector<1x16xf32>
    %732 = arith.cmpf oge, %728, %731 : vector<1x16xf32>
    %c16_i32_207 = arith.constant 16 : i32
    %733 = vector.broadcast %c16_i32_207 : i32 to vector<1x16xi32>
    %734 = arith.select %732, %299, %733 : vector<1x16xi1>, vector<1x16xi32>
    %cst_208 = arith.constant dense<2147483647> : vector<1xi32>
    %735 = vector.multi_reduction <minsi>, %734, %cst_208 [1] : vector<1x16xi32> to vector<1xi32>
    %736 = vector.shape_cast %735 : vector<1xi32> to vector<1x1xi32>
    %c5_i32 = arith.constant 5 : i32
    %737 = vector.broadcast %c5_i32 : i32 to vector<1x8xi32>
    %738 = arith.cmpi eq, %300, %737 : vector<1x8xi32>
    %739 = vector.shape_cast %736 : vector<1x1xi32> to vector<1x1xi32>
    %740 = vector.broadcast %739 : vector<1x1xi32> to vector<1x8xi32>
    %741 = arith.select %738, %740, %667 : vector<1x8xi1>, vector<1x8xi32>
    %742 = vector.broadcast %736 : vector<1x1xi32> to vector<1x16xi32>
    %743 = arith.cmpi eq, %299, %742 : vector<1x16xi32>
    %744 = arith.extui %743 : vector<1x16xi1> to vector<1x16xi32>
    %745 = arith.sitofp %744 : vector<1x16xi32> to vector<1x16xf32>
    %cst_209 = arith.constant dense<0.000000e+00> : vector<1x32xf32>
    %746 = tpu.matmul %745, %295, %cst_209 {dimension_numbers = #tpu.dot_dimension_numbers<[1], [0], [0], [1], [0, 0, 1, 1], [], []>} : vector<1x16xf32>, vector<16x32xf32>, vector<1x32xf32> -> vector<1x32xf32>
    %cst_210 = arith.constant dense<0.000000e+00> : vector<1x32xf32>
    %747 = tpu.matmul %726, %282, %cst_210 {dimension_numbers = #tpu.dot_dimension_numbers<[1], [0], [0], [1], [0, 0, 1, 1], [], []>} : vector<1x32xf32>, vector<32x32xf32>, vector<1x32xf32> -> vector<1x32xf32>
    %748 = arith.addf %747, %283 : vector<1x32xf32>
    %749 = vector.broadcast %748 : vector<1x32xf32> to vector<8x32xf32>
    %750 = arith.addf %749, %298 : vector<8x32xf32>
    %751 = math.tanh %750 : vector<8x32xf32>
    %cst_211 = arith.constant dense<0.000000e+00> : vector<8x1xf32>
    %752 = tpu.matmul %751, %286, %cst_211 {dimension_numbers = #tpu.dot_dimension_numbers<[1], [0], [0], [1], [0, 0, 1, 1], [], []>} : vector<8x32xf32>, vector<32x1xf32>, vector<8x1xf32> -> vector<8x1xf32>
    %753 = vector.broadcast %287 : vector<1x1xf32> to vector<8x1xf32>
    %754 = arith.addf %752, %753 : vector<8x1xf32>
    %cst_212 = arith.constant dense<0xFF800000> : vector<1xf32>
    %755 = vector.multi_reduction <maximumf>, %754, %cst_212 [0] : vector<8x1xf32> to vector<1xf32>
    %756 = vector.shape_cast %755 : vector<1xf32> to vector<1x1xf32>
    %757 = vector.broadcast %756 : vector<1x1xf32> to vector<8x1xf32>
    %758 = arith.subf %754, %757 : vector<8x1xf32>
    %759 = math.exp %758 : vector<8x1xf32>
    %cst_213 = arith.constant dense<0.000000e+00> : vector<1xf32>
    %760 = vector.multi_reduction <add>, %759, %cst_213 [0] : vector<8x1xf32> to vector<1xf32>
    %761 = vector.shape_cast %760 : vector<1xf32> to vector<1x1xf32>
    %762 = tpu.reciprocal %761 {approx = true} : vector<1x1xf32> -> vector<1x1xf32>
    %763 = vector.broadcast %762 : vector<1x1xf32> to vector<8x1xf32>
    %764 = arith.mulf %759, %763 : vector<8x1xf32>
    %765 = vector.broadcast %764 : vector<8x1xf32> to vector<8x32xf32>
    %766 = arith.mulf %765, %281 : vector<8x32xf32>
    %cst_214 = arith.constant dense<0.000000e+00> : vector<32xf32>
    %767 = vector.multi_reduction <add>, %766, %cst_214 [0] : vector<8x32xf32> to vector<32xf32>
    %768 = vector.shape_cast %767 : vector<32xf32> to vector<1x32xf32>
    %cst_215 = arith.constant dense<0.000000e+00> : vector<1x96xf32>
    %769 = tpu.matmul %746, %288, %cst_215 {dimension_numbers = #tpu.dot_dimension_numbers<[1], [0], [0], [1], [0, 0, 1, 1], [], []>} : vector<1x32xf32>, vector<32x96xf32>, vector<1x96xf32> -> vector<1x96xf32>
    %cst_216 = arith.constant dense<0.000000e+00> : vector<1x96xf32>
    %770 = tpu.matmul %768, %289, %cst_216 {dimension_numbers = #tpu.dot_dimension_numbers<[1], [0], [0], [1], [0, 0, 1, 1], [], []>} : vector<1x32xf32>, vector<32x96xf32>, vector<1x96xf32> -> vector<1x96xf32>
    %771 = arith.addf %769, %770 : vector<1x96xf32>
    %772 = arith.addf %771, %291 : vector<1x96xf32>
    %cst_217 = arith.constant dense<0.000000e+00> : vector<1x96xf32>
    %773 = tpu.matmul %726, %290, %cst_217 {dimension_numbers = #tpu.dot_dimension_numbers<[1], [0], [0], [1], [0, 0, 1, 1], [], []>} : vector<1x32xf32>, vector<32x96xf32>, vector<1x96xf32> -> vector<1x96xf32>
    %774 = vector.extract_strided_slice %772 {offsets = [0, 0], sizes = [1, 32], strides = [1, 1]} : vector<1x96xf32> to vector<1x32xf32>
    %775 = vector.extract_strided_slice %773 {offsets = [0, 0], sizes = [1, 32], strides = [1, 1]} : vector<1x96xf32> to vector<1x32xf32>
    %776 = arith.addf %774, %775 : vector<1x32xf32>
    %777 = arith.negf %776 : vector<1x32xf32>
    %778 = math.exp %777 : vector<1x32xf32>
    %cst_218 = arith.constant 1.000000e+00 : f32
    %779 = vector.broadcast %cst_218 : f32 to vector<1x32xf32>
    %780 = arith.addf %779, %778 : vector<1x32xf32>
    %781 = arith.divf %779, %780 : vector<1x32xf32>
    %782 = vector.extract_strided_slice %772 {offsets = [0, 32], sizes = [1, 32], strides = [1, 1]} : vector<1x96xf32> to vector<1x32xf32>
    %783 = vector.extract_strided_slice %773 {offsets = [0, 32], sizes = [1, 32], strides = [1, 1]} : vector<1x96xf32> to vector<1x32xf32>
    %784 = arith.addf %782, %783 : vector<1x32xf32>
    %785 = arith.negf %784 : vector<1x32xf32>
    %786 = math.exp %785 : vector<1x32xf32>
    %cst_219 = arith.constant 1.000000e+00 : f32
    %787 = vector.broadcast %cst_219 : f32 to vector<1x32xf32>
    %788 = arith.addf %787, %786 : vector<1x32xf32>
    %789 = arith.divf %787, %788 : vector<1x32xf32>
    %790 = vector.extract_strided_slice %772 {offsets = [0, 64], sizes = [1, 32], strides = [1, 1]} : vector<1x96xf32> to vector<1x32xf32>
    %791 = vector.extract_strided_slice %773 {offsets = [0, 64], sizes = [1, 32], strides = [1, 1]} : vector<1x96xf32> to vector<1x32xf32>
    %792 = arith.addf %791, %292 : vector<1x32xf32>
    %793 = arith.mulf %781, %792 : vector<1x32xf32>
    %794 = arith.addf %790, %793 : vector<1x32xf32>
    %795 = math.tanh %794 : vector<1x32xf32>
    %cst_220 = arith.constant 1.000000e+00 : f32
    %796 = vector.broadcast %cst_220 : f32 to vector<1x32xf32>
    %797 = arith.subf %796, %789 : vector<1x32xf32>
    %798 = arith.mulf %797, %795 : vector<1x32xf32>
    %799 = arith.mulf %789, %726 : vector<1x32xf32>
    %800 = arith.addf %798, %799 : vector<1x32xf32>
    %cst_221 = arith.constant dense<0.000000e+00> : vector<1x16xf32>
    %801 = tpu.matmul %800, %293, %cst_221 {dimension_numbers = #tpu.dot_dimension_numbers<[1], [0], [0], [1], [0, 0, 1, 1], [], []>} : vector<1x32xf32>, vector<32x16xf32>, vector<1x16xf32> -> vector<1x16xf32>
    %802 = arith.addf %801, %294 : vector<1x16xf32>
    %cst_222 = arith.constant dense<0xFF800000> : vector<1xf32>
    %803 = vector.multi_reduction <maximumf>, %802, %cst_222 [1] : vector<1x16xf32> to vector<1xf32>
    %804 = vector.shape_cast %803 : vector<1xf32> to vector<1x1xf32>
    %805 = vector.broadcast %804 : vector<1x1xf32> to vector<1x16xf32>
    %806 = arith.cmpf oge, %802, %805 : vector<1x16xf32>
    %c16_i32_223 = arith.constant 16 : i32
    %807 = vector.broadcast %c16_i32_223 : i32 to vector<1x16xi32>
    %808 = arith.select %806, %299, %807 : vector<1x16xi1>, vector<1x16xi32>
    %cst_224 = arith.constant dense<2147483647> : vector<1xi32>
    %809 = vector.multi_reduction <minsi>, %808, %cst_224 [1] : vector<1x16xi32> to vector<1xi32>
    %810 = vector.shape_cast %809 : vector<1xi32> to vector<1x1xi32>
    %c6_i32 = arith.constant 6 : i32
    %811 = vector.broadcast %c6_i32 : i32 to vector<1x8xi32>
    %812 = arith.cmpi eq, %300, %811 : vector<1x8xi32>
    %813 = vector.shape_cast %810 : vector<1x1xi32> to vector<1x1xi32>
    %814 = vector.broadcast %813 : vector<1x1xi32> to vector<1x8xi32>
    %815 = arith.select %812, %814, %741 : vector<1x8xi1>, vector<1x8xi32>
    %816 = vector.broadcast %810 : vector<1x1xi32> to vector<1x16xi32>
    %817 = arith.cmpi eq, %299, %816 : vector<1x16xi32>
    %818 = arith.extui %817 : vector<1x16xi1> to vector<1x16xi32>
    %819 = arith.sitofp %818 : vector<1x16xi32> to vector<1x16xf32>
    %cst_225 = arith.constant dense<0.000000e+00> : vector<1x32xf32>
    %820 = tpu.matmul %819, %295, %cst_225 {dimension_numbers = #tpu.dot_dimension_numbers<[1], [0], [0], [1], [0, 0, 1, 1], [], []>} : vector<1x16xf32>, vector<16x32xf32>, vector<1x32xf32> -> vector<1x32xf32>
    %cst_226 = arith.constant dense<0.000000e+00> : vector<1x32xf32>
    %821 = tpu.matmul %800, %282, %cst_226 {dimension_numbers = #tpu.dot_dimension_numbers<[1], [0], [0], [1], [0, 0, 1, 1], [], []>} : vector<1x32xf32>, vector<32x32xf32>, vector<1x32xf32> -> vector<1x32xf32>
    %822 = arith.addf %821, %283 : vector<1x32xf32>
    %823 = vector.broadcast %822 : vector<1x32xf32> to vector<8x32xf32>
    %824 = arith.addf %823, %298 : vector<8x32xf32>
    %825 = math.tanh %824 : vector<8x32xf32>
    %cst_227 = arith.constant dense<0.000000e+00> : vector<8x1xf32>
    %826 = tpu.matmul %825, %286, %cst_227 {dimension_numbers = #tpu.dot_dimension_numbers<[1], [0], [0], [1], [0, 0, 1, 1], [], []>} : vector<8x32xf32>, vector<32x1xf32>, vector<8x1xf32> -> vector<8x1xf32>
    %827 = vector.broadcast %287 : vector<1x1xf32> to vector<8x1xf32>
    %828 = arith.addf %826, %827 : vector<8x1xf32>
    %cst_228 = arith.constant dense<0xFF800000> : vector<1xf32>
    %829 = vector.multi_reduction <maximumf>, %828, %cst_228 [0] : vector<8x1xf32> to vector<1xf32>
    %830 = vector.shape_cast %829 : vector<1xf32> to vector<1x1xf32>
    %831 = vector.broadcast %830 : vector<1x1xf32> to vector<8x1xf32>
    %832 = arith.subf %828, %831 : vector<8x1xf32>
    %833 = math.exp %832 : vector<8x1xf32>
    %cst_229 = arith.constant dense<0.000000e+00> : vector<1xf32>
    %834 = vector.multi_reduction <add>, %833, %cst_229 [0] : vector<8x1xf32> to vector<1xf32>
    %835 = vector.shape_cast %834 : vector<1xf32> to vector<1x1xf32>
    %836 = tpu.reciprocal %835 {approx = true} : vector<1x1xf32> -> vector<1x1xf32>
    %837 = vector.broadcast %836 : vector<1x1xf32> to vector<8x1xf32>
    %838 = arith.mulf %833, %837 : vector<8x1xf32>
    %839 = vector.broadcast %838 : vector<8x1xf32> to vector<8x32xf32>
    %840 = arith.mulf %839, %281 : vector<8x32xf32>
    %cst_230 = arith.constant dense<0.000000e+00> : vector<32xf32>
    %841 = vector.multi_reduction <add>, %840, %cst_230 [0] : vector<8x32xf32> to vector<32xf32>
    %842 = vector.shape_cast %841 : vector<32xf32> to vector<1x32xf32>
    %cst_231 = arith.constant dense<0.000000e+00> : vector<1x96xf32>
    %843 = tpu.matmul %820, %288, %cst_231 {dimension_numbers = #tpu.dot_dimension_numbers<[1], [0], [0], [1], [0, 0, 1, 1], [], []>} : vector<1x32xf32>, vector<32x96xf32>, vector<1x96xf32> -> vector<1x96xf32>
    %cst_232 = arith.constant dense<0.000000e+00> : vector<1x96xf32>
    %844 = tpu.matmul %842, %289, %cst_232 {dimension_numbers = #tpu.dot_dimension_numbers<[1], [0], [0], [1], [0, 0, 1, 1], [], []>} : vector<1x32xf32>, vector<32x96xf32>, vector<1x96xf32> -> vector<1x96xf32>
    %845 = arith.addf %843, %844 : vector<1x96xf32>
    %846 = arith.addf %845, %291 : vector<1x96xf32>
    %cst_233 = arith.constant dense<0.000000e+00> : vector<1x96xf32>
    %847 = tpu.matmul %800, %290, %cst_233 {dimension_numbers = #tpu.dot_dimension_numbers<[1], [0], [0], [1], [0, 0, 1, 1], [], []>} : vector<1x32xf32>, vector<32x96xf32>, vector<1x96xf32> -> vector<1x96xf32>
    %848 = vector.extract_strided_slice %846 {offsets = [0, 0], sizes = [1, 32], strides = [1, 1]} : vector<1x96xf32> to vector<1x32xf32>
    %849 = vector.extract_strided_slice %847 {offsets = [0, 0], sizes = [1, 32], strides = [1, 1]} : vector<1x96xf32> to vector<1x32xf32>
    %850 = arith.addf %848, %849 : vector<1x32xf32>
    %851 = arith.negf %850 : vector<1x32xf32>
    %852 = math.exp %851 : vector<1x32xf32>
    %cst_234 = arith.constant 1.000000e+00 : f32
    %853 = vector.broadcast %cst_234 : f32 to vector<1x32xf32>
    %854 = arith.addf %853, %852 : vector<1x32xf32>
    %855 = arith.divf %853, %854 : vector<1x32xf32>
    %856 = vector.extract_strided_slice %846 {offsets = [0, 32], sizes = [1, 32], strides = [1, 1]} : vector<1x96xf32> to vector<1x32xf32>
    %857 = vector.extract_strided_slice %847 {offsets = [0, 32], sizes = [1, 32], strides = [1, 1]} : vector<1x96xf32> to vector<1x32xf32>
    %858 = arith.addf %856, %857 : vector<1x32xf32>
    %859 = arith.negf %858 : vector<1x32xf32>
    %860 = math.exp %859 : vector<1x32xf32>
    %cst_235 = arith.constant 1.000000e+00 : f32
    %861 = vector.broadcast %cst_235 : f32 to vector<1x32xf32>
    %862 = arith.addf %861, %860 : vector<1x32xf32>
    %863 = arith.divf %861, %862 : vector<1x32xf32>
    %864 = vector.extract_strided_slice %846 {offsets = [0, 64], sizes = [1, 32], strides = [1, 1]} : vector<1x96xf32> to vector<1x32xf32>
    %865 = vector.extract_strided_slice %847 {offsets = [0, 64], sizes = [1, 32], strides = [1, 1]} : vector<1x96xf32> to vector<1x32xf32>
    %866 = arith.addf %865, %292 : vector<1x32xf32>
    %867 = arith.mulf %855, %866 : vector<1x32xf32>
    %868 = arith.addf %864, %867 : vector<1x32xf32>
    %869 = math.tanh %868 : vector<1x32xf32>
    %cst_236 = arith.constant 1.000000e+00 : f32
    %870 = vector.broadcast %cst_236 : f32 to vector<1x32xf32>
    %871 = arith.subf %870, %863 : vector<1x32xf32>
    %872 = arith.mulf %871, %869 : vector<1x32xf32>
    %873 = arith.mulf %863, %800 : vector<1x32xf32>
    %874 = arith.addf %872, %873 : vector<1x32xf32>
    %cst_237 = arith.constant dense<0.000000e+00> : vector<1x16xf32>
    %875 = tpu.matmul %874, %293, %cst_237 {dimension_numbers = #tpu.dot_dimension_numbers<[1], [0], [0], [1], [0, 0, 1, 1], [], []>} : vector<1x32xf32>, vector<32x16xf32>, vector<1x16xf32> -> vector<1x16xf32>
    %876 = arith.addf %875, %294 : vector<1x16xf32>
    %cst_238 = arith.constant dense<0xFF800000> : vector<1xf32>
    %877 = vector.multi_reduction <maximumf>, %876, %cst_238 [1] : vector<1x16xf32> to vector<1xf32>
    %878 = vector.shape_cast %877 : vector<1xf32> to vector<1x1xf32>
    %879 = vector.broadcast %878 : vector<1x1xf32> to vector<1x16xf32>
    %880 = arith.cmpf oge, %876, %879 : vector<1x16xf32>
    %c16_i32_239 = arith.constant 16 : i32
    %881 = vector.broadcast %c16_i32_239 : i32 to vector<1x16xi32>
    %882 = arith.select %880, %299, %881 : vector<1x16xi1>, vector<1x16xi32>
    %cst_240 = arith.constant dense<2147483647> : vector<1xi32>
    %883 = vector.multi_reduction <minsi>, %882, %cst_240 [1] : vector<1x16xi32> to vector<1xi32>
    %884 = vector.shape_cast %883 : vector<1xi32> to vector<1x1xi32>
    %c7_i32 = arith.constant 7 : i32
    %885 = vector.broadcast %c7_i32 : i32 to vector<1x8xi32>
    %886 = arith.cmpi eq, %300, %885 : vector<1x8xi32>
    %887 = vector.shape_cast %884 : vector<1x1xi32> to vector<1x1xi32>
    %888 = vector.broadcast %887 : vector<1x1xi32> to vector<1x8xi32>
    %889 = arith.select %886, %888, %815 : vector<1x8xi1>, vector<1x8xi32>
    %c0_241 = arith.constant 0 : index
    %c0_242 = arith.constant 0 : index
    %890 = vector.load %arg20[%c0_241, %c0_242] : memref<1x8xi32, #tpu.memory_space<vmem>>, vector<1x8xi32>
    tpu.vector_store %arg20[%c0_241, %c0_242], %889 {strides = array<i32>} : memref<1x8xi32, #tpu.memory_space<vmem>>, vector<1x8xi32>,
    return
  }
}

</mosaic_0001>

<bundles_post_ra>
// kernel: model_forward.1
= control target key start
LH: loop header
LB: loop body
LE: loop exit
PB: predicated region body
PF: predicated region fallthrough
CT: control target
= control target key end

     0   :  { %s9357_s0 = inlined_call_operand.vmem [shape: s32[8], index: 0, kind: input, shape index: {}]   ;;  %s9358_s1 = inlined_call_operand.hbm [shape: f32[16,32], index: 1, kind: input, shape index: {}]   ;;  %s9359_s2 = inlined_call_operand.vmem [shape: f32[32,96], index: 2, kind: input, shape index: {}]   ;;  %s9360_s3 = inlined_call_operand.vmem [shape: f32[32,96], index: 3, kind: input, shape index: {}]   ;;  %s9361_s4 = inlined_call_operand.hbm [shape: f32[1,96], index: 4, kind: input, shape index: {}]   ;;  %s9362_s5 = inlined_call_operand.hbm [shape: f32[1,32], index: 5, kind: input, shape index: {}]   ;;  %s9363_s6 = inlined_call_operand.hbm [shape: f32[16,32], index: 6, kind: input, shape index: {}]   ;;  %s9364_s7 = inlined_call_operand.vmem [shape: f32[32,32], index: 7, kind: input, shape index: {}]   ;;  %s9365_s8 = inlined_call_operand.hbm [shape: f32[1,32], index: 8, kind: input, shape index: {}]   ;;  %s9366_s9 = inlined_call_operand.vmem [shape: f32[32,32], index: 9, kind: input, shape index: {}]   ;;  %s9367_s10 = inlined_call_operand.hbm [shape: f32[1,32], index: 10, kind: input, shape index: {}]   ;;  %s9368_s11 = inlined_call_operand.vmem [shape: f32[32,1], index: 11, kind: input, shape index: {}]   ;;  %s9369_s12 = inlined_call_operand.<no memory space> [shape: f32[1,1], index: 12, kind: input, shape index: {}]   ;;  %s9370_s13 = inlined_call_operand.hbm [shape: f32[32,96], index: 13, kind: input, shape index: {}]   ;;  %s9371_s14 = inlined_call_operand.hbm [shape: f32[32,96], index: 14, kind: input, shape index: {}]   ;;  %s9372_s15 = inlined_call_operand.hbm [shape: f32[32,96], index: 15, kind: input, shape index: {}]   ;;  %s9373_s16 = inlined_call_operand.hbm [shape: f32[1,96], index: 16, kind: input, shape index: {}]   ;;  %s9374_s17 = inlined_call_operand.hbm [shape: f32[1,32], index: 17, kind: input, shape index: {}]   ;;  %s9375_s18 = inlined_call_operand.vmem [shape: f32[32,16], index: 18, kind: input, shape index: {}]   ;;  %s9376_s19 = inlined_call_operand.hbm [shape: f32[1,16], index: 19, kind: input, shape index: {}]   ;;  %s9377_s20 = inlined_call_operand.hbm [shape: s32[1,8], index: 20, kind: output, shape index: {}]  }
   0x1   :  { %9382 = sst [smem:[#allocation37_spill]] %s9357_s0  ;;  %v25_v0 = vstv %s9369_s12 }
   0x2   :  { %9383 = sst [smem:[#allocation38_spill]] %s9358_s1  ;;  %26 = vst [vmem:[#allocation4] sm:$0x1] %v25_v0 }
   0x3   :  { %9384 = sst [smem:[#allocation39_spill]] %s9359_s2 }
   0x4   :  { %9385 = sst [smem:[#allocation40_spill]] %s9360_s3 }
   0x5   :  { %9386 = sst [smem:[#allocation41_spill]] %s9361_s4 }
   0x6   :  { %27 = vsyncpa [#allocation8], 0 }
   0x7   :  { %28 = vsyncpa [#allocation6], 0 }
   0x8   :  { %29 = vsyncpa [#allocation11], 0 }
   0x9   :  { %30 = vsyncpa [#allocation14], 0 }
   0xa   :  { %31 = vsyncpa [#allocation17], 0 }
   0xb   :  { %32 = vsyncpa [#allocation20], 0 }
   0xc   :  { %33 = vsyncpa [#allocation23], 0 }
   0xd   :  { %34 = vsyncpa [#allocation26], 0 }
   0xe   :  { %35 = vsyncpa [#allocation7], 0  ;;  %s8099_s23 = smov [#allocation10]   ;;  %s9387_s3 = sld [smem:[#allocation41_spill]] }
   0xf   :  { %s68_s24 = sshll.u32 %s8099_s23, 4  ;;  %s69_s24 = int_to_ptr.vmem [resolvable:$true] %s68_s24 }
  0x14   :  { %s7783_s26 = scalar_lea.hbm %s9387_s3, 16 }
  0x15   :  { %p7784_p0 = scmp.ne.s32.totalorder %s9387_s3, %s7783_s26  ;;  %p7787_p1 = scmp.lt.u32.totalorder %s7783_s26, %s9387_s3 }
  0x17   :  { %p7789_p2 = pnand %p7787_p1, %p7784_p0 }
  0x19   :  { %7792 = shalt.err (!%p7789_p2)
}
  0x1a   :  { %s7793_s29 = scalar_lea.vmem %s69_s24, 16  ;;  %s7797_s30 = scalar_lea.vmem %s69_s24, 32 }
  0x1b   :  { %p7794_p3 = scmp.ne.s32.totalorder %s69_s24, %s7793_s29  ;;  %p7798_p4 = scmp.lt.s32.totalorder %s69_s24, %s69_s24 }
  0x1c   :  { %p7799_p5 = scmp.lt.s32.totalorder %s7797_s30, %s7793_s29 }
  0x1e   :  { %p7800_p6 = por %p7799_p5, %p7798_p4 }
  0x20   :  { %p7801_p7 = pnand %p7800_p6, %p7794_p3 }
  0x22   :  { %7804 = shalt.err (!%p7801_p7)
}
  0x23   :  { %71 = dma.hbm_to_vmem [thread:$0]  %s9387_s3, 16, %s69_s24, [#allocation11]  }
  0x24   :  { %s8100_s1 = smov [#allocation13]   ;;  %s8101_s23 = smov [#allocation16]  }
  0x25   :  { %s87_s22 = sshll.u32 %s8100_s1, 4  ;;  %s114_s2 = sshll.u32 %s8101_s23, 4  ;;  %s88_s22 = int_to_ptr.vmem [resolvable:$true] %s87_s22  ;;  %s115_s2 = int_to_ptr.vmem [resolvable:$true] %s114_s2 }
  0x26   :  { %s7805_s27 = scalar_lea.hbm %s9363_s6, 256 }
  0x27   :  { %p7806_p8 = scmp.ne.s32.totalorder %s9363_s6, %s7805_s27  ;;  %p7809_p9 = scmp.lt.u32.totalorder %s7805_s27, %s9363_s6 }
  0x29   :  { %p7811_p10 = pnand %p7809_p9, %p7806_p8 }
  0x2b   :  { %7814 = shalt.err (!%p7811_p10)
}
  0x2c   :  { %s7815_s24 = scalar_lea.vmem %s88_s22, 256  ;;  %p7820_p12 = scmp.lt.s32.totalorder %s88_s22, %s88_s22 }
  0x2d   :  { %p7816_p11 = scmp.ne.s32.totalorder %s88_s22, %s7815_s24  ;;  %p7821_p13 = scmp.lt.s32.totalorder %s7815_s24, %s7815_s24 }
  0x2f   :  { %p7822_p0 = por %p7821_p13, %p7820_p12 }
  0x31   :  { %p7823_p1 = pnand %p7822_p0, %p7816_p11 }
  0x33   :  { %7826 = shalt.err (!%p7823_p1)
}
  0x34   :  { %s8102_s3 = smov 128   ;;  %s8103_s30 = smov 8  }
  0x35   :  { %93 = dma.hbm_to_vmem [thread:$0]  %s9363_s6, 256, %s88_s22, [#allocation14], %s8102_s3, %s8102_s3, %s8103_s30  }
  0x36   :  { %s7827_s25 = scalar_lea.hbm %s9367_s10, 16 }
  0x37   :  { %p7828_p2 = scmp.ne.s32.totalorder %s9367_s10, %s7827_s25  ;;  %p7831_p3 = scmp.lt.u32.totalorder %s7827_s25, %s9367_s10 }
  0x39   :  { %p7833_p4 = pnand %p7831_p3, %p7828_p2 }
  0x3b   :  { %7836 = shalt.err (!%p7833_p4)
}
  0x3c   :  { %s7837_s4 = scalar_lea.vmem %s115_s2, 16  ;;  %s7841_s29 = scalar_lea.vmem %s115_s2, 32 }
  0x3d   :  { %p7838_p5 = scmp.ne.s32.totalorder %s115_s2, %s7837_s4  ;;  %p7842_p6 = scmp.lt.s32.totalorder %s115_s2, %s115_s2 }
  0x3e   :  { %p7843_p7 = scmp.lt.s32.totalorder %s7841_s29, %s7837_s4 }
  0x40   :  { %p7844_p8 = por %p7843_p7, %p7842_p6 }
  0x42   :  { %p7845_p9 = pnand %p7844_p8, %p7838_p5 }
  0x44   :  { %7848 = shalt.err (!%p7845_p9)
}
  0x45   :  { %117 = dma.hbm_to_vmem [thread:$0]  %s9367_s10, 16, %s115_s2, [#allocation17]  }
  0x46   :  { %s8104_s24 = smov [#allocation19]   ;;  %s8105_s21 = smov [#allocation22]  }
  0x47   :  { %s139_s0 = sshll.u32 %s8104_s24, 4  ;;  %s164_s1 = sshll.u32 %s8105_s21, 4  ;;  %s140_s0 = int_to_ptr.vmem [resolvable:$true] %s139_s0  ;;  %s165_s1 = int_to_ptr.vmem [resolvable:$true] %s164_s1 }
  0x48   :  { %s7849_s26 = scalar_lea.hbm %s9371_s14, 512 }
  0x49   :  { %p7850_p10 = scmp.ne.s32.totalorder %s9371_s14, %s7849_s26  ;;  %p7853_p11 = scmp.lt.u32.totalorder %s7849_s26, %s9371_s14 }
  0x4b   :  { %p7855_p12 = pnand %p7853_p11, %p7850_p10 }
  0x4d   :  { %7858 = shalt.err (!%p7855_p12)
}
  0x4e   :  { %s7859_s10 = scalar_lea.vmem %s140_s0, 512  ;;  %p7864_p0 = scmp.lt.s32.totalorder %s140_s0, %s140_s0 }
  0x4f   :  { %p7860_p13 = scmp.ne.s32.totalorder %s140_s0, %s7859_s10  ;;  %p7865_p1 = scmp.lt.s32.totalorder %s7859_s10, %s7859_s10 }
  0x51   :  { %p7866_p2 = por %p7865_p1, %p7864_p0 }
  0x53   :  { %p7867_p3 = pnand %p7866_p2, %p7860_p13 }
  0x55   :  { %7870 = shalt.err (!%p7867_p3)
}
  0x56   :  { %145 = dma.hbm_to_vmem [thread:$0]  %s9371_s14, 512, %s140_s0, [#allocation20], %s8102_s3, %s8102_s3, %s8103_s30  }
  0x57   :  { %s9388_s24 = sld [smem:[#allocation37_spill]]  ;;  %s7871_s26 = scalar_lea.hbm %s9373_s16, 16 }
  0x58   :  { %p7872_p4 = scmp.ne.s32.totalorder %s9373_s16, %s7871_s26  ;;  %p7875_p5 = scmp.lt.u32.totalorder %s7871_s26, %s9373_s16 }
  0x5a   :  { %p7877_p6 = pnand %p7875_p5, %p7872_p4 }
  0x5d   :  { %s42_s21 = sshll.u32 %s9388_s24, 4  ;;  %s43_s21 = int_to_ptr.vmem [resolvable:$true] %s42_s21 }
  0x5e   :  { %7880 = shalt.err (!%p7877_p6)
}
  0x5f   :  { %s7881_s14 = scalar_lea.vmem %s165_s1, 16  ;;  %s7885_s0 = scalar_lea.vmem %s165_s1, 32 }
  0x60   :  { %p7882_p7 = scmp.ne.s32.totalorder %s165_s1, %s7881_s14  ;;  %p7886_p8 = scmp.lt.s32.totalorder %s165_s1, %s165_s1 }
  0x61   :  { %p7887_p9 = scmp.lt.s32.totalorder %s7885_s0, %s7881_s14 }
  0x63   :  { %p7888_p10 = por %p7887_p9, %p7886_p8 }
  0x65   :  { %p7889_p11 = pnand %p7888_p10, %p7882_p7 }
  0x67   :  { %7892 = shalt.err (!%p7889_p11)
}
  0x68   :  { %167 = dma.hbm_to_vmem [thread:$0]  %s9373_s16, 16, %s165_s1, [#allocation23]  }
  0x69   :  { %s7893_s29 = scalar_lea.vmem %s43_s21, 16  ;;  %p7898_p13 = scmp.lt.s32.totalorder %s43_s21, %s43_s21 }
  0x6a   :  { %p7894_p12 = scmp.ne.s32.totalorder %s43_s21, %s7893_s29  ;;  %p7899_p0 = scmp.lt.s32.totalorder %s7893_s29, %s7893_s29 }
  0x6c   :  { %p7900_p1 = por %p7899_p0, %p7898_p13 }
  0x6e   :  { %p7901_p2 = pnand %p7900_p1, %p7894_p12 }
  0x70   :  { %7904 = shalt.err (!%p7901_p2)
}
  0x71   :  { %s8106_s6 = smov [#allocation5]   ;;  %s8107_s22 = smov [#allocation9]  }
  0x72   :  { %45 = dma.vmem_to_smem %s43_s21, 16, %s8106_s6, [#allocation8]  }
  0x73   :  { %s51_s24 = sshll.u32 %s8107_s22, 4  ;;  %s8108_s23 = smov [#allocation12]   ;;  %s52_s24 = int_to_ptr.vmem [resolvable:$true] %s51_s24 }
  0x74   :  { %s78_s25 = sshll.u32 %s8108_s23, 4  ;;  %s9389_s28 = sld [smem:[#allocation38_spill]]  ;;  %s79_s25 = int_to_ptr.vmem [resolvable:$true] %s78_s25 }
  0x7a   :  { %s7905_s16 = scalar_lea.hbm %s9389_s28, 256 }
  0x7b   :  { %p7906_p3 = scmp.ne.s32.totalorder %s9389_s28, %s7905_s16  ;;  %p7909_p4 = scmp.lt.u32.totalorder %s7905_s16, %s9389_s28 }
  0x7d   :  { %p7911_p5 = pnand %p7909_p4, %p7906_p3 }
  0x7f   :  { %7914 = shalt.err (!%p7911_p5)
}
  0x80   :  { %s7915_s21 = scalar_lea.vmem %s52_s24, 256  ;;  %p7920_p7 = scmp.lt.s32.totalorder %s52_s24, %s52_s24 }
  0x81   :  { %p7916_p6 = scmp.ne.s32.totalorder %s52_s24, %s7915_s21  ;;  %p7921_p8 = scmp.lt.s32.totalorder %s7915_s21, %s7915_s21 }
  0x83   :  { %p7922_p9 = por %p7921_p8, %p7920_p7 }
  0x85   :  { %p7923_p10 = pnand %p7922_p9, %p7916_p6 }
  0x87   :  { %7926 = shalt.err (!%p7923_p10)
}
  0x88   :  { %57 = dma.hbm_to_vmem [thread:$0]  %s9389_s28, 256, %s52_s24, [#allocation6], %s8102_s3, %s8102_s3, %s8103_s30  }
  0x89   :  { %s7927_s6 = scalar_lea.hbm %s9362_s5, 16 }
  0x8a   :  { %p7928_p11 = scmp.ne.s32.totalorder %s9362_s5, %s7927_s6  ;;  %p7931_p12 = scmp.lt.u32.totalorder %s7927_s6, %s9362_s5 }
  0x8c   :  { %p7933_p13 = pnand %p7931_p12, %p7928_p11 }
  0x8e   :  { %7936 = shalt.err (!%p7933_p13)
}
  0x8f   :  { %s7937_s16 = scalar_lea.vmem %s79_s25, 16  ;;  %s7941_s1 = scalar_lea.vmem %s79_s25, 32 }
  0x90   :  { %p7938_p0 = scmp.ne.s32.totalorder %s79_s25, %s7937_s16  ;;  %p7942_p1 = scmp.lt.s32.totalorder %s79_s25, %s79_s25 }
  0x91   :  { %p7943_p2 = scmp.lt.s32.totalorder %s7941_s1, %s7937_s16 }
  0x93   :  { %p7944_p3 = por %p7943_p2, %p7942_p1 }
  0x95   :  { %p7945_p4 = pnand %p7944_p3, %p7938_p0 }
  0x97   :  { %7948 = shalt.err (!%p7945_p4)
}
  0x98   :  { %81 = dma.hbm_to_vmem [thread:$0]  %s9362_s5, 16, %s79_s25, [#allocation11]  }
  0x99   :  { %s8109_s12 = smov [#allocation15]   ;;  %s8110_s14 = smov [#allocation18]  }
  0x9a   :  { %s102_s4 = sshll.u32 %s8109_s12, 4  ;;  %s127_s21 = sshll.u32 %s8110_s14, 4  ;;  %s103_s4 = int_to_ptr.vmem [resolvable:$true] %s102_s4  ;;  %s8325_s21 = int_to_ptr.vmem [resolvable:$true] %s127_s21 }
  0x9b   :  { %s7949_s2 = scalar_lea.hbm %s9365_s8, 16 }
  0x9c   :  { %p7950_p5 = scmp.ne.s32.totalorder %s9365_s8, %s7949_s2  ;;  %p7953_p6 = scmp.lt.u32.totalorder %s7949_s2, %s9365_s8 }
  0x9e   :  { %p7955_p7 = pnand %p7953_p6, %p7950_p5 }
  0xa0   :  { %7958 = shalt.err (!%p7955_p7)
}
  0xa1   :  { %s7959_s5 = scalar_lea.vmem %s103_s4, 16  ;;  %s7963_s25 = scalar_lea.vmem %s103_s4, 32 }
  0xa2   :  { %p7960_p8 = scmp.ne.s32.totalorder %s103_s4, %s7959_s5  ;;  %p7964_p9 = scmp.lt.s32.totalorder %s103_s4, %s103_s4 }
  0xa3   :  { %p7965_p10 = scmp.lt.s32.totalorder %s7963_s25, %s7959_s5 }
  0xa5   :  { %p7966_p11 = por %p7965_p10, %p7964_p9 }
  0xa7   :  { %p7967_p12 = pnand %p7966_p11, %p7960_p8 }
  0xa9   :  { %7970 = shalt.err (!%p7967_p12)
}
  0xaa   :  { %105 = dma.hbm_to_vmem [thread:$0]  %s9365_s8, 16, %s103_s4, [#allocation14]  }
  0xab   :  { %s7971_s24 = scalar_lea.hbm %s9370_s13, 512 }
  0xac   :  { %p7972_p13 = scmp.ne.s32.totalorder %s9370_s13, %s7971_s24  ;;  %p7975_p0 = scmp.lt.u32.totalorder %s7971_s24, %s9370_s13 }
  0xae   :  { %p7977_p1 = pnand %p7975_p0, %p7972_p13 }
  0xb0   :  { %7980 = shalt.err (!%p7977_p1)
}
  0xb1   :  { %s7981_s10 = scalar_lea.vmem %s8325_s21, 512  ;;  %p7986_p3 = scmp.lt.s32.totalorder %s8325_s21, %s8325_s21 }
  0xb2   :  { %p7982_p2 = scmp.ne.s32.totalorder %s8325_s21, %s7981_s10  ;;  %p7987_p4 = scmp.lt.s32.totalorder %s7981_s10, %s7981_s10 }
  0xb4   :  { %p7988_p5 = por %p7987_p4, %p7986_p3 }
  0xb6   :  { %p7989_p6 = pnand %p7988_p5, %p7982_p2 }
  0xb8   :  { %7992 = shalt.err (!%p7989_p6)
}
  0xb9   :  { %133 = dma.hbm_to_vmem [thread:$0]  %s9370_s13, 512, %s8325_s21, [#allocation17], %s8102_s3, %s8102_s3, %s8103_s30  }
  0xba   :  { %s8111_s2 = smov [#allocation21]   ;;  %s8112_s6 = smov [#allocation24]  }
  0xbb   :  { %s151_s29 = sshll.u32 %s8111_s2, 4  ;;  %s174_s22 = sshll.u32 %s8112_s6, 4  ;;  %s152_s29 = int_to_ptr.vmem [resolvable:$true] %s151_s29  ;;  %s175_s22 = int_to_ptr.vmem [resolvable:$true] %s174_s22 }
  0xbc   :  { %s7993_s25 = scalar_lea.hbm %s9372_s15, 512 }
  0xbd   :  { %p7994_p7 = scmp.ne.s32.totalorder %s9372_s15, %s7993_s25  ;;  %p7997_p8 = scmp.lt.u32.totalorder %s7993_s25, %s9372_s15 }
  0xbf   :  { %p7999_p9 = pnand %p7997_p8, %p7994_p7 }
  0xc1   :  { %8002 = shalt.err (!%p7999_p9)
}
  0xc2   :  { %s8003_s13 = scalar_lea.vmem %s152_s29, 512  ;;  %p8008_p11 = scmp.lt.s32.totalorder %s152_s29, %s152_s29 }
  0xc3   :  { %p8004_p10 = scmp.ne.s32.totalorder %s152_s29, %s8003_s13  ;;  %p8009_p12 = scmp.lt.s32.totalorder %s8003_s13, %s8003_s13 }
  0xc5   :  { %p8010_p13 = por %p8009_p12, %p8008_p11 }
  0xc7   :  { %p8011_p0 = pnand %p8010_p13, %p8004_p10 }
  0xc9   :  { %8014 = shalt.err (!%p8011_p0)
}
  0xca   :  { %157 = dma.hbm_to_vmem [thread:$0]  %s9372_s15, 512, %s152_s29, [#allocation20], %s8102_s3, %s8102_s3, %s8103_s30  }
  0xcb   :  { %s8015_s14 = scalar_lea.hbm %s9374_s17, 16 }
  0xcc   :  { %p8016_p1 = scmp.ne.s32.totalorder %s9374_s17, %s8015_s14  ;;  %p8019_p2 = scmp.lt.u32.totalorder %s8015_s14, %s9374_s17 }
  0xce   :  { %p8021_p3 = pnand %p8019_p2, %p8016_p1 }
  0xd0   :  { %8024 = shalt.err (!%p8021_p3)
}
  0xd1   :  { %s8025_s2 = scalar_lea.vmem %s175_s22, 16  ;;  %s8029_s6 = scalar_lea.vmem %s175_s22, 32 }
  0xd2   :  { %p8026_p4 = scmp.ne.s32.totalorder %s175_s22, %s8025_s2  ;;  %p8030_p5 = scmp.lt.s32.totalorder %s175_s22, %s175_s22 }
  0xd3   :  { %p8031_p6 = scmp.lt.s32.totalorder %s8029_s6, %s8025_s2 }
  0xd5   :  { %p8032_p7 = por %p8031_p6, %p8030_p5 }
  0xd7   :  { %p8033_p8 = pnand %p8032_p7, %p8026_p4 }
  0xd9   :  { %8036 = shalt.err (!%p8033_p8)
}
  0xda   :  { %177 = dma.hbm_to_vmem [thread:$0]  %s9374_s17, 16, %s175_s22, [#allocation23]  }
  0xdb   :  { %s8113_s30 = smov [#allocation25]   ;;  %s8037_s25 = scalar_lea.hbm %s9376_s19, 16 }
  0xdc   :  { %s186_s29 = sshll.u32 %s8113_s30, 4  ;;  %p8038_p9 = scmp.ne.s32.totalorder %s9376_s19, %s8037_s25  ;;  %s187_s29 = int_to_ptr.vmem [resolvable:$true] %s186_s29 }
  0xdd   :  { %p8041_p10 = scmp.lt.u32.totalorder %s8037_s25, %s9376_s19 }
  0xdf   :  { %p8043_p11 = pnand %p8041_p10, %p8038_p9 }
  0xe1   :  { %8046 = shalt.err (!%p8043_p11)
}
  0xe2   :  { %s8047_s13 = scalar_lea.vmem %s187_s29, 16  ;;  %s8051_s17 = scalar_lea.vmem %s187_s29, 32 }
  0xe3   :  { %p8048_p12 = scmp.ne.s32.totalorder %s187_s29, %s8047_s13  ;;  %p8052_p13 = scmp.lt.s32.totalorder %s187_s29, %s187_s29 }
  0xe4   :  { %p8053_p0 = scmp.lt.s32.totalorder %s8051_s17, %s8047_s13 }
  0xe6   :  { %p8054_p1 = por %p8053_p0, %p8052_p13 }
  0xe8   :  { %p8055_p2 = pnand %p8054_p1, %p8048_p12 }
  0xea   :  { %8058 = shalt.err (!%p8055_p2)
}
  0xeb   :  { %189 = dma.hbm_to_vmem [thread:$0]  %s9376_s19, 16, %s187_s29, [#allocation26]  }
  0xec   :  { %8081 = dma.done.wait [#allocation8], 16  }
  0xed   :  { %8082 = vsyncadd [#allocation8], 4294967280 }
  0xee   :  { %8083 = dma.done.wait [#allocation6], 256  }
  0xef   :  { %8084 = vsyncadd [#allocation6], 4294967040 }
  0xf0   :  { %8085 = dma.done.wait [#allocation11], 32  }
  0xf1   :  { %8086 = vsyncadd [#allocation11], 4294967264 }
  0xf2   :  { %8087 = dma.done.wait [#allocation14], 272  }
  0xf3   :  { %8088 = vsyncadd [#allocation14], 4294967024 }
  0xf4   :  { %8089 = dma.done.wait [#allocation17], 528  }
  0xf5   :  { %8090 = vsyncadd [#allocation17], 4294966768 }
  0xf6   :  { %8091 = dma.done.wait [#allocation20], 1024  }
  0xf7   :  { %8092 = vsyncadd [#allocation20], 4294966272 }
  0xf8   :  { %8093 = dma.done.wait [#allocation23], 32  }
  0xf9   :  { %8094 = vsyncadd [#allocation23], 4294967264 }
  0xfa   :  { %8095 = dma.done.wait [#allocation26], 16  }
  0xfb   :  { %8096 = vsyncadd [#allocation26], 4294967280 }
  0xfc   :  { %229 = sfence }
  0xfd   :  { %s9390_s19 = sld [smem:[#allocation40_spill]]  ;;  %v8114_v4 = vmov 0.0|0.0   ;;  %s9391_s15 = sld [smem:[#allocation39_spill]]  ;;  %vm8115_vm0 = vmmov 0   ;;  %v8116_v10 = vmov 0.0   ;;  %vm233_vm1 = vcmask 253952  }
  0xfe   :  { %7246 = vmatprep.subr.bf16.mxu1 %v8114_v4  ;;  %7240 = vmatprep.subr.bf16.mxu0 %v8114_v4  ;;  %s230_s29 = sld [smem:[#allocation5]]  ;;  %s6143_s27 = sld [smem:[#allocation5 + $0x1]]  ;;  %v6153_v15 = vld [vmem:[#allocation12] ss:$0 sm:$0xff]  ;;  %vm280_vm2 = vcmask 261120   ;;  %vm576_vm3 = vcmask 254977  }
  0xff   :  { %6572 = vmatprep.mubr.msk.f32.mxu1 %vm8115_vm0, %v8116_v10  ;;  %6561 = vmatprep.mubr.msk.f32.mxu0 %vm8115_vm0, %v8116_v10  ;;  %s6144_s16 = sld [smem:[#allocation5 + $0x2]]  ;;  %s6145_s1 = sld [smem:[#allocation5 + $0x3]]  ;;  %v6150_v31 = vld [vmem:[#allocation10] ss:$0 sm:$0xff]  ;;  %vm804_vm4 = vcmask 257027   ;;  %vm1032_vm5 = vcmask 259077  }
 0x100   :  { %s8433_s13 = sld [smem:[#allocation5 + $0x4]]  ;;  %s8436_s17 = sld [smem:[#allocation5 + $0x5]]  ;;  %vm690_vm6 = vcmask 256002   ;;  %vm918_vm7 = vcmask 258052   ;;  %vm1146_vm8 = vcmask 260102   ;;  %vm1260_vm9 = vcmask 261127  }
 0x101   :  { %s8438_s22 = sld [smem:[#allocation5 + $0x6]]  ;;  %s8441_s21 = sld [smem:[#allocation5 + $0x7]]  ;;  %vm1540_vm10 = vcmask 7168   ;;  %vm1901_vm11 = vcmask 122880   ;;  %vm1927_vm14 = vcmask 130048  }
 0x102   :  { %s8117_s24 = smov 64   ;;  %s8118_s2 = smov 96  }
 0x103   :  { %v267_v1 = vld [vmem:[%s9390_s19] sm:$0xff]  ;;  %v268_v2 = vld [vmem:[%s9390_s19 + $0x8] sm:$0xff]  ;;  %v269_v3 = vld [vmem:[%s9390_s19 + $0x10] sm:$0xff]  ;;  %439 = vrot.lane.b32.xlu0 %v6153_v15, %s8117_s24 }
 0x104   :  { %v8408_v5 = vpack.c.bf16 %v268_v2, %v267_v1  ;;  %v270_v6 = vld [vmem:[%s9390_s19 + $0x18] sm:$0xff]  ;;  %v263_v7 = vld [vmem:[%s9391_s15] sm:$0xff]  ;;  %v264_v8 = vld [vmem:[%s9391_s15 + $0x8] sm:$0xff]  ;;  %s231_s28 = scalar_lea.vmem [#allocation9], %s230_s29  ;;  %s236_s19 = scalar_lea.vmem [#allocation9], %s6143_s27 }
 0x105   :  { %v7241_v9 = vpack.c.bf16 %v264_v8, %v263_v7  ;;  %v265_v11 = vld [vmem:[%s9391_s15 + $0x10] sm:$0xff]  ;;  %v266_v12 = vld [vmem:[%s9391_s15 + $0x18] sm:$0xff]  ;;  %v8431_v13 = vpack.c.bf16 %v270_v6, %v269_v3  ;;  %v232_v16 = vld [vmem:[%s231_s28] sm:$0x1]  ;;  %s240_s12 = scalar_lea.vmem [#allocation9], %s6144_s16  ;;  %s244_s14 = scalar_lea.vmem [#allocation9], %s6145_s1 }
 0x106   :  { %7248 = vmatpush3.bf16.msra.mxu1 %v8408_v5  ;;  %v7244_v14 = vpack.c.bf16 %v266_v12, %v265_v11  ;;  %234 = vst.msk [vmem:[#allocation2] sm:$0x1] %vm233_vm1, %v232_v16  ;;  %v237_v17 = vld [vmem:[%s236_s19] sm:$0x1]  ;;  %s248_s0 = scalar_lea.vmem [#allocation9], %s8433_s13  ;;  %s252_s10 = scalar_lea.vmem [#allocation9], %s8436_s17 }
 0x107   :  { %7249 = vmatprep.subr.bf16.mxu1 %v8114_v4  ;;  %7242 = vmatpush3.bf16.msra.mxu0 %v7241_v9  ;;  %v241_v18 = vld [vmem:[%s240_s12] sm:$0x1]  ;;  %238 = vst.msk [vmem:[#allocation2 + $0x1] sm:$0x1] %vm233_vm1, %v237_v17  ;;  %s256_s8 = scalar_lea.vmem [#allocation9], %s8438_s22  ;;  %s260_s4 = scalar_lea.vmem [#allocation9], %s8441_s21 }
 0x108   :  { %7243 = vmatprep.subr.bf16.mxu0 %v8114_v4  ;;  %242 = vst.msk [vmem:[#allocation2 + $0x2] sm:$0x1] %vm233_vm1, %v241_v18  ;;  %v245_v19 = vld [vmem:[%s244_s14] sm:$0x1] }
 0x109   :  { %v249_v20 = vld [vmem:[%s248_s0] sm:$0x1]  ;;  %246 = vst.msk [vmem:[#allocation2 + $0x3] sm:$0x1] %vm233_vm1, %v245_v19 }
 0x10a   :  { %7251 = vmatpush3.bf16.msra.mxu1 %v8431_v13  ;;  %250 = vst.msk [vmem:[#allocation2 + $0x4] sm:$0x1] %vm233_vm1, %v249_v20  ;;  %v253_v21 = vld [vmem:[%s252_s10] sm:$0x1] }
 0x10b   :  { %7245 = vmatpush3.bf16.msra.mxu0 %v7244_v14  ;;  %7258 = vmatprep.subr.bf16.mxu1 %v8114_v4  ;;  %v257_v22 = vld [vmem:[%s256_s8] sm:$0x1]  ;;  %254 = vst.msk [vmem:[#allocation2 + $0x5] sm:$0x1] %vm233_vm1, %v253_v21 }
 0x10c   :  { %7252 = vmatprep.subr.bf16.mxu0 %v8114_v4  ;;  %258 = vst.msk [vmem:[#allocation2 + $0x6] sm:$0x1] %vm233_vm1, %v257_v22  ;;  %v261_v23 = vld [vmem:[%s260_s4] sm:$0x1] }
 0x10d   :  { %6573 = vmatmul.mubr.f32.vlgmr.msra.gmra.mrb[0].mxu1 %v8116_v10  ;;  %262 = vst.msk [vmem:[#allocation2 + $0x7] sm:$0x1] %vm233_vm1, %v261_v23 }
 0x10e   :  { %7260 = vmatpush3.bf16.msra.mxu1 %v8408_v5  ;;  %6594 = vmatprep.mubr.msk.f32.mxu1 %vm8115_vm0, %v8116_v10 }
 0x10f   :  { %7261 = vmatprep.subr.bf16.mxu1 %v8114_v4 }
 0x112   :  { %7263 = vmatpush3.bf16.msra.mxu1 %v8431_v13 }
 0x113   :  { %7270 = vmatprep.subr.bf16.mxu1 %v8114_v4 }
 0x114   :  { %v272_v24 = vld [vmem:[#allocation2] sm:$0xff] }
 0x115   :  { %6562 = vmatmul.mubr.msk.f32.vlgmr.msra.gmra.mrb[0].mxu0 %vm280_vm2, %v272_v24 }
 0x116   :  { %7254 = vmatpush3.bf16.msra.mxu0 %v8408_v5  ;;  %6583 = vmatprep.mubr.msk.f32.mxu0 %vm8115_vm0, %v8116_v10 }
 0x117   :  { %7255 = vmatprep.subr.bf16.mxu0 %v8114_v4 }
 0x11a   :  { %7257 = vmatpush3.bf16.msra.mxu0 %v8431_v13 }
 0x11b   :  { %7264 = vmatprep.subr.bf16.mxu0 %v8114_v4 }
 0x175   :  { %v8473_v25 = vpop.permute.xlu0 %439 }
 0x1e0   :  { %v423_v26 = vpop.f32.mrb[0].mxu1 }
 0x1e1   :  { %v442_v27 = vadd.f32 %v8473_v25, %v423_v26  ;;  %v6574_v28 = vpop.f32.mrb[1].mxu1 }
 0x1e3   :  { %444 = vrot.lane.b32.xlu0 %v442_v27, %s8117_s24 }
 0x1e8   :  { %v350_v29 = vpop.f32.mrb[0].mxu0 }
 0x1e9   :  { %v6563_v30 = vpop.f32.mrb[1].mxu0  ;;  %v8477_v32 = vadd.f32 %v6150_v31, %v350_v29 }
 0x1eb   :  { %v427_v33 = vadd.f32 %v423_v26, %v8477_v32 }
 0x1ed   :  { %v6152_v34 = vmul.f32 -1.442695, %v427_v33 }
 0x1ef   :  { %7633 = vpow2.f32 %v6152_v34 }
 0x1f9   :  { %v7634_v35 = vpop.eup %7633 }
 0x1fa   :  { %v431_v36 = vadd.f32 1.0, %v7634_v35 }
 0x1fc   :  { %7635 = vrcp.f32 %v431_v36 }
 0x206   :  { %v7636_v37 = vpop.eup %7635 }
 0x207   :  { %v454_v43 = vsub.f32 1.0, %v7636_v37  ;;  %v460_v45 = vmul.f32 0.0, %v7636_v37 }
 0x255   :  { %v445_v38 = vpop.permute.xlu0 %444 }
 0x256   :  { %v447_v39 = vmul.f32 %v7636_v37, %v445_v38 }
 0x258   :  { %449 = vrot.lane.b32.xlu1 %v447_v39, %s8117_s24 }
 0x2ca   :  { %v450_v40 = vpop.permute.xlu1 %449 }
 0x2cb   :  { %v452_v41 = vadd.f32 %v450_v40, %v8477_v32 }
 0x2cd   :  { %7637 = vtanh.f32 %v452_v41 }
 0x2d7   :  { %v7638_v42 = vpop.eup %7637 }
 0x2d8   :  { %456 = vrot.lane.b32.xlu1 %v7638_v42, %s8118_s2 }
 0x34a   :  { %v457_v44 = vpop.permute.xlu1 %456 }
 0x34b   :  { %v459_v46 = vmul.f32 %v457_v44, %v454_v43 }
 0x34d   :  { %v461_v47 = vadd.f32 %v460_v45, %v459_v46 }
 0x34f   :  { %463 = vrot.lane.b32.xlu0 %v461_v47, %s8118_s2  ;;  %v568_v0 = vrot.slane %v461_v47, 7 }
 0x3c1   :  { %v464_v48 = vpop.permute.xlu0 %463 }
 0x3c2   :  { %466 = vst.msk [vmem:[#allocation3] sm:$0x1] %vm233_vm1, %v464_v48  ;;  %6584 = vmatmul.mubr.msk.f32.vlgmr.msra.gmra.mrb[2].mxu0 %vm280_vm2, %v464_v48 }
 0x3c3   :  { %7266 = vmatpush3.bf16.msra.mxu0 %v8408_v5  ;;  %6605 = vmatprep.mubr.msk.f32.mxu0 %vm8115_vm0, %v8116_v10 }
 0x3c4   :  { %7267 = vmatprep.subr.bf16.mxu0 %v8114_v4 }
 0x3c7   :  { %7269 = vmatpush3.bf16.msra.mxu0 %v8431_v13 }
 0x3c8   :  { %7276 = vmatprep.subr.bf16.mxu0 %v8114_v4 }
 0x495   :  { %v535_v49 = vpop.f32.mrb[2].mxu0 }
 0x496   :  { %v549_v50 = vadd.f32 %v535_v49, %v8473_v25  ;;  %v6585_v51 = vpop.f32.mrb[3].mxu0  ;;  %v540_v53 = vrot.slane %v535_v49, 7 }
 0x498   :  { %v551_v52 = vrot.slane %v549_v50, 7  ;;  %v542_v54 = vadd.f32 %v540_v53, %v8477_v32 }
 0x49a   :  { %552 = vrot.lane.b32.xlu1 %v551_v52, %s8117_s24  ;;  %v6155_v55 = vmul.f32 -1.442695, %v542_v54 }
 0x49c   :  { %7639 = vpow2.f32 %v6155_v55 }
 0x4a6   :  { %v7640_v56 = vpop.eup %7639 }
 0x4a7   :  { %v546_v57 = vadd.f32 1.0, %v7640_v56 }
 0x4a9   :  { %7641 = vrcp.f32 %v546_v57 }
 0x4b3   :  { %v7642_v58 = vpop.eup %7641 }
 0x4b4   :  { %v562_v1 = vsub.f32 1.0, %v7642_v58  ;;  %v570_v3 = vmul.f32 %v7642_v58, %v568_v0 }
 0x50c   :  { %v553_v59 = vpop.permute.xlu1 %552 }
 0x50d   :  { %v555_v60 = vmul.f32 %v7642_v58, %v553_v59 }
 0x50f   :  { %557 = vrot.lane.b32.xlu0 %v555_v60, %s8117_s24 }
 0x581   :  { %v558_v61 = vpop.permute.xlu0 %557 }
 0x582   :  { %v560_v62 = vadd.f32 %v558_v61, %v8477_v32 }
 0x584   :  { %7643 = vtanh.f32 %v560_v62 }
 0x58e   :  { %v7644_v63 = vpop.eup %7643 }
 0x58f   :  { %564 = vrot.lane.b32.xlu1 %v7644_v63, %s8118_s2 }
 0x601   :  { %v565_v2 = vpop.permute.xlu1 %564 }
 0x602   :  { %v567_v6 = vmul.f32 %v565_v2, %v562_v1 }
 0x604   :  { %v8498_v7 = vadd.f32 %v570_v3, %v567_v6 }
 0x606   :  { %v578_v8 = vrot.slane %v8498_v7, 1  ;;  %v682_v29 = vrot.slane %v8498_v7, 7 }
 0x608   :  { %579 = vrot.lane.b32.xlu0 %v578_v8, %s8118_s2 }
 0x67a   :  { %v580_v9 = vpop.permute.xlu0 %579 }
 0x67b   :  { %6595 = vmatmul.mubr.msk.f32.vlgmr.msra.gmra.mrb[2].mxu1 %vm280_vm2, %v580_v9 }
 0x67c   :  { %7272 = vmatpush3.bf16.msra.mxu1 %v8408_v5  ;;  %6616 = vmatprep.mubr.msk.f32.mxu1 %vm8115_vm0, %v8116_v10 }
 0x67d   :  { %7273 = vmatprep.subr.bf16.mxu1 %v8114_v4 }
 0x680   :  { %7275 = vmatpush3.bf16.msra.mxu1 %v8431_v13 }
 0x681   :  { %7282 = vmatprep.subr.bf16.mxu1 %v8114_v4 }
 0x74e   :  { %v649_v11 = vpop.f32.mrb[2].mxu1 }
 0x74f   :  { %v663_v12 = vadd.f32 %v649_v11, %v8473_v25  ;;  %v6596_v14 = vpop.f32.mrb[3].mxu1  ;;  %v654_v16 = vrot.slane %v649_v11, 6 }
 0x751   :  { %v665_v15 = vrot.slane %v663_v12, 6  ;;  %v656_v17 = vadd.f32 %v654_v16, %v8477_v32 }
 0x753   :  { %666 = vrot.lane.b32.xlu1 %v665_v15, %s8117_s24  ;;  %v6157_v18 = vmul.f32 -1.442695, %v656_v17 }
 0x755   :  { %7645 = vpow2.f32 %v6157_v18 }
 0x75f   :  { %v7646_v19 = vpop.eup %7645 }
 0x760   :  { %v660_v20 = vadd.f32 1.0, %v7646_v19 }
 0x762   :  { %7647 = vrcp.f32 %v660_v20 }
 0x76c   :  { %v7648_v21 = vpop.eup %7647 }
 0x76d   :  { %v676_v28 = vsub.f32 1.0, %v7648_v21  ;;  %v684_v31 = vmul.f32 %v7648_v21, %v682_v29 }
 0x7c5   :  { %v667_v22 = vpop.permute.xlu1 %666 }
 0x7c6   :  { %v669_v23 = vmul.f32 %v7648_v21, %v667_v22 }
 0x7c8   :  { %671 = vrot.lane.b32.xlu0 %v669_v23, %s8117_s24 }
 0x83a   :  { %v672_v24 = vpop.permute.xlu0 %671 }
 0x83b   :  { %v674_v26 = vadd.f32 %v672_v24, %v8477_v32 }
 0x83d   :  { %7649 = vtanh.f32 %v674_v26 }
 0x847   :  { %v7650_v27 = vpop.eup %7649 }
 0x848   :  { %678 = vrot.lane.b32.xlu1 %v7650_v27, %s8118_s2 }
 0x8ba   :  { %v679_v30 = vpop.permute.xlu1 %678 }
 0x8bb   :  { %v681_v33 = vmul.f32 %v679_v30, %v676_v28 }
 0x8bd   :  { %v8516_v34 = vadd.f32 %v684_v31, %v681_v33 }
 0x8bf   :  { %v692_v35 = vrot.slane %v8516_v34, 2  ;;  %v796_v53 = vrot.slane %v8516_v34, 7 }
 0x8c1   :  { %693 = vrot.lane.b32.xlu0 %v692_v35, %s8118_s2 }
 0x933   :  { %v694_v36 = vpop.permute.xlu0 %693 }
 0x934   :  { %6606 = vmatmul.mubr.msk.f32.vlgmr.msra.gmra.mrb[4].mxu0 %vm280_vm2, %v694_v36 }
 0x935   :  { %7278 = vmatpush3.bf16.msra.mxu0 %v8408_v5  ;;  %6627 = vmatprep.mubr.msk.f32.mxu0 %vm8115_vm0, %v8116_v10 }
 0x936   :  { %7279 = vmatprep.subr.bf16.mxu0 %v8114_v4 }
 0x939   :  { %7281 = vmatpush3.bf16.msra.mxu0 %v8431_v13 }
 0x93a   :  { %7288 = vmatprep.subr.bf16.mxu0 %v8114_v4 }
 0xa07   :  { %v763_v37 = vpop.f32.mrb[4].mxu0 }
 0xa08   :  { %v777_v38 = vadd.f32 %v763_v37, %v8473_v25  ;;  %v6607_v39 = vpop.f32.mrb[5].mxu0  ;;  %v768_v41 = vrot.slane %v763_v37, 5 }
 0xa0a   :  { %v779_v40 = vrot.slane %v777_v38, 5  ;;  %v770_v42 = vadd.f32 %v768_v41, %v8477_v32 }
 0xa0c   :  { %780 = vrot.lane.b32.xlu1 %v779_v40, %s8117_s24  ;;  %v6159_v43 = vmul.f32 -1.442695, %v770_v42 }
 0xa0e   :  { %7651 = vpow2.f32 %v6159_v43 }
 0xa18   :  { %v7652_v44 = vpop.eup %7651 }
 0xa19   :  { %v774_v45 = vadd.f32 1.0, %v7652_v44 }
 0xa1b   :  { %7653 = vrcp.f32 %v774_v45 }
 0xa25   :  { %v7654_v46 = vpop.eup %7653 }
 0xa26   :  { %v790_v52 = vsub.f32 1.0, %v7654_v46  ;;  %v798_v55 = vmul.f32 %v7654_v46, %v796_v53 }
 0xa7e   :  { %v781_v47 = vpop.permute.xlu1 %780 }
 0xa7f   :  { %v783_v48 = vmul.f32 %v7654_v46, %v781_v47 }
 0xa81   :  { %785 = vrot.lane.b32.xlu0 %v783_v48, %s8117_s24 }
 0xaf3   :  { %v786_v49 = vpop.permute.xlu0 %785 }
 0xaf4   :  { %v788_v50 = vadd.f32 %v786_v49, %v8477_v32 }
 0xaf6   :  { %7655 = vtanh.f32 %v788_v50 }
 0xb00   :  { %v7656_v51 = vpop.eup %7655 }
 0xb01   :  { %792 = vrot.lane.b32.xlu1 %v7656_v51, %s8118_s2 }
 0xb73   :  { %v793_v54 = vpop.permute.xlu1 %792 }
 0xb74   :  { %v795_v56 = vmul.f32 %v793_v54, %v790_v52 }
 0xb76   :  { %v8534_v57 = vadd.f32 %v798_v55, %v795_v56 }
 0xb78   :  { %v806_v58 = vrot.slane %v8534_v57, 3  ;;  %v910_v17 = vrot.slane %v8534_v57, 7 }
 0xb7a   :  { %807 = vrot.lane.b32.xlu0 %v806_v58, %s8118_s2 }
 0xbec   :  { %v808_v59 = vpop.permute.xlu0 %807 }
 0xbed   :  { %6617 = vmatmul.mubr.msk.f32.vlgmr.msra.gmra.mrb[4].mxu1 %vm280_vm2, %v808_v59 }
 0xbee   :  { %7284 = vmatpush3.bf16.msra.mxu1 %v8408_v5  ;;  %6638 = vmatprep.mubr.msk.f32.mxu1 %vm8115_vm0, %v8116_v10 }
 0xbef   :  { %7285 = vmatprep.subr.bf16.mxu1 %v8114_v4 }
 0xbf2   :  { %7287 = vmatpush3.bf16.msra.mxu1 %v8431_v13 }
 0xbf3   :  { %7294 = vmatprep.subr.bf16.mxu1 %v8114_v4 }
 0xcc0   :  { %v877_v60 = vpop.f32.mrb[4].mxu1 }
 0xcc1   :  { %v891_v61 = vadd.f32 %v877_v60, %v8473_v25  ;;  %v6618_v62 = vpop.f32.mrb[5].mxu1  ;;  %v882_v0 = vrot.slane %v877_v60, 4 }
 0xcc3   :  { %v893_v63 = vrot.slane %v891_v61, 4  ;;  %v884_v1 = vadd.f32 %v882_v0, %v8477_v32 }
 0xcc5   :  { %894 = vrot.lane.b32.xlu1 %v893_v63, %s8117_s24  ;;  %v6161_v2 = vmul.f32 -1.442695, %v884_v1 }
 0xcc7   :  { %7657 = vpow2.f32 %v6161_v2 }
 0xcd1   :  { %v7658_v3 = vpop.eup %7657 }
 0xcd2   :  { %v888_v6 = vadd.f32 1.0, %v7658_v3 }
 0xcd4   :  { %7659 = vrcp.f32 %v888_v6 }
 0xcde   :  { %v7660_v8 = vpop.eup %7659 }
 0xcdf   :  { %v904_v16 = vsub.f32 1.0, %v7660_v8  ;;  %v912_v19 = vmul.f32 %v7660_v8, %v910_v17 }
 0xd37   :  { %v895_v9 = vpop.permute.xlu1 %894 }
 0xd38   :  { %v897_v11 = vmul.f32 %v7660_v8, %v895_v9 }
 0xd3a   :  { %899 = vrot.lane.b32.xlu0 %v897_v11, %s8117_s24 }
 0xdac   :  { %v900_v12 = vpop.permute.xlu0 %899 }
 0xdad   :  { %v902_v14 = vadd.f32 %v900_v12, %v8477_v32 }
 0xdaf   :  { %7661 = vtanh.f32 %v902_v14 }
 0xdb9   :  { %v7662_v15 = vpop.eup %7661 }
 0xdba   :  { %906 = vrot.lane.b32.xlu1 %v7662_v15, %s8118_s2 }
 0xe2c   :  { %v907_v18 = vpop.permute.xlu1 %906 }
 0xe2d   :  { %v909_v20 = vmul.f32 %v907_v18, %v904_v16 }
 0xe2f   :  { %v8552_v21 = vadd.f32 %v912_v19, %v909_v20 }
 0xe31   :  { %v920_v22 = vrot.slane %v8552_v21, 4  ;;  %v1024_v41 = vrot.slane %v8552_v21, 7 }
 0xe33   :  { %921 = vrot.lane.b32.xlu0 %v920_v22, %s8118_s2 }
 0xea5   :  { %v922_v23 = vpop.permute.xlu0 %921 }
 0xea6   :  { %6628 = vmatmul.mubr.msk.f32.vlgmr.msra.gmra.mrb[6].mxu0 %vm280_vm2, %v922_v23 }
 0xea7   :  { %7290 = vmatpush3.bf16.msra.mxu0 %v8408_v5  ;;  %6649 = vmatprep.mubr.msk.f32.mxu0 %vm8115_vm0, %v8116_v10 }
 0xea8   :  { %7291 = vmatprep.subr.bf16.mxu0 %v8114_v4 }
 0xeab   :  { %7293 = vmatpush3.bf16.msra.mxu0 %v8431_v13 }
 0xeac   :  { %7300 = vmatprep.subr.bf16.mxu0 %v8114_v4 }
 0xf79   :  { %v991_v24 = vpop.f32.mrb[6].mxu0 }
 0xf7a   :  { %v1005_v26 = vadd.f32 %v991_v24, %v8473_v25  ;;  %v6629_v27 = vpop.f32.mrb[7].mxu0  ;;  %v996_v29 = vrot.slane %v991_v24, 3 }
 0xf7c   :  { %v1007_v28 = vrot.slane %v1005_v26, 3  ;;  %v998_v30 = vadd.f32 %v996_v29, %v8477_v32 }
 0xf7e   :  { %1008 = vrot.lane.b32.xlu1 %v1007_v28, %s8117_s24  ;;  %v6163_v5 = vmul.f32 -1.442695, %v998_v30 }
 0xf80   :  { %7663 = vpow2.f32 %v6163_v5 }
 0xf8a   :  { %v7664_v31 = vpop.eup %7663 }
 0xf8b   :  { %v1002_v33 = vadd.f32 1.0, %v7664_v31 }
 0xf8d   :  { %7665 = vrcp.f32 %v1002_v33  ;;  %v1266_v33 = vld [vmem:[%s9364_s7 + $0x18] sm:$0xff] }
 0xf97   :  { %v7666_v35 = vpop.eup %7665 }
 0xf98   :  { %v1018_v40 = vsub.f32 1.0, %v7666_v35  ;;  %v1026_v43 = vmul.f32 %v7666_v35, %v1024_v41 }
 0xff0   :  { %v1009_v36 = vpop.permute.xlu1 %1008 }
 0xff1   :  { %v1011_v13 = vmul.f32 %v7666_v35, %v1009_v36  ;;  %v1268_v36 = vld [vmem:[%s9366_s9] sm:$0xff] }
 0xff3   :  { %1013 = vrot.lane.b32.xlu0 %v1011_v13, %s8117_s24  ;;  %v1269_v13 = vld [vmem:[%s9366_s9 + $0x8] sm:$0xff] }
0x1065   :  { %v1014_v37 = vpop.permute.xlu0 %1013 }
0x1066   :  { %v1016_v38 = vadd.f32 %v1014_v37, %v8477_v32  ;;  %v7295_v37 = vpack.c.bf16 %v1269_v13, %v1268_v36 }
0x1068   :  { %7667 = vtanh.f32 %v1016_v38 }
0x1072   :  { %v7668_v39 = vpop.eup %7667 }
0x1073   :  { %1020 = vrot.lane.b32.xlu1 %v7668_v39, %s8118_s2 }
0x10e5   :  { %v1021_v42 = vpop.permute.xlu1 %1020 }
0x10e6   :  { %v1023_v44 = vmul.f32 %v1021_v42, %v1018_v40 }
0x10e8   :  { %v1027_v45 = vadd.f32 %v1026_v43, %v1023_v44 }
0x10ea   :  { %v1034_v46 = vrot.slane %v1027_v45, 5  ;;  %v1138_v1 = vrot.slane %v1027_v45, 7 }
0x10ec   :  { %1035 = vrot.lane.b32.xlu0 %v1034_v46, %s8118_s2 }
0x115e   :  { %v1036_v47 = vpop.permute.xlu0 %1035 }
0x115f   :  { %6639 = vmatmul.mubr.msk.f32.vlgmr.msra.gmra.mrb[6].mxu1 %vm280_vm2, %v1036_v47 }
0x1160   :  { %6660 = vmatprep.mubr.msk.f32.mxu1 %vm8115_vm0, %v8116_v10  ;;  %7296 = vmatpush3.bf16.msra.mxu1 %v7295_v37 }
0x1161   :  { %7297 = vmatprep.subr.bf16.mxu1 %v8114_v4 }
0x1232   :  { %v1105_v48 = vpop.f32.mrb[6].mxu1 }
0x1233   :  { %v1119_v49 = vadd.f32 %v1105_v48, %v8473_v25  ;;  %v6640_v50 = vpop.f32.mrb[7].mxu1  ;;  %v1110_v52 = vrot.slane %v1105_v48, 2 }
0x1235   :  { %v1121_v51 = vrot.slane %v1119_v49, 2  ;;  %v1112_v53 = vadd.f32 %v1110_v52, %v8477_v32  ;;  %v1273_v52 = vld [vmem:[%s9368_s11] sm:$0xff] }
0x1237   :  { %1122 = vrot.lane.b32.xlu1 %v1121_v51, %s8117_s24  ;;  %v6165_v54 = vmul.f32 -1.442695, %v1112_v53  ;;  %v1274_v53 = vld [vmem:[%s9368_s11 + $0x8] sm:$0xff] }
0x1239   :  { %7669 = vpow2.f32 %v6165_v54  ;;  %v1275_v54 = vld [vmem:[%s9368_s11 + $0x10] sm:$0xff] }
0x1243   :  { %v7670_v55 = vpop.eup %7669 }
0x1244   :  { %v1116_v56 = vadd.f32 1.0, %v7670_v55  ;;  %v8668_v55 = vpack.c.bf16 %v1274_v53, %v1273_v52  ;;  %v1297_v52 = vld [vmem:[#allocation13] sm:$0xff]  ;;  %v6177_v53 = vld [vmem:[#allocation24] ss:$0 sm:$0xff] }
0x1246   :  { %7671 = vrcp.f32 %v1116_v56  ;;  %v1276_v56 = vld [vmem:[%s9368_s11 + $0x18] sm:$0xff] }
0x1250   :  { %v7672_v58 = vpop.eup %7671 }
0x1251   :  { %v1132_v0 = vsub.f32 1.0, %v7672_v58  ;;  %v1140_v3 = vmul.f32 %v7672_v58, %v1138_v1 }
0x12a9   :  { %v1123_v59 = vpop.permute.xlu1 %1122 }
0x12aa   :  { %v1125_v60 = vmul.f32 %v7672_v58, %v1123_v59  ;;  %v8674_v58 = vpack.c.bf16 %v1276_v56, %v1275_v54  ;;  %v1378_v59 = vlaneseq }
0x12ac   :  { %1127 = vrot.lane.b32.xlu0 %v1125_v60, %s8117_s24  ;;  %v1456_v60 = vshrl.u32 %v1378_v59, 7 }
0x12ae   :  { %v8683_v1 = vsub.s32 0, %v1456_v60 }
0x131e   :  { %v1128_v61 = vpop.permute.xlu0 %1127 }
0x131f   :  { %v1130_v62 = vadd.f32 %v1128_v61, %v8477_v32  ;;  %v8680_v61 = vld [vmem:[#allocation15] sm:$0x1] }
0x1321   :  { %7673 = vtanh.f32 %v1130_v62 }
0x132b   :  { %v7674_v63 = vpop.eup %7673 }
0x132c   :  { %1134 = vrot.lane.b32.xlu1 %v7674_v63, %s8118_s2 }
0x139e   :  { %v1135_v2 = vpop.permute.xlu1 %1134 }
0x139f   :  { %v1137_v6 = vmul.f32 %v1135_v2, %v1132_v0  ;;  %v6168_v2 = vld [vmem:[#allocation16] ss:$0 sm:$0xff] }
0x13a1   :  { %v8580_v8 = vadd.f32 %v1140_v3, %v1137_v6 }
0x13a3   :  { %v1148_v9 = vrot.slane %v8580_v8, 6  ;;  %v1252_v40 = vrot.slane %v8580_v8, 7 }
0x13a5   :  { %1149 = vrot.lane.b32.xlu0 %v1148_v9, %s8118_s2 }
0x1417   :  { %v1150_v11 = vpop.permute.xlu0 %1149 }
0x1418   :  { %6650 = vmatmul.mubr.msk.f32.vlgmr.msra.gmra.mrb[8].mxu0 %vm280_vm2, %v1150_v11 }
0x1419   :  { %6671 = vmatprep.mubr.msk.f32.mxu0 %vm8115_vm0, %v8116_v10 }
0x14eb   :  { %v1219_v12 = vpop.f32.mrb[8].mxu0 }
0x14ec   :  { %v1233_v14 = vadd.f32 %v1219_v12, %v8473_v25  ;;  %v6651_v15 = vpop.f32.mrb[9].mxu0  ;;  %v1224_v17 = vrot.slane %v1219_v12, 1 }
0x14ed   :  { %v8692_v15 = vld [vmem:[#allocation4] ss:$0 sm:$0xff] }
0x14ee   :  { %v1235_v16 = vrot.slane %v1233_v14, 1  ;;  %v1226_v18 = vadd.f32 %v1224_v17, %v8477_v32  ;;  %v8119_v14 = vmov 0  }
0x14ef   :  { %7631 = vset.pattern.permute.xlu0 %v8119_v14  ;;  %7632 = vset.pattern.permute.xlu1 %v8119_v14  ;;  %v1288_v14 = vld [vmem:[#allocation21 + $0x10] sm:$0xff] }
0x14f0   :  { %1236 = vrot.lane.b32.xlu1 %v1235_v16, %s8117_s24  ;;  %v6167_v19 = vmul.f32 -1.442695, %v1226_v18 }
0x14f2   :  { %7675 = vpow2.f32 %v6167_v19 }
0x14fc   :  { %v7676_v20 = vpop.eup %7675 }
0x14fd   :  { %v1230_v22 = vadd.f32 1.0, %v7676_v20 }
0x14ff   :  { %7677 = vrcp.f32 %v1230_v22 }
0x1509   :  { %v7678_v23 = vpop.eup %7677 }
0x150a   :  { %v1246_v39 = vsub.f32 1.0, %v7678_v23  ;;  %v1254_v42 = vmul.f32 %v7678_v23, %v1252_v40  ;;  %v1279_v40 = vld [vmem:[#allocation18 + $0x8] sm:$0xff] }
0x1562   :  { %v1237_v24 = vpop.permute.xlu1 %1236 }
0x1563   :  { %v1239_v26 = vmul.f32 %v7678_v23, %v1237_v24 }
0x1565   :  { %1241 = vrot.lane.b32.xlu0 %v1239_v26, %s8117_s24 }
0x1569   :  { %573 = vrot.lane.b32.xlu0 %v8498_v7, %s8118_s2  ;;  %v1263_v7 = vld [vmem:[%s9364_s7] sm:$0xff] }
0x156d   :  { %801 = vrot.lane.b32.xlu0 %v8534_v57, %s8118_s2  ;;  %v1264_v57 = vld [vmem:[%s9364_s7 + $0x8] sm:$0xff] }
0x156e   :  { %v8607_v31 = vpack.c.bf16 %v1264_v57, %v1263_v7 }
0x1570   :  { %7302 = vmatpush3.bf16.msra.mxu0 %v8607_v31 }
0x1571   :  { %1029 = vrot.lane.b32.xlu0 %v1027_v45, %s8118_s2  ;;  %7303 = vmatprep.subr.bf16.mxu0 %v8114_v4 }
0x15d7   :  { %v1242_v25 = vpop.permute.xlu0 %1241 }
0x15d8   :  { %v1244_v27 = vadd.f32 %v1242_v25, %v8477_v32  ;;  %v1265_v32 = vld [vmem:[%s9364_s7 + $0x10] sm:$0xff] }
0x15d9   :  { %v8613_v35 = vpack.c.bf16 %v1266_v33, %v1265_v32 }
0x15da   :  { %7679 = vtanh.f32 %v1244_v27 }
0x15db   :  { %v574_v28 = vpop.permute.xlu0 %573  ;;  %7305 = vmatpush3.bf16.msra.mxu0 %v8613_v35 }
0x15dc   :  { %577 = vst.msk [vmem:[#allocation3] sm:$0x2] %vm576_vm3, %v574_v28  ;;  %7312 = vmatprep.subr.bf16.mxu0 %v8114_v4 }
0x15df   :  { %v802_v29 = vpop.permute.xlu0 %801 }
0x15e0   :  { %805 = vst.msk [vmem:[#allocation3] sm:$0x8] %vm804_vm4, %v802_v29 }
0x15e3   :  { %v1030_v30 = vpop.permute.xlu0 %1029 }
0x15e4   :  { %v7680_v5 = vpop.eup %7679  ;;  %1033 = vst.msk [vmem:[#allocation3] sm:$0x20] %vm1032_vm5, %v1030_v30 }
0x15e5   :  { %1248 = vrot.lane.b32.xlu1 %v7680_v5, %s8118_s2 }
0x15e9   :  { %687 = vrot.lane.b32.xlu1 %v8516_v34, %s8118_s2  ;;  %v1270_v34 = vld [vmem:[%s9366_s9 + $0x10] sm:$0xff] }
0x15ed   :  { %915 = vrot.lane.b32.xlu1 %v8552_v21, %s8118_s2  ;;  %v1271_v21 = vld [vmem:[%s9366_s9 + $0x18] sm:$0xff] }
0x15ee   :  { %v7298_v38 = vpack.c.bf16 %v1271_v21, %v1270_v34  ;;  %v1282_v34 = vld [vmem:[#allocation19] sm:$0xff]  ;;  %v1283_v21 = vld [vmem:[#allocation19 + $0x8] sm:$0xff] }
0x15f0   :  { %7299 = vmatpush3.bf16.msra.mxu1 %v7298_v38  ;;  %v8697_v38 = vpack.c.bf16 %v1283_v21, %v1282_v34  ;;  %v1292_v21 = vld [vmem:[%s9375_s18] sm:$0xff] }
0x15f1   :  { %1143 = vrot.lane.b32.xlu1 %v8580_v8, %s8118_s2  ;;  %7306 = vmatprep.subr.bf16.mxu1 %v8114_v4 }
0x1657   :  { %v1249_v41 = vpop.permute.xlu1 %1248 }
0x1658   :  { %v1251_v43 = vmul.f32 %v1249_v41, %v1246_v39  ;;  %v1278_v39 = vld [vmem:[#allocation18] sm:$0xff] }
0x1659   :  { %v8699_v41 = vpack.c.bf16 %v1279_v40, %v1278_v39  ;;  %v1293_v39 = vld [vmem:[%s9375_s18 + $0x8] sm:$0xff]  ;;  %v1294_v40 = vld [vmem:[%s9375_s18 + $0x10] sm:$0xff] }
0x165a   :  { %v8639_v44 = vadd.f32 %v1254_v42, %v1251_v43  ;;  %v1284_v42 = vld [vmem:[#allocation19 + $0x10] sm:$0xff]  ;;  %v1285_v43 = vld [vmem:[#allocation19 + $0x18] sm:$0xff] }
0x165b   :  { %v688_v45 = vpop.permute.xlu1 %687 }
0x165c   :  { %691 = vst.msk [vmem:[#allocation3] sm:$0x4] %vm690_vm6, %v688_v45  ;;  %1257 = vrot.lane.b32.xlu0 %v8639_v44, %s8118_s2  ;;  %v1380_v46 = vrot.slane %v8639_v44, 7  ;;  %v1280_v45 = vld [vmem:[#allocation18 + $0x10] sm:$0xff]  ;;  %v8791_v44 = vld [vmem:[#allocation25] sm:$0x1] }
0x165e   :  { %1381 = vrot.lane.b32.xlu1 %v1380_v46, %s8118_s2 }
0x165f   :  { %v916_v47 = vpop.permute.xlu1 %915 }
0x1660   :  { %919 = vst.msk [vmem:[#allocation3] sm:$0x10] %vm918_vm7, %v916_v47  ;;  %v8704_v47 = vpack.c.bf16 %v1285_v43, %v1284_v42  ;;  %v8755_v42 = vpack.c.bf16 %v1293_v39, %v1292_v21  ;;  %v1295_v43 = vld [vmem:[%s9375_s18 + $0x18] sm:$0xff]  ;;  %s8120_s18 = smov [#allocation27]  }
0x1662   :  { %1802 = vrot.lane.b32.xlu1 %v6177_v53, %s8117_s24 }
0x1663   :  { %v1144_v48 = vpop.permute.xlu1 %1143 }
0x1664   :  { %1147 = vst.msk [vmem:[#allocation3] sm:$0x40] %vm1146_vm8, %v1144_v48  ;;  %v1281_v48 = vld [vmem:[#allocation18 + $0x18] sm:$0xff] }
0x16ce   :  { %v1258_v49 = vpop.permute.xlu0 %1257 }
0x16cf   :  { %1261 = vst.msk [vmem:[#allocation3] sm:$0x80] %vm1260_vm9, %v1258_v49  ;;  %v8707_v49 = vpack.c.bf16 %v1281_v48, %v1280_v45  ;;  %v8761_v45 = vpack.c.bf16 %v1295_v43, %v1294_v40 }
0x16d0   :  { %v8647_v50 = vpop.permute.xlu1 %1381 }
0x16d1   :  { %6672 = vmatmul.mubr.msk.f32.vlgmr.msra.gmra.mrb[10].mxu0 %vm280_vm2, %v8647_v50 }
0x16d2   :  { %6693 = vmatprep.mubr.msk.f32.mxu0 %vm8115_vm0, %v8116_v10  ;;  %7314 = vmatpush3.bf16.msra.mxu0 %v8697_v38 }
0x16d3   :  { %7315 = vmatprep.subr.bf16.mxu0 %v8114_v4 }
0x16d6   :  { %v8653_v51 = vld [vmem:[#allocation3] sm:$0xff]  ;;  %7317 = vmatpush3.bf16.msra.mxu0 %v8704_v47 }
0x16d7   :  { %6661 = vmatmul.mubr.msk.f32.vlgmr.msra.gmra.mrb[8].mxu1 %vm280_vm2, %v8653_v51  ;;  %7324 = vmatprep.subr.bf16.mxu0 %v8114_v4 }
0x16d8   :  { %6682 = vmatprep.mubr.msk.f32.mxu1 %vm8115_vm0, %v8116_v10  ;;  %7308 = vmatpush3.bf16.msra.mxu1 %v8668_v55 }
0x16d9   :  { %7309 = vmatprep.subr.bf16.mxu1 %v8114_v4 }
0x16dc   :  { %7311 = vmatpush3.bf16.msra.mxu1 %v8674_v58 }
0x16dd   :  { %7318 = vmatprep.subr.bf16.mxu1 %v8114_v4 }
0x17a4   :  { %v1451_v62 = vpop.f32.mrb[10].mxu0 }
0x17a5   :  { %v6673_v63 = vpop.f32.mrb[11].mxu0  ;;  %v1452_v0 = vadd.f32 %v1451_v62, %v8680_v61 }
0x17a7   :  { %v1458_v6 = vrot.slane %v1452_v0, %v8683_v1 }
0x17aa   :  { %v1374_v3 = vpop.f32.mrb[8].mxu1 }
0x17ab   :  { %v8686_v8 = vadd.f32 %v6168_v2, %v1374_v3  ;;  %v6662_v9 = vpop.f32.mrb[9].mxu1  ;;  %v1286_v3 = vld [vmem:[#allocation21] sm:$0xff] }
0x17ad   :  { %v1459_v11 = vadd.f32 %v1458_v6, %v8686_v8  ;;  %v1287_v6 = vld [vmem:[#allocation21 + $0x8] sm:$0xff] }
0x17af   :  { %7681 = vtanh.f32 %v1459_v11  ;;  %v8719_v11 = vpack.c.bf16 %v1287_v6, %v1286_v3 }
0x17b9   :  { %v7682_v12 = vpop.eup %7681 }
0x17ba   :  { %6683 = vmatmul.mubr.msk.f32.vlgmr.msra.gmra.mrb[10].mxu1 %vm280_vm2, %v7682_v12 }
0x17bb   :  { %6704 = vmatprep.mubr.msk.f32.mxu1 %vm8115_vm0, %v8116_v10  ;;  %7320 = vmatpush3.bf16.msra.mxu1 %v8699_v41 }
0x17bc   :  { %7321 = vmatprep.subr.bf16.mxu1 %v8114_v4 }
0x17bf   :  { %7323 = vmatpush3.bf16.msra.mxu1 %v8707_v49 }
0x17c0   :  { %7330 = vmatprep.subr.bf16.mxu1 %v8114_v4 }
0x17c2   :  { %6705 = vmatmul.mubr.msk.f32.vlgmr.msra.gmra.mrb[12].mxu1 %vm280_vm2, %v1297_v52 }
0x17c3   :  { %6726 = vmatprep.mubr.msk.f32.mxu1 %vm8115_vm0, %v8116_v10  ;;  %7332 = vmatpush3.bf16.msra.mxu1 %v8755_v42 }
0x17c4   :  { %7333 = vmatprep.subr.bf16.mxu1 %v8114_v4 }
0x17c7   :  { %7335 = vmatpush3.bf16.msra.mxu1 %v8761_v45 }
0x17c8   :  { %7339 = vmatprep.subr.bf16.mxu1 %v8114_v4 }
0x188d   :  { %v1536_v16 = vpop.f32.mrb[10].mxu1 }
0x188e   :  { %v1537_v17 = vadd.f32 %v8692_v15, %v1536_v16  ;;  %v6684_v18 = vpop.f32.mrb[11].mxu1  ;;  %v1289_v16 = vld [vmem:[#allocation21 + $0x18] sm:$0xff] }
0x188f   :  { %v1298_v18 = vld [vmem:[#allocation13 + $0x8] sm:$0xff] }
0x1890   :  { %v1541_v19 = vsel %vm1540_vm10, %v1537_v17, -inf }
0x1891   :  { %v1542_v20 = vrot.slane %v1541_v19, 4 }
0x1893   :  { %v1543_v22 = vmax.f32 %v1541_v19, %v1542_v20  ;;  %v8728_v19 = vpack.c.bf16 %v1298_v18, %v1297_v52 }
0x1895   :  { %v1544_v23 = vrot.slane %v1543_v22, 2  ;;  %v1715_v20 = vpop.f32.mrb[12].mxu1 }
0x1897   :  { %v1545_v24 = vmax.f32 %v1543_v22, %v1544_v23  ;;  %v6706_v22 = vpop.f32.mrb[13].mxu1 }
0x1899   :  { %v1546_v26 = vrot.slane %v1545_v24, 1 }
0x189b   :  { %v1547_v25 = vmax.f32 %v1545_v24, %v1546_v26 }
0x189d   :  { %v1548_v27 = vsub.f32 %v1537_v17, %v1547_v25  ;;  %v8723_v17 = vpack.c.bf16 %v1289_v16, %v1288_v14  ;;  %v8738_v25 = vpop.permute.xlu1 %1802 }
0x189f   :  { %v1549_v28 = vmul.f32 1.442695, %v1548_v27 }
0x18a1   :  { %7683 = vpow2.f32 %v1549_v28 }
0x18ab   :  { %v7684_v29 = vpop.eup %7683 }
0x18ac   :  { %v1551_v30 = vsel %vm1540_vm10, %v7684_v29, 0.0 }
0x18ad   :  { %v1552_v5 = vrot.slane %v1551_v30, 4 }
0x18af   :  { %v1553_v7 = vadd.f32 %v1552_v5, %v1551_v30 }
0x18b1   :  { %v1554_v57 = vrot.slane %v1553_v7, 2 }
0x18b3   :  { %v1555_v32 = vadd.f32 %v1554_v57, %v1553_v7 }
0x18b5   :  { %v1556_v33 = vrot.slane %v1555_v32, 1 }
0x18b7   :  { %v1557_v36 = vadd.f32 %v1556_v33, %v1555_v32 }
0x18b9   :  { %7685 = vrcp.f32 %v1557_v36 }
0x18c3   :  { %v7686_v13 = vpop.eup %7685 }
0x18c4   :  { %v1559_v37 = vmul.f32 %v7686_v13, %v7684_v29 }
0x18c6   :  { %1562 = vperm.xlu0 %7631, %v1559_v37  }
0x1945   :  { %v1563_v54 = vpop.permute.xlu0 %1562 }
0x1946   :  { %v1565_v56 = vmul.f32 %v1563_v54, %v8653_v51 }
0x1948   :  { %v1566_v60 = vsel %vm280_vm2, %v1565_v56, 0.0 }
0x1949   :  { %v1567_v62 = vrot.slane %v1566_v60, 4 }
0x194b   :  { %v1568_v63 = vadd.f32 %v1567_v62, %v1566_v60 }
0x194d   :  { %v1569_v0 = vrot.slane %v1568_v63, 2 }
0x194f   :  { %v1570_v2 = vadd.f32 %v1569_v0, %v1568_v63 }
0x1951   :  { %v1571_v9 = vrot.slane %v1570_v2, 1 }
0x1953   :  { %v1572_v12 = vadd.f32 %v1571_v9, %v1570_v2  ;;  %v8796_v9 = vand.u32 127, %v1378_v59 }
0x1955   :  { %6694 = vmatmul.mubr.msk.f32.vlgmr.msra.gmra.mrb[12].mxu0 %vm280_vm2, %v1572_v12  ;;  %vm1922_vm4 = vcmp.eq.s32.totalorder %v8796_v9, 0  ;;  %vm2521_vm5 = vcmp.eq.s32.totalorder %v8796_v9, 1  ;;  %vm3119_vm9 = vcmp.eq.s32.totalorder %v8796_v9, 2 }
0x1956   :  { %7326 = vmatpush3.bf16.msra.mxu0 %v8719_v11  ;;  %6715 = vmatprep.mubr.msk.f32.mxu0 %vm8115_vm0, %v8116_v10 }
0x1957   :  { %7327 = vmatprep.subr.bf16.mxu0 %v8114_v4 }
0x195a   :  { %7329 = vmatpush3.bf16.msra.mxu0 %v8723_v17 }
0x195b   :  { %7336 = vmatprep.subr.bf16.mxu0 %v8114_v4 }
0x195d   :  { %6716 = vmatmul.mubr.msk.f32.vlgmr.msra.gmra.mrb[14].mxu0 %vm280_vm2, %v8647_v50  ;;  %v8742_v50 = vld [vmem:[#allocation22] sm:$0x1] }
0x195e   :  { %7338 = vmatpush3.bf16.msra.mxu0 %v8728_v19  ;;  %6733 = vmatprep.mubr.msk.f32.mxu0 %vm8115_vm0, %v8116_v10 }
0x195f   :  { %7345 = vmatprep.subr.bf16.mxu0 %v8114_v4 }
0x1a28   :  { %v1642_v23 = vpop.f32.mrb[12].mxu0 }
0x1a29   :  { %v1716_v24 = vadd.f32 %v1715_v20, %v1642_v23  ;;  %v6695_v26 = vpop.f32.mrb[13].mxu0 }
0x1a2b   :  { %v1719_v30 = vadd.f32 %v1716_v24, %v8742_v50 }
0x1a30   :  { %v1786_v27 = vpop.f32.mrb[14].mxu0 }
0x1a31   :  { %v1805_v28 = vadd.f32 %v8738_v25, %v1786_v27  ;;  %v6717_v29 = vpop.f32.mrb[15].mxu0  ;;  %v1790_v5 = vadd.f32 %v1786_v27, %v1719_v30 }
0x1a33   :  { %1807 = vrot.lane.b32.xlu1 %v1805_v28, %s8117_s24  ;;  %v6176_v7 = vmul.f32 -1.442695, %v1790_v5 }
0x1a35   :  { %7687 = vpow2.f32 %v6176_v7 }
0x1a3f   :  { %v7688_v57 = vpop.eup %7687 }
0x1a40   :  { %v1794_v32 = vadd.f32 1.0, %v7688_v57 }
0x1a42   :  { %7689 = vrcp.f32 %v1794_v32 }
0x1a4c   :  { %v7690_v33 = vpop.eup %7689 }
0x1a4d   :  { %v1817_v52 = vsub.f32 1.0, %v7690_v33  ;;  %v1824_v54 = vmul.f32 %v7690_v33, %v1380_v46 }
0x1aa5   :  { %v1808_v36 = vpop.permute.xlu1 %1807 }
0x1aa6   :  { %v1810_v13 = vmul.f32 %v7690_v33, %v1808_v36 }
0x1aa8   :  { %1812 = vrot.lane.b32.xlu0 %v1810_v13, %s8117_s24 }
0x1b1a   :  { %v1813_v37 = vpop.permute.xlu0 %1812 }
0x1b1b   :  { %v1815_v34 = vadd.f32 %v1813_v37, %v1719_v30 }
0x1b1d   :  { %7691 = vtanh.f32 %v1815_v34 }
0x1b27   :  { %v7692_v48 = vpop.eup %7691 }
0x1b28   :  { %1819 = vrot.lane.b32.xlu1 %v7692_v48, %s8118_s2 }
0x1b9a   :  { %v1820_v53 = vpop.permute.xlu1 %1819 }
0x1b9b   :  { %v1822_v56 = vmul.f32 %v1820_v53, %v1817_v52 }
0x1b9d   :  { %v8769_v60 = vadd.f32 %v1824_v54, %v1822_v56 }
0x1b9f   :  { %1827 = vrot.lane.b32.xlu0 %v8769_v60, %s8118_s2 }
0x1c11   :  { %v8773_v62 = vpop.permute.xlu0 %1827 }
0x1c12   :  { %6727 = vmatmul.mubr.msk.f32.vlgmr.msra.gmra.mrb[14].mxu1 %vm280_vm2, %v8773_v62 }
0x1c13   :  { %7341 = vmatpush3.bf16.msra.mxu1 %v8607_v31  ;;  %6744 = vmatprep.mubr.msk.f32.mxu1 %vm8115_vm0, %v8116_v10 }
0x1c14   :  { %7342 = vmatprep.subr.bf16.mxu1 %v8114_v4 }
0x1c17   :  { %7344 = vmatpush3.bf16.msra.mxu1 %v8613_v35 }
0x1c18   :  { %7351 = vmatprep.subr.bf16.mxu1 %v8114_v4 }
0x1c1a   :  { %6745 = vmatmul.mubr.msk.f32.vlgmr.msra.gmra.mrb[16].mxu1 %vm280_vm2, %v8773_v62 }
0x1c1b   :  { %7353 = vmatpush3.bf16.msra.mxu1 %v8697_v38  ;;  %6766 = vmatprep.mubr.msk.f32.mxu1 %vm8115_vm0, %v8116_v10 }
0x1c1c   :  { %7354 = vmatprep.subr.bf16.mxu1 %v8114_v4 }
0x1c1f   :  { %7356 = vmatpush3.bf16.msra.mxu1 %v8704_v47 }
0x1c20   :  { %7363 = vmatprep.subr.bf16.mxu1 %v8114_v4 }
0x1ce5   :  { %v1897_v46 = vpop.f32.mrb[14].mxu1 }
0x1ce6   :  { %v1898_v63 = vadd.f32 %v1897_v46, %v8791_v44  ;;  %v6728_v0 = vpop.f32.mrb[15].mxu1 }
0x1ce8   :  { %v1902_v2 = vsel %vm1901_vm11, %v1898_v63, -inf }
0x1ce9   :  { %1903 = vmax.xlane.f32.xlu1 %v1902_v2 }
0x1ced   :  { %v2067_v3 = vpop.f32.mrb[16].mxu1 }
0x1cee   :  { %v6746_v6 = vpop.f32.mrb[17].mxu1  ;;  %v2068_v27 = vadd.f32 %v2067_v3, %v8680_v61 }
0x1cf0   :  { %v2074_v59 = vrot.slane %v2068_v27, %v8683_v1 }
0x1cf2   :  { %v2075_v29 = vadd.f32 %v2074_v59, %v8686_v8 }
0x1cf4   :  { %7693 = vtanh.f32 %v2075_v29 }
0x1cfe   :  { %v7694_v33 = vpop.eup %7693 }
0x1d76   :  { %v1904_v12 = vpop.xlane.xlu1 %1903 }
0x1d77   :  { %vm1905_vm12 = vcmp.ge.f32.partialorder %v1898_v63, %v1904_v12 }
0x1d78   :  { %v1906_v14 = vsel %vm1905_vm12, %v8796_v9, 16 }
0x1d79   :  { %v1907_v16 = vsel %vm1901_vm11, %v1906_v14, 2147483647 }
0x1d7a   :  { %v1909_v18 = vshra.s32 %v1907_v16, 16  ;;  %v1908_v22 = vand.u32 65535, %v1907_v16 }
0x1d7c   :  { %v1911_v20 = vcvt.s32.f32 %v1909_v18  ;;  %v1910_v24 = vcvt.s32.f32 %v1908_v22 }
0x1d7e   :  { %1912 = vmin.xlane.f32.xlu0 %v1911_v20 }
0x1e0b   :  { %v1913_v23 = vpop.xlane.xlu0 %1912 }
0x1e0c   :  { %vm1914_vm13 = vcmp.eq.f32.partialorder %v1911_v20, %v1913_v23  ;;  %v1919_v28 = vcvt.f32.s32 %v1913_v23 }
0x1e0d   :  { %v1915_v26 = vsel %vm1914_vm13, %v1910_v24, inf }
0x1e0e   :  { %1916 = vmin.xlane.f32.xlu0 %v1915_v26  ;;  %v1920_v5 = vshll.u32 %v1919_v28, 16 }
0x1e9b   :  { %v1917_v30 = vpop.xlane.xlu0 %1916 }
0x1e9c   :  { %v1918_v7 = vcvt.f32.s32 %v1917_v30 }
0x1e9e   :  { %v8803_v57 = vadd.s32 %v1920_v5, %v1918_v7 }
0x1ea0   :  { %vm1924_vm15 = vcmp.eq.s32.totalorder %v8796_v9, %v8803_v57 }
0x1ea1   :  { %v6179_v32 = vsel %vm1924_vm15, 1.0, %v8116_v10 }
0x1ea2   :  { %6734 = vmatmul.mubr.msk.f32.vlgmr.msra.gmra.mrb[16].mxu0 %vm1927_vm14, %v6179_v32 }
0x1ea3   :  { %7347 = vmatpush3.bf16.msra.mxu0 %v8668_v55  ;;  %6755 = vmatprep.mubr.msk.f32.mxu0 %vm8115_vm0, %v8116_v10 }
0x1ea4   :  { %7348 = vmatprep.subr.bf16.mxu0 %v8114_v4 }
0x1ea7   :  { %7350 = vmatpush3.bf16.msra.mxu0 %v8674_v58 }
0x1ea8   :  { %7357 = vmatprep.subr.bf16.mxu0 %v8114_v4 }
0x1eaa   :  { %6756 = vmatmul.mubr.msk.f32.vlgmr.msra.gmra.mrb[18].mxu0 %vm280_vm2, %v7694_v33 }
0x1eab   :  { %7359 = vmatpush3.bf16.msra.mxu0 %v8699_v41  ;;  %6777 = vmatprep.mubr.msk.f32.mxu0 %vm8115_vm0, %v8116_v10 }
0x1eac   :  { %7360 = vmatprep.subr.bf16.mxu0 %v8114_v4 }
0x1eaf   :  { %7362 = vmatpush3.bf16.msra.mxu0 %v8707_v49 }
0x1eb0   :  { %7369 = vmatprep.subr.bf16.mxu0 %v8114_v4 }
0x1f75   :  { %v1997_v36 = vpop.f32.mrb[16].mxu0 }
0x1f76   :  { %v6735_v13 = vpop.f32.mrb[17].mxu0  ;;  %6778 = vmatmul.mubr.msk.f32.vlgmr.msra.gmra.mrb[20].mxu0 %vm280_vm2, %v1997_v36 }
0x1f77   :  { %7371 = vmatpush3.bf16.msra.mxu0 %v8755_v42  ;;  %6799 = vmatprep.mubr.msk.f32.mxu0 %vm8115_vm0, %v8116_v10 }
0x1f78   :  { %7372 = vmatprep.subr.bf16.mxu0 %v8114_v4 }
0x1f7b   :  { %7374 = vmatpush3.bf16.msra.mxu0 %v8761_v45 }
0x1f7c   :  { %7378 = vmatprep.subr.bf16.mxu0 %v8114_v4 }
0x1f7d   :  { %v2146_v37 = vpop.f32.mrb[18].mxu0 }
0x1f7e   :  { %v2147_v34 = vadd.f32 %v8692_v15, %v2146_v37  ;;  %v6757_v21 = vpop.f32.mrb[19].mxu0 }
0x1f80   :  { %v2150_v39 = vsel %vm1540_vm10, %v2147_v34, -inf }
0x1f81   :  { %v2151_v40 = vrot.slane %v2150_v39, 4 }
0x1f83   :  { %v2152_v43 = vmax.f32 %v2150_v39, %v2151_v40 }
0x1f85   :  { %v2153_v48 = vrot.slane %v2152_v43, 2 }
0x1f87   :  { %v2154_v52 = vmax.f32 %v2152_v43, %v2153_v48 }
0x1f89   :  { %v2155_v53 = vrot.slane %v2154_v52, 1 }
0x1f8b   :  { %v2156_v54 = vmax.f32 %v2154_v52, %v2155_v53 }
0x1f8d   :  { %v2157_v56 = vsub.f32 %v2147_v34, %v2156_v54 }
0x1f8f   :  { %v2158_v46 = vmul.f32 1.442695, %v2157_v56 }
0x1f91   :  { %7695 = vpow2.f32 %v2158_v46 }
0x1f9b   :  { %v7696_v63 = vpop.eup %7695 }
0x1f9c   :  { %v2160_v0 = vsel %vm1540_vm10, %v7696_v63, 0.0 }
0x1f9d   :  { %v2161_v2 = vrot.slane %v2160_v0, 4 }
0x1f9f   :  { %v2162_v3 = vadd.f32 %v2161_v2, %v2160_v0 }
0x1fa1   :  { %v2163_v6 = vrot.slane %v2162_v3, 2 }
0x1fa3   :  { %v2164_v12 = vadd.f32 %v2163_v6, %v2162_v3 }
0x1fa5   :  { %v2165_v14 = vrot.slane %v2164_v12, 1 }
0x1fa7   :  { %v2166_v16 = vadd.f32 %v2165_v14, %v2164_v12 }
0x1fa9   :  { %7697 = vrcp.f32 %v2166_v16 }
0x1fb3   :  { %v7698_v18 = vpop.eup %7697 }
0x1fb4   :  { %v2168_v20 = vmul.f32 %v7698_v18, %v7696_v63 }
0x1fb6   :  { %2171 = vperm.xlu1 %7632, %v2168_v20  }
0x2035   :  { %v2172_v22 = vpop.permute.xlu1 %2171 }
0x2036   :  { %v2174_v23 = vmul.f32 %v2172_v22, %v8653_v51 }
0x2038   :  { %v2175_v24 = vsel %vm280_vm2, %v2174_v23, 0.0 }
0x2039   :  { %v2176_v26 = vrot.slane %v2175_v24, 4 }
0x203b   :  { %v2177_v27 = vadd.f32 %v2176_v26, %v2175_v24 }
0x203d   :  { %v2178_v59 = vrot.slane %v2177_v27, 2 }
0x203f   :  { %v2179_v28 = vadd.f32 %v2178_v59, %v2177_v27 }
0x2041   :  { %v2180_v29 = vrot.slane %v2179_v28, 1 }
0x2043   :  { %v2181_v30 = vadd.f32 %v2180_v29, %v2179_v28 }
0x2045   :  { %6767 = vmatmul.mubr.msk.f32.vlgmr.msra.gmra.mrb[18].mxu1 %vm280_vm2, %v2181_v30 }
0x2046   :  { %7365 = vmatpush3.bf16.msra.mxu1 %v8719_v11  ;;  %6788 = vmatprep.mubr.msk.f32.mxu1 %vm8115_vm0, %v8116_v10 }
0x2047   :  { %7366 = vmatprep.subr.bf16.mxu1 %v8114_v4 }
0x2049   :  { %v2324_v5 = vpop.f32.mrb[20].mxu0 }
0x204a   :  { %7368 = vmatpush3.bf16.msra.mxu1 %v8723_v17  ;;  %v6779_v7 = vpop.f32.mrb[21].mxu0 }
0x204b   :  { %7375 = vmatprep.subr.bf16.mxu1 %v8114_v4 }
0x204d   :  { %6789 = vmatmul.mubr.msk.f32.vlgmr.msra.gmra.mrb[20].mxu1 %vm280_vm2, %v8773_v62 }
0x204e   :  { %7377 = vmatpush3.bf16.msra.mxu1 %v8728_v19  ;;  %6806 = vmatprep.mubr.msk.f32.mxu1 %vm8115_vm0, %v8116_v10 }
0x204f   :  { %7384 = vmatprep.subr.bf16.mxu1 %v8114_v4 }
0x2118   :  { %v2251_v32 = vpop.f32.mrb[18].mxu1 }
0x2119   :  { %v2325_v33 = vadd.f32 %v2324_v5, %v2251_v32  ;;  %v6768_v36 = vpop.f32.mrb[19].mxu1 }
0x211b   :  { %v2328_v21 = vadd.f32 %v2325_v33, %v8742_v50 }
0x2120   :  { %v2395_v13 = vpop.f32.mrb[20].mxu1 }
0x2121   :  { %v2406_v37 = vadd.f32 %v2395_v13, %v8738_v25  ;;  %v6790_v34 = vpop.f32.mrb[21].mxu1  ;;  %v2399_v39 = vadd.f32 %v2395_v13, %v2328_v21 }
0x2123   :  { %2408 = vrot.lane.b32.xlu0 %v2406_v37, %s8117_s24  ;;  %v6186_v62 = vmul.f32 -1.442695, %v2399_v39  ;;  %v1923_v39 = vsel %vm1922_vm4, %v8803_v57, 0 }
0x2125   :  { %7699 = vpow2.f32 %v6186_v62 }
0x212f   :  { %v7700_v40 = vpop.eup %7699 }
0x2130   :  { %v2403_v43 = vadd.f32 1.0, %v7700_v40 }
0x2132   :  { %7701 = vrcp.f32 %v2403_v43 }
0x213c   :  { %v7702_v48 = vpop.eup %7701 }
0x213d   :  { %v2418_v63 = vsub.f32 1.0, %v7702_v48  ;;  %v2424_v2 = vmul.f32 %v7702_v48, %v8769_v60 }
0x2195   :  { %v2409_v52 = vpop.permute.xlu0 %2408 }
0x2196   :  { %v2411_v53 = vmul.f32 %v7702_v48, %v2409_v52 }
0x2198   :  { %2413 = vrot.lane.b32.xlu1 %v2411_v53, %s8117_s24 }
0x220a   :  { %v2414_v54 = vpop.permute.xlu1 %2413 }
0x220b   :  { %v2416_v56 = vadd.f32 %v2414_v54, %v2328_v21 }
0x220d   :  { %7703 = vtanh.f32 %v2416_v56 }
0x2217   :  { %v7704_v46 = vpop.eup %7703 }
0x2218   :  { %2420 = vrot.lane.b32.xlu1 %v7704_v46, %s8118_s2 }
0x228a   :  { %v2421_v0 = vpop.permute.xlu1 %2420 }
0x228b   :  { %v2423_v3 = vmul.f32 %v2421_v0, %v2418_v63 }
0x228d   :  { %v8853_v6 = vadd.f32 %v2424_v2, %v2423_v3 }
0x228f   :  { %2427 = vrot.lane.b32.xlu0 %v8853_v6, %s8118_s2 }
0x2301   :  { %v8857_v12 = vpop.permute.xlu0 %2427 }
0x2302   :  { %6800 = vmatmul.mubr.msk.f32.vlgmr.msra.gmra.mrb[22].mxu0 %vm280_vm2, %v8857_v12 }
0x2303   :  { %7380 = vmatpush3.bf16.msra.mxu0 %v8607_v31  ;;  %6817 = vmatprep.mubr.msk.f32.mxu0 %vm8115_vm0, %v8116_v10 }
0x2304   :  { %7381 = vmatprep.subr.bf16.mxu0 %v8114_v4 }
0x2307   :  { %7383 = vmatpush3.bf16.msra.mxu0 %v8613_v35 }
0x2308   :  { %7390 = vmatprep.subr.bf16.mxu0 %v8114_v4 }
0x230a   :  { %6818 = vmatmul.mubr.msk.f32.vlgmr.msra.gmra.mrb[24].mxu0 %vm280_vm2, %v8857_v12 }
0x230b   :  { %7392 = vmatpush3.bf16.msra.mxu0 %v8697_v38  ;;  %6839 = vmatprep.mubr.msk.f32.mxu0 %vm8115_vm0, %v8116_v10 }
0x230c   :  { %7393 = vmatprep.subr.bf16.mxu0 %v8114_v4 }
0x230f   :  { %7395 = vmatpush3.bf16.msra.mxu0 %v8704_v47 }
0x2310   :  { %7402 = vmatprep.subr.bf16.mxu0 %v8114_v4 }
0x23d5   :  { %v2497_v60 = vpop.f32.mrb[22].mxu0 }
0x23d6   :  { %v2498_v14 = vadd.f32 %v2497_v60, %v8791_v44  ;;  %v6801_v16 = vpop.f32.mrb[23].mxu0 }
0x23d8   :  { %v2501_v18 = vsel %vm1901_vm11, %v2498_v14, -inf }
0x23d9   :  { %2502 = vmax.xlane.f32.xlu1 %v2501_v18 }
0x23dd   :  { %v2665_v20 = vpop.f32.mrb[24].mxu0 }
0x23de   :  { %v6819_v22 = vpop.f32.mrb[25].mxu0  ;;  %v2666_v7 = vadd.f32 %v2665_v20, %v8680_v61 }
0x23e0   :  { %v2672_v32 = vrot.slane %v2666_v7, %v8683_v1 }
0x23e2   :  { %v2673_v36 = vadd.f32 %v2672_v32, %v8686_v8 }
0x23e4   :  { %7705 = vtanh.f32 %v2673_v36 }
0x23ee   :  { %v7706_v57 = vpop.eup %7705 }
0x2466   :  { %v2503_v23 = vpop.xlane.xlu1 %2502 }
0x2467   :  { %vm2504_vm1 = vcmp.ge.f32.partialorder %v2498_v14, %v2503_v23 }
0x2468   :  { %v2505_v24 = vsel %vm2504_vm1, %v8796_v9, 16  ;;  %vm3717_vm1 = vcmp.eq.s32.totalorder %v8796_v9, 3 }
0x2469   :  { %v2506_v26 = vsel %vm1901_vm11, %v2505_v24, 2147483647 }
0x246a   :  { %v2508_v27 = vshra.s32 %v2506_v26, 16  ;;  %v2507_v28 = vand.u32 65535, %v2506_v26 }
0x246c   :  { %v2510_v59 = vcvt.s32.f32 %v2508_v27  ;;  %v2509_v30 = vcvt.s32.f32 %v2507_v28 }
0x246e   :  { %2511 = vmin.xlane.f32.xlu0 %v2510_v59 }
0x24fb   :  { %v2512_v29 = vpop.xlane.xlu0 %2511 }
0x24fc   :  { %vm2513_vm3 = vcmp.eq.f32.partialorder %v2510_v59, %v2512_v29  ;;  %v2518_v33 = vcvt.f32.s32 %v2512_v29 }
0x24fd   :  { %v2514_v5 = vsel %vm2513_vm3, %v2509_v30, inf }
0x24fe   :  { %2515 = vmin.xlane.f32.xlu0 %v2514_v5  ;;  %v2519_v37 = vshll.u32 %v2518_v33, 16 }
0x258b   :  { %v2516_v13 = vpop.xlane.xlu0 %2515 }
0x258c   :  { %v2517_v34 = vcvt.f32.s32 %v2516_v13 }
0x258e   :  { %v2520_v21 = vadd.s32 %v2519_v37, %v2517_v34 }
0x2590   :  { %v8885_v62 = vsel %vm2521_vm5, %v2520_v21, %v1923_v39  ;;  %vm2523_vm6 = vcmp.eq.s32.totalorder %v8796_v9, %v2520_v21 }
0x2591   :  { %v6188_v40 = vsel %vm2523_vm6, 1.0, %v8116_v10  ;;  %vm4315_vm6 = vcmp.eq.s32.totalorder %v8796_v9, 4 }
0x2592   :  { %6807 = vmatmul.mubr.msk.f32.vlgmr.msra.gmra.mrb[22].mxu1 %vm1927_vm14, %v6188_v40 }
0x2593   :  { %7386 = vmatpush3.bf16.msra.mxu1 %v8668_v55  ;;  %6828 = vmatprep.mubr.msk.f32.mxu1 %vm8115_vm0, %v8116_v10 }
0x2594   :  { %7387 = vmatprep.subr.bf16.mxu1 %v8114_v4 }
0x2597   :  { %7389 = vmatpush3.bf16.msra.mxu1 %v8674_v58 }
0x2598   :  { %7396 = vmatprep.subr.bf16.mxu1 %v8114_v4 }
0x259a   :  { %6829 = vmatmul.mubr.msk.f32.vlgmr.msra.gmra.mrb[24].mxu1 %vm280_vm2, %v7706_v57 }
0x259b   :  { %7398 = vmatpush3.bf16.msra.mxu1 %v8699_v41  ;;  %6850 = vmatprep.mubr.msk.f32.mxu1 %vm8115_vm0, %v8116_v10 }
0x259c   :  { %7399 = vmatprep.subr.bf16.mxu1 %v8114_v4 }
0x259f   :  { %7401 = vmatpush3.bf16.msra.mxu1 %v8707_v49 }
0x25a0   :  { %7408 = vmatprep.subr.bf16.mxu1 %v8114_v4 }
0x2665   :  { %v2595_v43 = vpop.f32.mrb[22].mxu1 }
0x2666   :  { %v6808_v48 = vpop.f32.mrb[23].mxu1  ;;  %6851 = vmatmul.mubr.msk.f32.vlgmr.msra.gmra.mrb[26].mxu1 %vm280_vm2, %v2595_v43 }
0x2667   :  { %7410 = vmatpush3.bf16.msra.mxu1 %v8755_v42  ;;  %6872 = vmatprep.mubr.msk.f32.mxu1 %vm8115_vm0, %v8116_v10 }
0x2668   :  { %7411 = vmatprep.subr.bf16.mxu1 %v8114_v4 }
0x266b   :  { %7413 = vmatpush3.bf16.msra.mxu1 %v8761_v45 }
0x266c   :  { %7417 = vmatprep.subr.bf16.mxu1 %v8114_v4 }
0x266d   :  { %v2744_v52 = vpop.f32.mrb[24].mxu1 }
0x266e   :  { %v2745_v53 = vadd.f32 %v8692_v15, %v2744_v52  ;;  %v6830_v54 = vpop.f32.mrb[25].mxu1 }
0x2670   :  { %v2748_v56 = vsel %vm1540_vm10, %v2745_v53, -inf }
0x2671   :  { %v2749_v46 = vrot.slane %v2748_v56, 4 }
0x2673   :  { %v2750_v63 = vmax.f32 %v2748_v56, %v2749_v46 }
0x2675   :  { %v2751_v0 = vrot.slane %v2750_v63, 2 }
0x2677   :  { %v2752_v2 = vmax.f32 %v2750_v63, %v2751_v0 }
0x2679   :  { %v2753_v3 = vrot.slane %v2752_v2, 1 }
0x267b   :  { %v2754_v60 = vmax.f32 %v2752_v2, %v2753_v3 }
0x267d   :  { %v2755_v14 = vsub.f32 %v2745_v53, %v2754_v60 }
0x267f   :  { %v2756_v16 = vmul.f32 1.442695, %v2755_v14 }
0x2681   :  { %7707 = vpow2.f32 %v2756_v16 }
0x268b   :  { %v7708_v18 = vpop.eup %7707 }
0x268c   :  { %v2758_v20 = vsel %vm1540_vm10, %v7708_v18, 0.0 }
0x268d   :  { %v2759_v22 = vrot.slane %v2758_v20, 4 }
0x268f   :  { %v2760_v23 = vadd.f32 %v2759_v22, %v2758_v20 }
0x2691   :  { %v2761_v24 = vrot.slane %v2760_v23, 2 }
0x2693   :  { %v2762_v26 = vadd.f32 %v2761_v24, %v2760_v23 }
0x2695   :  { %v2763_v27 = vrot.slane %v2762_v26, 1 }
0x2697   :  { %v2764_v59 = vadd.f32 %v2763_v27, %v2762_v26 }
0x2699   :  { %7709 = vrcp.f32 %v2764_v59 }
0x26a3   :  { %v7710_v28 = vpop.eup %7709 }
0x26a4   :  { %v2766_v29 = vmul.f32 %v7710_v28, %v7708_v18 }
0x26a6   :  { %2769 = vperm.xlu1 %7632, %v2766_v29  }
0x2725   :  { %v2770_v30 = vpop.permute.xlu1 %2769 }
0x2726   :  { %v2772_v5 = vmul.f32 %v2770_v30, %v8653_v51 }
0x2728   :  { %v2773_v7 = vsel %vm280_vm2, %v2772_v5, 0.0 }
0x2729   :  { %v2774_v32 = vrot.slane %v2773_v7, 4 }
0x272b   :  { %v2775_v33 = vadd.f32 %v2774_v32, %v2773_v7 }
0x272d   :  { %v2776_v36 = vrot.slane %v2775_v33, 2 }
0x272f   :  { %v2777_v13 = vadd.f32 %v2776_v36, %v2775_v33 }
0x2731   :  { %v2778_v37 = vrot.slane %v2777_v13, 1 }
0x2733   :  { %v2779_v34 = vadd.f32 %v2778_v37, %v2777_v13 }
0x2735   :  { %6840 = vmatmul.mubr.msk.f32.vlgmr.msra.gmra.mrb[26].mxu0 %vm280_vm2, %v2779_v34 }
0x2736   :  { %7404 = vmatpush3.bf16.msra.mxu0 %v8719_v11  ;;  %6861 = vmatprep.mubr.msk.f32.mxu0 %vm8115_vm0, %v8116_v10 }
0x2737   :  { %7405 = vmatprep.subr.bf16.mxu0 %v8114_v4 }
0x2739   :  { %v2922_v21 = vpop.f32.mrb[26].mxu1 }
0x273a   :  { %7407 = vmatpush3.bf16.msra.mxu0 %v8723_v17  ;;  %v6852_v51 = vpop.f32.mrb[27].mxu1 }
0x273b   :  { %7414 = vmatprep.subr.bf16.mxu0 %v8114_v4 }
0x273d   :  { %6862 = vmatmul.mubr.msk.f32.vlgmr.msra.gmra.mrb[28].mxu0 %vm280_vm2, %v8857_v12 }
0x273e   :  { %7416 = vmatpush3.bf16.msra.mxu0 %v8728_v19  ;;  %6879 = vmatprep.mubr.msk.f32.mxu0 %vm8115_vm0, %v8116_v10 }
0x273f   :  { %7423 = vmatprep.subr.bf16.mxu0 %v8114_v4 }
0x2808   :  { %v2849_v39 = vpop.f32.mrb[26].mxu0 }
0x2809   :  { %v2923_v40 = vadd.f32 %v2922_v21, %v2849_v39  ;;  %v6841_v57 = vpop.f32.mrb[27].mxu0 }
0x280b   :  { %v2926_v53 = vadd.f32 %v2923_v40, %v8742_v50 }
0x2810   :  { %v2993_v43 = vpop.f32.mrb[28].mxu0 }
0x2811   :  { %v3004_v48 = vadd.f32 %v2993_v43, %v8738_v25  ;;  %v6863_v52 = vpop.f32.mrb[29].mxu0  ;;  %v2997_v54 = vadd.f32 %v2993_v43, %v2926_v53 }
0x2813   :  { %3006 = vrot.lane.b32.xlu0 %v3004_v48, %s8117_s24  ;;  %v6195_v12 = vmul.f32 -1.442695, %v2997_v54 }
0x2815   :  { %7711 = vpow2.f32 %v6195_v12 }
0x281f   :  { %v7712_v56 = vpop.eup %7711 }
0x2820   :  { %v3001_v46 = vadd.f32 1.0, %v7712_v56 }
0x2822   :  { %7713 = vrcp.f32 %v3001_v46 }
0x282c   :  { %v7714_v63 = vpop.eup %7713 }
0x282d   :  { %v3016_v16 = vsub.f32 1.0, %v7714_v63  ;;  %v3022_v20 = vmul.f32 %v7714_v63, %v8853_v6 }
0x2885   :  { %v3007_v0 = vpop.permute.xlu0 %3006 }
0x2886   :  { %v3009_v2 = vmul.f32 %v7714_v63, %v3007_v0 }
0x2888   :  { %3011 = vrot.lane.b32.xlu1 %v3009_v2, %s8117_s24 }
0x28fa   :  { %v3012_v3 = vpop.permute.xlu1 %3011 }
0x28fb   :  { %v3014_v60 = vadd.f32 %v3012_v3, %v2926_v53 }
0x28fd   :  { %7715 = vtanh.f32 %v3014_v60 }
0x2907   :  { %v7716_v14 = vpop.eup %7715 }
0x2908   :  { %3018 = vrot.lane.b32.xlu1 %v7716_v14, %s8118_s2 }
0x297a   :  { %v3019_v18 = vpop.permute.xlu1 %3018 }
0x297b   :  { %v3021_v22 = vmul.f32 %v3019_v18, %v3016_v16 }
0x297d   :  { %v8934_v23 = vadd.f32 %v3022_v20, %v3021_v22 }
0x297f   :  { %3025 = vrot.lane.b32.xlu0 %v8934_v23, %s8118_s2 }
0x29f1   :  { %v8938_v24 = vpop.permute.xlu0 %3025 }
0x29f2   :  { %6873 = vmatmul.mubr.msk.f32.vlgmr.msra.gmra.mrb[28].mxu1 %vm280_vm2, %v8938_v24 }
0x29f3   :  { %7419 = vmatpush3.bf16.msra.mxu1 %v8607_v31  ;;  %6890 = vmatprep.mubr.msk.f32.mxu1 %vm8115_vm0, %v8116_v10 }
0x29f4   :  { %7420 = vmatprep.subr.bf16.mxu1 %v8114_v4 }
0x29f7   :  { %7422 = vmatpush3.bf16.msra.mxu1 %v8613_v35 }
0x29f8   :  { %7429 = vmatprep.subr.bf16.mxu1 %v8114_v4 }
0x29fa   :  { %6891 = vmatmul.mubr.msk.f32.vlgmr.msra.gmra.mrb[30].mxu1 %vm280_vm2, %v8938_v24 }
0x29fb   :  { %7431 = vmatpush3.bf16.msra.mxu1 %v8697_v38  ;;  %6912 = vmatprep.mubr.msk.f32.mxu1 %vm8115_vm0, %v8116_v10 }
0x29fc   :  { %7432 = vmatprep.subr.bf16.mxu1 %v8114_v4 }
0x29ff   :  { %7434 = vmatpush3.bf16.msra.mxu1 %v8704_v47 }
0x2a00   :  { %7441 = vmatprep.subr.bf16.mxu1 %v8114_v4 }
0x2ac5   :  { %v3095_v6 = vpop.f32.mrb[28].mxu1 }
0x2ac6   :  { %v3096_v26 = vadd.f32 %v3095_v6, %v8791_v44  ;;  %v6874_v27 = vpop.f32.mrb[29].mxu1 }
0x2ac8   :  { %v3099_v59 = vsel %vm1901_vm11, %v3096_v26, -inf }
0x2ac9   :  { %3100 = vmax.xlane.f32.xlu1 %v3099_v59 }
0x2acd   :  { %v3263_v28 = vpop.f32.mrb[30].mxu1 }
0x2ace   :  { %v6892_v29 = vpop.f32.mrb[31].mxu1  ;;  %v3264_v21 = vadd.f32 %v3263_v28, %v8680_v61 }
0x2ad0   :  { %v3270_v51 = vrot.slane %v3264_v21, %v8683_v1 }
0x2ad2   :  { %v3271_v40 = vadd.f32 %v3270_v51, %v8686_v8 }
0x2ad4   :  { %7717 = vtanh.f32 %v3271_v40 }
0x2ade   :  { %v7718_v61 = vpop.eup %7717 }
0x2b56   :  { %v3101_v30 = vpop.xlane.xlu1 %3100 }
0x2b57   :  { %vm3102_vm7 = vcmp.ge.f32.partialorder %v3096_v26, %v3101_v30 }
0x2b58   :  { %v3103_v5 = vsel %vm3102_vm7, %v8796_v9, 16 }
0x2b59   :  { %v3104_v7 = vsel %vm1901_vm11, %v3103_v5, 2147483647 }
0x2b5a   :  { %v3106_v32 = vshra.s32 %v3104_v7, 16  ;;  %v3105_v36 = vand.u32 65535, %v3104_v7 }
0x2b5c   :  { %v3108_v33 = vcvt.s32.f32 %v3106_v32  ;;  %v3107_v37 = vcvt.s32.f32 %v3105_v36 }
0x2b5e   :  { %3109 = vmin.xlane.f32.xlu0 %v3108_v33 }
0x2beb   :  { %v3110_v13 = vpop.xlane.xlu0 %3109 }
0x2bec   :  { %vm3111_vm8 = vcmp.eq.f32.partialorder %v3108_v33, %v3110_v13  ;;  %v3116_v39 = vcvt.f32.s32 %v3110_v13  ;;  %v8993_v33 = vld [vmem:[#allocation3] sm:$0xff] }
0x2bed   :  { %v3112_v34 = vsel %vm3111_vm8, %v3107_v37, inf }
0x2bee   :  { %3113 = vmin.xlane.f32.xlu0 %v3112_v34  ;;  %v3117_v43 = vshll.u32 %v3116_v39, 16 }
0x2c7b   :  { %v3114_v57 = vpop.xlane.xlu0 %3113 }
0x2c7c   :  { %v3115_v48 = vcvt.f32.s32 %v3114_v57 }
0x2c7e   :  { %v3118_v52 = vadd.s32 %v3117_v43, %v3115_v48 }
0x2c80   :  { %v8965_v53 = vsel %vm3119_vm9, %v3118_v52, %v8885_v62  ;;  %vm3121_vm12 = vcmp.eq.s32.totalorder %v8796_v9, %v3118_v52 }
0x2c81   :  { %v6197_v54 = vsel %vm3121_vm12, 1.0, %v8116_v10  ;;  %vm4913_vm12 = vcmp.eq.s32.totalorder %v8796_v9, 5 }
0x2c82   :  { %6880 = vmatmul.mubr.msk.f32.vlgmr.msra.gmra.mrb[30].mxu0 %vm1927_vm14, %v6197_v54 }
0x2c83   :  { %7425 = vmatpush3.bf16.msra.mxu0 %v8668_v55  ;;  %6901 = vmatprep.mubr.msk.f32.mxu0 %vm8115_vm0, %v8116_v10 }
0x2c84   :  { %7426 = vmatprep.subr.bf16.mxu0 %v8114_v4 }
0x2c87   :  { %7428 = vmatpush3.bf16.msra.mxu0 %v8674_v58 }
0x2c88   :  { %7435 = vmatprep.subr.bf16.mxu0 %v8114_v4 }
0x2c8a   :  { %6902 = vmatmul.mubr.msk.f32.vlgmr.msra.gmra.mrb[32].mxu0 %vm280_vm2, %v7718_v61 }
0x2c8b   :  { %7437 = vmatpush3.bf16.msra.mxu0 %v8699_v41  ;;  %6923 = vmatprep.mubr.msk.f32.mxu0 %vm8115_vm0, %v8116_v10 }
0x2c8c   :  { %7438 = vmatprep.subr.bf16.mxu0 %v8114_v4 }
0x2c8f   :  { %7440 = vmatpush3.bf16.msra.mxu0 %v8707_v49 }
0x2c90   :  { %7447 = vmatprep.subr.bf16.mxu0 %v8114_v4 }
0x2d55   :  { %v3193_v62 = vpop.f32.mrb[30].mxu0 }
0x2d56   :  { %v6881_v12 = vpop.f32.mrb[31].mxu0  ;;  %6924 = vmatmul.mubr.msk.f32.vlgmr.msra.gmra.mrb[34].mxu0 %vm280_vm2, %v3193_v62 }
0x2d57   :  { %7449 = vmatpush3.bf16.msra.mxu0 %v8755_v42  ;;  %6945 = vmatprep.mubr.msk.f32.mxu0 %vm8115_vm0, %v8116_v10 }
0x2d58   :  { %7450 = vmatprep.subr.bf16.mxu0 %v8114_v4 }
0x2d5b   :  { %7452 = vmatpush3.bf16.msra.mxu0 %v8761_v45 }
0x2d5c   :  { %7456 = vmatprep.subr.bf16.mxu0 %v8114_v4 }
0x2d5d   :  { %v3342_v56 = vpop.f32.mrb[32].mxu0 }
0x2d5e   :  { %v3343_v46 = vadd.f32 %v8692_v15, %v3342_v56  ;;  %v6903_v63 = vpop.f32.mrb[33].mxu0 }
0x2d60   :  { %v3346_v0 = vsel %vm1540_vm10, %v3343_v46, -inf }
0x2d61   :  { %v3347_v2 = vrot.slane %v3346_v0, 4 }
0x2d63   :  { %v3348_v3 = vmax.f32 %v3346_v0, %v3347_v2 }
0x2d65   :  { %v3349_v60 = vrot.slane %v3348_v3, 2 }
0x2d67   :  { %v3350_v14 = vmax.f32 %v3348_v3, %v3349_v60 }
0x2d69   :  { %v3351_v16 = vrot.slane %v3350_v14, 1 }
0x2d6b   :  { %v3352_v18 = vmax.f32 %v3350_v14, %v3351_v16 }
0x2d6d   :  { %v3353_v20 = vsub.f32 %v3343_v46, %v3352_v18 }
0x2d6f   :  { %v3354_v22 = vmul.f32 1.442695, %v3353_v20 }
0x2d71   :  { %7719 = vpow2.f32 %v3354_v22 }
0x2d7b   :  { %v7720_v6 = vpop.eup %7719 }
0x2d7c   :  { %v3356_v26 = vsel %vm1540_vm10, %v7720_v6, 0.0 }
0x2d7d   :  { %v3357_v27 = vrot.slane %v3356_v26, 4 }
0x2d7f   :  { %v3358_v59 = vadd.f32 %v3357_v27, %v3356_v26 }
0x2d81   :  { %v3359_v28 = vrot.slane %v3358_v59, 2 }
0x2d83   :  { %v3360_v29 = vadd.f32 %v3359_v28, %v3358_v59 }
0x2d85   :  { %v3361_v15 = vrot.slane %v3360_v29, 1 }
0x2d87   :  { %v3362_v30 = vadd.f32 %v3361_v15, %v3360_v29 }
0x2d89   :  { %7721 = vrcp.f32 %v3362_v30 }
0x2d93   :  { %v7722_v5 = vpop.eup %7721 }
0x2d94   :  { %v3364_v7 = vmul.f32 %v7722_v5, %v7720_v6 }
0x2d96   :  { %3367 = vperm.xlu1 %7632, %v3364_v7  }
0x2e15   :  { %v3368_v32 = vpop.permute.xlu1 %3367 }
0x2e16   :  { %v3370_v36 = vmul.f32 %v8993_v33, %v3368_v32 }
0x2e18   :  { %v3371_v13 = vsel %vm280_vm2, %v3370_v36, 0.0 }
0x2e19   :  { %v3372_v37 = vrot.slane %v3371_v13, 4 }
0x2e1b   :  { %v3373_v34 = vadd.f32 %v3372_v37, %v3371_v13 }
0x2e1d   :  { %v3374_v21 = vrot.slane %v3373_v34, 2 }
0x2e1f   :  { %v3375_v51 = vadd.f32 %v3374_v21, %v3373_v34 }
0x2e21   :  { %v3376_v39 = vrot.slane %v3375_v51, 1 }
0x2e23   :  { %v3377_v40 = vadd.f32 %v3376_v39, %v3375_v51  ;;  %v9042_v51 = vld [vmem:[#allocation15] sm:$0x1] }
0x2e25   :  { %6913 = vmatmul.mubr.msk.f32.vlgmr.msra.gmra.mrb[32].mxu1 %vm280_vm2, %v3377_v40 }
0x2e26   :  { %7443 = vmatpush3.bf16.msra.mxu1 %v8719_v11  ;;  %6934 = vmatprep.mubr.msk.f32.mxu1 %vm8115_vm0, %v8116_v10 }
0x2e27   :  { %7444 = vmatprep.subr.bf16.mxu1 %v8114_v4 }
0x2e29   :  { %v3520_v57 = vpop.f32.mrb[34].mxu0 }
0x2e2a   :  { %7446 = vmatpush3.bf16.msra.mxu1 %v8723_v17  ;;  %v6925_v43 = vpop.f32.mrb[35].mxu0 }
0x2e2b   :  { %7453 = vmatprep.subr.bf16.mxu1 %v8114_v4 }
0x2e2d   :  { %6935 = vmatmul.mubr.msk.f32.vlgmr.msra.gmra.mrb[34].mxu1 %vm280_vm2, %v8938_v24 }
0x2e2e   :  { %7455 = vmatpush3.bf16.msra.mxu1 %v8728_v19  ;;  %6952 = vmatprep.mubr.msk.f32.mxu1 %vm8115_vm0, %v8116_v10 }
0x2e2f   :  { %7462 = vmatprep.subr.bf16.mxu1 %v8114_v4 }
0x2ef8   :  { %v3447_v48 = vpop.f32.mrb[32].mxu1 }
0x2ef9   :  { %v3521_v52 = vadd.f32 %v3520_v57, %v3447_v48  ;;  %v6914_v54 = vpop.f32.mrb[33].mxu1 }
0x2efb   :  { %v3524_v56 = vadd.f32 %v3521_v52, %v8742_v50 }
0x2f00   :  { %v3591_v61 = vpop.f32.mrb[34].mxu1 }
0x2f01   :  { %v3602_v62 = vadd.f32 %v3591_v61, %v8738_v25  ;;  %v6936_v12 = vpop.f32.mrb[35].mxu1  ;;  %v3595_v46 = vadd.f32 %v3591_v61, %v3524_v56 }
0x2f03   :  { %3604 = vrot.lane.b32.xlu0 %v3602_v62, %s8117_s24  ;;  %v6204_v24 = vmul.f32 -1.442695, %v3595_v46 }
0x2f05   :  { %7723 = vpow2.f32 %v6204_v24 }
0x2f0f   :  { %v7724_v63 = vpop.eup %7723 }
0x2f10   :  { %v3599_v0 = vadd.f32 1.0, %v7724_v63  ;;  %v9074_v63 = vld [vmem:[#allocation4] ss:$0 sm:$0xff] }
0x2f12   :  { %7725 = vrcp.f32 %v3599_v0 }
0x2f1c   :  { %v7726_v2 = vpop.eup %7725 }
0x2f1d   :  { %v3614_v20 = vsub.f32 1.0, %v7726_v2  ;;  %v3620_v50 = vmul.f32 %v7726_v2, %v8934_v23 }
0x2f75   :  { %v3605_v3 = vpop.permute.xlu0 %3604 }
0x2f76   :  { %v3607_v60 = vmul.f32 %v7726_v2, %v3605_v3 }
0x2f78   :  { %3609 = vrot.lane.b32.xlu1 %v3607_v60, %s8117_s24 }
0x2fea   :  { %v3610_v14 = vpop.permute.xlu1 %3609 }
0x2feb   :  { %v3612_v16 = vadd.f32 %v3610_v14, %v3524_v56 }
0x2fed   :  { %7727 = vtanh.f32 %v3612_v16 }
0x2ff7   :  { %v7728_v18 = vpop.eup %7727 }
0x2ff8   :  { %3616 = vrot.lane.b32.xlu1 %v7728_v18, %s8118_s2 }
0x306a   :  { %v3617_v22 = vpop.permute.xlu1 %3616 }
0x306b   :  { %v3619_v6 = vmul.f32 %v3617_v22, %v3614_v20 }
0x306d   :  { %v9016_v26 = vadd.f32 %v3620_v50, %v3619_v6 }
0x306f   :  { %3623 = vrot.lane.b32.xlu0 %v9016_v26, %s8118_s2 }
0x30e1   :  { %v9020_v27 = vpop.permute.xlu0 %3623 }
0x30e2   :  { %6946 = vmatmul.mubr.msk.f32.vlgmr.msra.gmra.mrb[36].mxu0 %vm280_vm2, %v9020_v27 }
0x30e3   :  { %7458 = vmatpush3.bf16.msra.mxu0 %v8607_v31  ;;  %6963 = vmatprep.mubr.msk.f32.mxu0 %vm8115_vm0, %v8116_v10 }
0x30e4   :  { %7459 = vmatprep.subr.bf16.mxu0 %v8114_v4 }
0x30e7   :  { %7461 = vmatpush3.bf16.msra.mxu0 %v8613_v35 }
0x30e8   :  { %7468 = vmatprep.subr.bf16.mxu0 %v8114_v4 }
0x30ea   :  { %6964 = vmatmul.mubr.msk.f32.vlgmr.msra.gmra.mrb[38].mxu0 %vm280_vm2, %v9020_v27 }
0x30eb   :  { %7470 = vmatpush3.bf16.msra.mxu0 %v8697_v38  ;;  %6985 = vmatprep.mubr.msk.f32.mxu0 %vm8115_vm0, %v8116_v10 }
0x30ec   :  { %7471 = vmatprep.subr.bf16.mxu0 %v8114_v4 }
0x30ef   :  { %7473 = vmatpush3.bf16.msra.mxu0 %v8704_v47 }
0x30f0   :  { %7480 = vmatprep.subr.bf16.mxu0 %v8114_v4 }
0x31b5   :  { %v3693_v23 = vpop.f32.mrb[36].mxu0 }
0x31b6   :  { %v3694_v59 = vadd.f32 %v3693_v23, %v8791_v44  ;;  %v6947_v28 = vpop.f32.mrb[37].mxu0 }
0x31b8   :  { %v3697_v29 = vsel %vm1901_vm11, %v3694_v59, -inf }
0x31b9   :  { %3698 = vmax.xlane.f32.xlu1 %v3697_v29 }
0x31bd   :  { %v3861_v15 = vpop.f32.mrb[38].mxu0 }
0x31be   :  { %v6965_v30 = vpop.f32.mrb[39].mxu0  ;;  %v3862_v39 = vadd.f32 %v9042_v51, %v3861_v15 }
0x31c0   :  { %v3868_v40 = vrot.slane %v3862_v39, %v8683_v1 }
0x31c2   :  { %v3869_v43 = vadd.f32 %v3868_v40, %v8686_v8 }
0x31c4   :  { %7729 = vtanh.f32 %v3869_v43 }
0x31ce   :  { %v7730_v56 = vpop.eup %7729 }
0x3246   :  { %v3699_v5 = vpop.xlane.xlu1 %3698 }
0x3247   :  { %vm3700_vm13 = vcmp.ge.f32.partialorder %v3694_v59, %v3699_v5 }
0x3248   :  { %v3701_v7 = vsel %vm3700_vm13, %v8796_v9, 16 }
0x3249   :  { %v3702_v32 = vsel %vm1901_vm11, %v3701_v7, 2147483647 }
0x324a   :  { %v3704_v36 = vshra.s32 %v3702_v32, 16  ;;  %v3703_v37 = vand.u32 65535, %v3702_v32 }
0x324c   :  { %v3706_v13 = vcvt.s32.f32 %v3704_v36  ;;  %v3705_v21 = vcvt.s32.f32 %v3703_v37 }
0x324e   :  { %3707 = vmin.xlane.f32.xlu0 %v3706_v13 }
0x32db   :  { %v3708_v34 = vpop.xlane.xlu0 %3707 }
0x32dc   :  { %vm3709_vm15 = vcmp.eq.f32.partialorder %v3706_v13, %v3708_v34  ;;  %v3714_v57 = vcvt.f32.s32 %v3708_v34 }
0x32dd   :  { %v3710_v44 = vsel %vm3709_vm15, %v3705_v21, inf }
0x32de   :  { %3711 = vmin.xlane.f32.xlu0 %v3710_v44  ;;  %v3715_v52 = vshll.u32 %v3714_v57, 16 }
0x336b   :  { %v3712_v48 = vpop.xlane.xlu0 %3711 }
0x336c   :  { %v3713_v54 = vcvt.f32.s32 %v3712_v48 }
0x336e   :  { %v3716_v61 = vadd.s32 %v3715_v52, %v3713_v54 }
0x3370   :  { %v9049_v62 = vsel %vm3717_vm1, %v3716_v61, %v8965_v53  ;;  %vm3719_vm3 = vcmp.eq.s32.totalorder %v8796_v9, %v3716_v61 }
0x3371   :  { %v6206_v12 = vsel %vm3719_vm3, 1.0, %v8116_v10  ;;  %vm5511_vm3 = vcmp.eq.s32.totalorder %v8796_v9, 6 }
0x3372   :  { %6953 = vmatmul.mubr.msk.f32.vlgmr.msra.gmra.mrb[36].mxu1 %vm1927_vm14, %v6206_v12 }
0x3373   :  { %7464 = vmatpush3.bf16.msra.mxu1 %v8668_v55  ;;  %6974 = vmatprep.mubr.msk.f32.mxu1 %vm8115_vm0, %v8116_v10 }
0x3374   :  { %7465 = vmatprep.subr.bf16.mxu1 %v8114_v4 }
0x3377   :  { %7467 = vmatpush3.bf16.msra.mxu1 %v8674_v58 }
0x3378   :  { %7474 = vmatprep.subr.bf16.mxu1 %v8114_v4 }
0x337a   :  { %6975 = vmatmul.mubr.msk.f32.vlgmr.msra.gmra.mrb[38].mxu1 %vm280_vm2, %v7730_v56 }
0x337b   :  { %7476 = vmatpush3.bf16.msra.mxu1 %v8699_v41  ;;  %6996 = vmatprep.mubr.msk.f32.mxu1 %vm8115_vm0, %v8116_v10 }
0x337c   :  { %7477 = vmatprep.subr.bf16.mxu1 %v8114_v4 }
0x337f   :  { %7479 = vmatpush3.bf16.msra.mxu1 %v8707_v49 }
0x3380   :  { %7486 = vmatprep.subr.bf16.mxu1 %v8114_v4 }
0x3445   :  { %v3791_v53 = vpop.f32.mrb[36].mxu1 }
0x3446   :  { %v6954_v46 = vpop.f32.mrb[37].mxu1  ;;  %6997 = vmatmul.mubr.msk.f32.vlgmr.msra.gmra.mrb[40].mxu1 %vm280_vm2, %v3791_v53 }
0x3447   :  { %7488 = vmatpush3.bf16.msra.mxu1 %v8755_v42  ;;  %7018 = vmatprep.mubr.msk.f32.mxu1 %vm8115_vm0, %v8116_v10 }
0x3448   :  { %7489 = vmatprep.subr.bf16.mxu1 %v8114_v4 }
0x344b   :  { %7491 = vmatpush3.bf16.msra.mxu1 %v8761_v45 }
0x344c   :  { %7495 = vmatprep.subr.bf16.mxu1 %v8114_v4 }
0x344d   :  { %v3940_v24 = vpop.f32.mrb[38].mxu1 }
0x344e   :  { %v3941_v0 = vadd.f32 %v9074_v63, %v3940_v24  ;;  %v6976_v2 = vpop.f32.mrb[39].mxu1  ;;  %v9096_v24 = vld [vmem:[#allocation22] sm:$0x1] }
0x3450   :  { %v3944_v3 = vsel %vm1540_vm10, %v3941_v0, -inf }
0x3451   :  { %v3945_v60 = vrot.slane %v3944_v3, 4 }
0x3453   :  { %v3946_v14 = vmax.f32 %v3944_v3, %v3945_v60 }
0x3455   :  { %v3947_v16 = vrot.slane %v3946_v14, 2 }
0x3457   :  { %v3948_v18 = vmax.f32 %v3946_v14, %v3947_v16 }
0x3459   :  { %v3949_v20 = vrot.slane %v3948_v18, 1 }
0x345b   :  { %v3950_v22 = vmax.f32 %v3948_v18, %v3949_v20 }
0x345d   :  { %v3951_v50 = vsub.f32 %v3941_v0, %v3950_v22 }
0x345f   :  { %v3952_v6 = vmul.f32 1.442695, %v3951_v50 }
0x3461   :  { %7731 = vpow2.f32 %v3952_v6 }
0x346b   :  { %v7732_v23 = vpop.eup %7731 }
0x346c   :  { %v3954_v59 = vsel %vm1540_vm10, %v7732_v23, 0.0 }
0x346d   :  { %v3955_v28 = vrot.slane %v3954_v59, 4 }
0x346f   :  { %v3956_v29 = vadd.f32 %v3955_v28, %v3954_v59 }
0x3471   :  { %v3957_v15 = vrot.slane %v3956_v29, 2 }
0x3473   :  { %v3958_v30 = vadd.f32 %v3957_v15, %v3956_v29 }
0x3475   :  { %v3959_v5 = vrot.slane %v3958_v30, 1 }
0x3477   :  { %v3960_v7 = vadd.f32 %v3959_v5, %v3958_v30  ;;  %v9124_v30 = vld [vmem:[#allocation25] sm:$0x1] }
0x3479   :  { %7733 = vrcp.f32 %v3960_v7 }
0x3483   :  { %v7734_v32 = vpop.eup %7733 }
0x3484   :  { %v3962_v36 = vmul.f32 %v7734_v32, %v7732_v23 }
0x3486   :  { %3965 = vperm.xlu1 %7632, %v3962_v36  }
0x3505   :  { %v3966_v13 = vpop.permute.xlu1 %3965 }
0x3506   :  { %v3968_v37 = vmul.f32 %v8993_v33, %v3966_v13 }
0x3508   :  { %v3969_v34 = vsel %vm280_vm2, %v3968_v37, 0.0 }
0x3509   :  { %v3970_v21 = vrot.slane %v3969_v34, 4 }
0x350b   :  { %v3971_v44 = vadd.f32 %v3970_v21, %v3969_v34 }
0x350d   :  { %v3972_v39 = vrot.slane %v3971_v44, 2 }
0x350f   :  { %v3973_v40 = vadd.f32 %v3972_v39, %v3971_v44 }
0x3511   :  { %v3974_v57 = vrot.slane %v3973_v40, 1 }
0x3513   :  { %v3975_v43 = vadd.f32 %v3974_v57, %v3973_v40 }
0x3515   :  { %6986 = vmatmul.mubr.msk.f32.vlgmr.msra.gmra.mrb[40].mxu0 %vm280_vm2, %v3975_v43 }
0x3516   :  { %7482 = vmatpush3.bf16.msra.mxu0 %v8719_v11  ;;  %7007 = vmatprep.mubr.msk.f32.mxu0 %vm8115_vm0, %v8116_v10 }
0x3517   :  { %7483 = vmatprep.subr.bf16.mxu0 %v8114_v4 }
0x3519   :  { %v4118_v48 = vpop.f32.mrb[40].mxu1 }
0x351a   :  { %7485 = vmatpush3.bf16.msra.mxu0 %v8723_v17  ;;  %v6998_v52 = vpop.f32.mrb[41].mxu1 }
0x351b   :  { %7492 = vmatprep.subr.bf16.mxu0 %v8114_v4 }
0x351d   :  { %7008 = vmatmul.mubr.msk.f32.vlgmr.msra.gmra.mrb[42].mxu0 %vm280_vm2, %v9020_v27 }
0x351e   :  { %7494 = vmatpush3.bf16.msra.mxu0 %v8728_v19  ;;  %7025 = vmatprep.mubr.msk.f32.mxu0 %vm8115_vm0, %v8116_v10 }
0x351f   :  { %7501 = vmatprep.subr.bf16.mxu0 %v8114_v4 }
0x35e8   :  { %v4045_v54 = vpop.f32.mrb[40].mxu0 }
0x35e9   :  { %v4119_v61 = vadd.f32 %v4118_v48, %v4045_v54  ;;  %v6987_v12 = vpop.f32.mrb[41].mxu0 }
0x35eb   :  { %v4122_v27 = vadd.f32 %v9096_v24, %v4119_v61 }
0x35f0   :  { %v4189_v56 = vpop.f32.mrb[42].mxu0 }
0x35f1   :  { %v4200_v53 = vadd.f32 %v4189_v56, %v8738_v25  ;;  %v7009_v46 = vpop.f32.mrb[43].mxu0  ;;  %v4193_v0 = vadd.f32 %v4189_v56, %v4122_v27 }
0x35f3   :  { %4202 = vrot.lane.b32.xlu0 %v4200_v53, %s8117_s24  ;;  %v6213_v2 = vmul.f32 -1.442695, %v4193_v0 }
0x35f5   :  { %7735 = vpow2.f32 %v6213_v2 }
0x35ff   :  { %v7736_v3 = vpop.eup %7735 }
0x3600   :  { %v4197_v60 = vadd.f32 1.0, %v7736_v3 }
0x3602   :  { %7737 = vrcp.f32 %v4197_v60 }
0x360c   :  { %v7738_v14 = vpop.eup %7737 }
0x360d   :  { %v4212_v6 = vsub.f32 1.0, %v7738_v14  ;;  %v4218_v59 = vmul.f32 %v7738_v14, %v9016_v26 }
0x3665   :  { %v4203_v16 = vpop.permute.xlu0 %4202 }
0x3666   :  { %v4205_v18 = vmul.f32 %v7738_v14, %v4203_v16 }
0x3668   :  { %4207 = vrot.lane.b32.xlu1 %v4205_v18, %s8117_s24 }
0x36da   :  { %v4208_v20 = vpop.permute.xlu1 %4207 }
0x36db   :  { %v4210_v22 = vadd.f32 %v4208_v20, %v4122_v27 }
0x36dd   :  { %7739 = vtanh.f32 %v4210_v22 }
0x36e7   :  { %v7740_v50 = vpop.eup %7739 }
0x36e8   :  { %4214 = vrot.lane.b32.xlu1 %v7740_v50, %s8118_s2 }
0x375a   :  { %v4215_v23 = vpop.permute.xlu1 %4214 }
0x375b   :  { %v4217_v28 = vmul.f32 %v4215_v23, %v4212_v6 }
0x375d   :  { %v9102_v29 = vadd.f32 %v4218_v59, %v4217_v28 }
0x375f   :  { %4221 = vrot.lane.b32.xlu0 %v9102_v29, %s8118_s2 }
0x37d1   :  { %v9106_v15 = vpop.permute.xlu0 %4221 }
0x37d2   :  { %7019 = vmatmul.mubr.msk.f32.vlgmr.msra.gmra.mrb[42].mxu1 %vm280_vm2, %v9106_v15 }
0x37d3   :  { %7497 = vmatpush3.bf16.msra.mxu1 %v8607_v31  ;;  %7036 = vmatprep.mubr.msk.f32.mxu1 %vm8115_vm0, %v8116_v10 }
0x37d4   :  { %7498 = vmatprep.subr.bf16.mxu1 %v8114_v4 }
0x37d7   :  { %7500 = vmatpush3.bf16.msra.mxu1 %v8613_v35 }
0x37d8   :  { %7507 = vmatprep.subr.bf16.mxu1 %v8114_v4 }
0x37da   :  { %7037 = vmatmul.mubr.msk.f32.vlgmr.msra.gmra.mrb[44].mxu1 %vm280_vm2, %v9106_v15 }
0x37db   :  { %7509 = vmatpush3.bf16.msra.mxu1 %v8697_v38  ;;  %7058 = vmatprep.mubr.msk.f32.mxu1 %vm8115_vm0, %v8116_v10 }
0x37dc   :  { %7510 = vmatprep.subr.bf16.mxu1 %v8114_v4 }
0x37df   :  { %7512 = vmatpush3.bf16.msra.mxu1 %v8704_v47 }
0x37e0   :  { %7519 = vmatprep.subr.bf16.mxu1 %v8114_v4 }
0x38a5   :  { %v4291_v26 = vpop.f32.mrb[42].mxu1 }
0x38a6   :  { %v4292_v5 = vadd.f32 %v9124_v30, %v4291_v26  ;;  %v7020_v7 = vpop.f32.mrb[43].mxu1 }
0x38a8   :  { %v4295_v32 = vsel %vm1901_vm11, %v4292_v5, -inf }
0x38a9   :  { %4296 = vmax.xlane.f32.xlu1 %v4295_v32 }
0x38ad   :  { %v4459_v36 = vpop.f32.mrb[44].mxu1 }
0x38ae   :  { %v7038_v13 = vpop.f32.mrb[45].mxu1  ;;  %v4460_v52 = vadd.f32 %v9042_v51, %v4459_v36 }
0x38b0   :  { %v4466_v54 = vrot.slane %v4460_v52, %v8683_v1 }
0x38b2   :  { %v4467_v12 = vadd.f32 %v4466_v54, %v8686_v8 }
0x38b4   :  { %7741 = vtanh.f32 %v4467_v12 }
0x38be   :  { %v7742_v3 = vpop.eup %7741 }
0x3936   :  { %v4297_v37 = vpop.xlane.xlu1 %4296 }
0x3937   :  { %vm4298_vm4 = vcmp.ge.f32.partialorder %v4292_v5, %v4297_v37 }
0x3938   :  { %v4299_v34 = vsel %vm4298_vm4, %v8796_v9, 16 }
0x3939   :  { %v4300_v21 = vsel %vm1901_vm11, %v4299_v34, 2147483647 }
0x393a   :  { %v4302_v44 = vshra.s32 %v4300_v21, 16  ;;  %v4301_v40 = vand.u32 65535, %v4300_v21 }
0x393c   :  { %v4304_v39 = vcvt.s32.f32 %v4302_v44  ;;  %v4303_v43 = vcvt.s32.f32 %v4301_v40 }
0x393e   :  { %4305 = vmin.xlane.f32.xlu0 %v4304_v39 }
0x39cb   :  { %v4306_v57 = vpop.xlane.xlu0 %4305 }
0x39cc   :  { %vm4307_vm5 = vcmp.eq.f32.partialorder %v4304_v39, %v4306_v57  ;;  %v4312_v61 = vcvt.f32.s32 %v4306_v57 }
0x39cd   :  { %v4308_v48 = vsel %vm4307_vm5, %v4303_v43, inf }
0x39ce   :  { %4309 = vmin.xlane.f32.xlu0 %v4308_v48  ;;  %v4313_v53 = vshll.u32 %v4312_v61, 16 }
0x3a5b   :  { %v4310_v56 = vpop.xlane.xlu0 %4309 }
0x3a5c   :  { %v4311_v46 = vcvt.f32.s32 %v4310_v56 }
0x3a5e   :  { %v4314_v27 = vadd.s32 %v4313_v53, %v4311_v46 }
0x3a60   :  { %v9135_v0 = vsel %vm4315_vm6, %v4314_v27, %v9049_v62  ;;  %vm4317_vm7 = vcmp.eq.s32.totalorder %v8796_v9, %v4314_v27 }
0x3a61   :  { %v6215_v2 = vsel %vm4317_vm7, 1.0, %v8116_v10 }
0x3a62   :  { %7026 = vmatmul.mubr.msk.f32.vlgmr.msra.gmra.mrb[44].mxu0 %vm1927_vm14, %v6215_v2 }
0x3a63   :  { %7503 = vmatpush3.bf16.msra.mxu0 %v8668_v55  ;;  %7047 = vmatprep.mubr.msk.f32.mxu0 %vm8115_vm0, %v8116_v10 }
0x3a64   :  { %7504 = vmatprep.subr.bf16.mxu0 %v8114_v4 }
0x3a67   :  { %7506 = vmatpush3.bf16.msra.mxu0 %v8674_v58 }
0x3a68   :  { %7513 = vmatprep.subr.bf16.mxu0 %v8114_v4 }
0x3a6a   :  { %7048 = vmatmul.mubr.msk.f32.vlgmr.msra.gmra.mrb[46].mxu0 %vm280_vm2, %v7742_v3 }
0x3a6b   :  { %7515 = vmatpush3.bf16.msra.mxu0 %v8699_v41  ;;  %7069 = vmatprep.mubr.msk.f32.mxu0 %vm8115_vm0, %v8116_v10 }
0x3a6c   :  { %7516 = vmatprep.subr.bf16.mxu0 %v8114_v4 }
0x3a6f   :  { %7518 = vmatpush3.bf16.msra.mxu0 %v8707_v49 }
0x3a70   :  { %7525 = vmatprep.subr.bf16.mxu0 %v8114_v4 }
0x3b35   :  { %v4389_v62 = vpop.f32.mrb[44].mxu0 }
0x3b36   :  { %v7027_v60 = vpop.f32.mrb[45].mxu0  ;;  %7070 = vmatmul.mubr.msk.f32.vlgmr.msra.gmra.mrb[48].mxu0 %vm280_vm2, %v4389_v62 }
0x3b37   :  { %7527 = vmatpush3.bf16.msra.mxu0 %v8755_v42  ;;  %7091 = vmatprep.mubr.msk.f32.mxu0 %vm8115_vm0, %v8116_v10 }
0x3b38   :  { %7528 = vmatprep.subr.bf16.mxu0 %v8114_v4 }
0x3b3b   :  { %7530 = vmatpush3.bf16.msra.mxu0 %v8761_v45 }
0x3b3c   :  { %7534 = vmatprep.subr.bf16.mxu0 %v8114_v4 }
0x3b3d   :  { %v4538_v14 = vpop.f32.mrb[46].mxu0 }
0x3b3e   :  { %v4539_v16 = vadd.f32 %v9074_v63, %v4538_v14  ;;  %v7049_v18 = vpop.f32.mrb[47].mxu0 }
0x3b40   :  { %v4542_v20 = vsel %vm1540_vm10, %v4539_v16, -inf }
0x3b41   :  { %v4543_v22 = vrot.slane %v4542_v20, 4 }
0x3b43   :  { %v4544_v50 = vmax.f32 %v4542_v20, %v4543_v22 }
0x3b45   :  { %v4545_v6 = vrot.slane %v4544_v50, 2 }
0x3b47   :  { %v4546_v23 = vmax.f32 %v4544_v50, %v4545_v6 }
0x3b49   :  { %v4547_v59 = vrot.slane %v4546_v23, 1 }
0x3b4b   :  { %v4548_v28 = vmax.f32 %v4546_v23, %v4547_v59 }
0x3b4d   :  { %v4549_v26 = vsub.f32 %v4539_v16, %v4548_v28 }
0x3b4f   :  { %v4550_v5 = vmul.f32 1.442695, %v4549_v26 }
0x3b51   :  { %7743 = vpow2.f32 %v4550_v5 }
0x3b5b   :  { %v7744_v7 = vpop.eup %7743 }
0x3b5c   :  { %v4552_v32 = vsel %vm1540_vm10, %v7744_v7, 0.0 }
0x3b5d   :  { %v4553_v36 = vrot.slane %v4552_v32, 4 }
0x3b5f   :  { %v4554_v13 = vadd.f32 %v4553_v36, %v4552_v32 }
0x3b61   :  { %v4555_v37 = vrot.slane %v4554_v13, 2 }
0x3b63   :  { %v4556_v34 = vadd.f32 %v4555_v37, %v4554_v13 }
0x3b65   :  { %v4557_v21 = vrot.slane %v4556_v34, 1 }
0x3b67   :  { %v4558_v44 = vadd.f32 %v4557_v21, %v4556_v34 }
0x3b69   :  { %7745 = vrcp.f32 %v4558_v44 }
0x3b73   :  { %v7746_v39 = vpop.eup %7745 }
0x3b74   :  { %v4560_v40 = vmul.f32 %v7746_v39, %v7744_v7 }
0x3b76   :  { %4563 = vperm.xlu1 %7632, %v4560_v40  }
0x3bf5   :  { %v4564_v57 = vpop.permute.xlu1 %4563 }
0x3bf6   :  { %v4566_v43 = vmul.f32 %v8993_v33, %v4564_v57 }
0x3bf8   :  { %v4567_v48 = vsel %vm280_vm2, %v4566_v43, 0.0 }
0x3bf9   :  { %v4568_v52 = vrot.slane %v4567_v48, 4 }
0x3bfb   :  { %v4569_v54 = vadd.f32 %v4568_v52, %v4567_v48 }
0x3bfd   :  { %v4570_v61 = vrot.slane %v4569_v54, 2 }
0x3bff   :  { %v4571_v12 = vadd.f32 %v4570_v61, %v4569_v54 }
0x3c01   :  { %v4572_v56 = vrot.slane %v4571_v12, 1 }
0x3c03   :  { %v4573_v53 = vadd.f32 %v4572_v56, %v4571_v12 }
0x3c05   :  { %7059 = vmatmul.mubr.msk.f32.vlgmr.msra.gmra.mrb[46].mxu1 %vm280_vm2, %v4573_v53 }
0x3c06   :  { %7521 = vmatpush3.bf16.msra.mxu1 %v8719_v11  ;;  %7080 = vmatprep.mubr.msk.f32.mxu1 %vm8115_vm0, %v8116_v10 }
0x3c07   :  { %7522 = vmatprep.subr.bf16.mxu1 %v8114_v4 }
0x3c09   :  { %v4716_v46 = vpop.f32.mrb[48].mxu0 }
0x3c0a   :  { %7524 = vmatpush3.bf16.msra.mxu1 %v8723_v17  ;;  %v7071_v27 = vpop.f32.mrb[49].mxu0 }
0x3c0b   :  { %7531 = vmatprep.subr.bf16.mxu1 %v8114_v4 }
0x3c0d   :  { %7081 = vmatmul.mubr.msk.f32.vlgmr.msra.gmra.mrb[48].mxu1 %vm280_vm2, %v9106_v15 }
0x3c0e   :  { %7533 = vmatpush3.bf16.msra.mxu1 %v8728_v19  ;;  %7098 = vmatprep.mubr.msk.f32.mxu1 %vm8115_vm0, %v8116_v10 }
0x3c0f   :  { %7540 = vmatprep.subr.bf16.mxu1 %v8114_v4 }
0x3cd8   :  { %v4643_v2 = vpop.f32.mrb[46].mxu1 }
0x3cd9   :  { %v4717_v3 = vadd.f32 %v4716_v46, %v4643_v2  ;;  %v7060_v62 = vpop.f32.mrb[47].mxu1 }
0x3cdb   :  { %v4720_v18 = vadd.f32 %v9096_v24, %v4717_v3 }
0x3ce0   :  { %v4787_v60 = vpop.f32.mrb[48].mxu1 }
0x3ce1   :  { %v4798_v14 = vadd.f32 %v4787_v60, %v8738_v25  ;;  %v7082_v16 = vpop.f32.mrb[49].mxu1  ;;  %v4791_v20 = vadd.f32 %v4787_v60, %v4720_v18 }
0x3ce3   :  { %4800 = vrot.lane.b32.xlu0 %v4798_v14, %s8117_s24  ;;  %v6222_v15 = vmul.f32 -1.442695, %v4791_v20 }
0x3ce5   :  { %7747 = vpow2.f32 %v6222_v15 }
0x3cef   :  { %v7748_v22 = vpop.eup %7747 }
0x3cf0   :  { %v4795_v50 = vadd.f32 1.0, %v7748_v22 }
0x3cf2   :  { %7749 = vrcp.f32 %v4795_v50 }
0x3cfc   :  { %v7750_v6 = vpop.eup %7749 }
0x3cfd   :  { %v4810_v7 = vsub.f32 1.0, %v7750_v6  ;;  %v4816_v36 = vmul.f32 %v7750_v6, %v9102_v29 }
0x3d55   :  { %v4801_v23 = vpop.permute.xlu0 %4800 }
0x3d56   :  { %v4803_v59 = vmul.f32 %v7750_v6, %v4801_v23 }
0x3d58   :  { %4805 = vrot.lane.b32.xlu1 %v4803_v59, %s8117_s24 }
0x3dca   :  { %v4806_v28 = vpop.permute.xlu1 %4805 }
0x3dcb   :  { %v4808_v26 = vadd.f32 %v4806_v28, %v4720_v18 }
0x3dcd   :  { %7751 = vtanh.f32 %v4808_v26 }
0x3dd7   :  { %v7752_v5 = vpop.eup %7751 }
0x3dd8   :  { %4812 = vrot.lane.b32.xlu1 %v7752_v5, %s8118_s2 }
0x3e4a   :  { %v4813_v32 = vpop.permute.xlu1 %4812 }
0x3e4b   :  { %v4815_v13 = vmul.f32 %v4813_v32, %v4810_v7 }
0x3e4d   :  { %v9184_v37 = vadd.f32 %v4816_v36, %v4815_v13 }
0x3e4f   :  { %4819 = vrot.lane.b32.xlu0 %v9184_v37, %s8118_s2 }
0x3ec1   :  { %v9188_v34 = vpop.permute.xlu0 %4819 }
0x3ec2   :  { %7092 = vmatmul.mubr.msk.f32.vlgmr.msra.gmra.mrb[50].mxu0 %vm280_vm2, %v9188_v34 }
0x3ec3   :  { %7536 = vmatpush3.bf16.msra.mxu0 %v8607_v31  ;;  %7109 = vmatprep.mubr.msk.f32.mxu0 %vm8115_vm0, %v8116_v10 }
0x3ec4   :  { %7537 = vmatprep.subr.bf16.mxu0 %v8114_v4 }
0x3ec7   :  { %7539 = vmatpush3.bf16.msra.mxu0 %v8613_v35 }
0x3ec8   :  { %7546 = vmatprep.subr.bf16.mxu0 %v8114_v4 }
0x3eca   :  { %7110 = vmatmul.mubr.msk.f32.vlgmr.msra.gmra.mrb[52].mxu0 %vm280_vm2, %v9188_v34 }
0x3ecb   :  { %7548 = vmatpush3.bf16.msra.mxu0 %v8697_v38  ;;  %7131 = vmatprep.mubr.msk.f32.mxu0 %vm8115_vm0, %v8116_v10 }
0x3ecc   :  { %7549 = vmatprep.subr.bf16.mxu0 %v8114_v4 }
0x3ecf   :  { %7551 = vmatpush3.bf16.msra.mxu0 %v8704_v47 }
0x3ed0   :  { %7558 = vmatprep.subr.bf16.mxu0 %v8114_v4 }
0x3f95   :  { %v4889_v29 = vpop.f32.mrb[50].mxu0 }
0x3f96   :  { %v4890_v21 = vadd.f32 %v9124_v30, %v4889_v29  ;;  %v7093_v44 = vpop.f32.mrb[51].mxu0 }
0x3f98   :  { %v4893_v39 = vsel %vm1901_vm11, %v4890_v21, -inf }
0x3f99   :  { %4894 = vmax.xlane.f32.xlu1 %v4893_v39 }
0x3f9d   :  { %v5057_v40 = vpop.f32.mrb[52].mxu0 }
0x3f9e   :  { %v7111_v57 = vpop.f32.mrb[53].mxu0  ;;  %v5058_v27 = vadd.f32 %v9042_v51, %v5057_v40 }
0x3fa0   :  { %v5064_v2 = vrot.slane %v5058_v27, %v8683_v1 }
0x3fa2   :  { %v5065_v62 = vadd.f32 %v5064_v2, %v8686_v8 }
0x3fa4   :  { %7753 = vtanh.f32 %v5065_v62 }
0x3fae   :  { %v7754_v22 = vpop.eup %7753 }
0x4026   :  { %v4895_v43 = vpop.xlane.xlu1 %4894 }
0x4027   :  { %vm4896_vm8 = vcmp.ge.f32.partialorder %v4890_v21, %v4895_v43 }
0x4028   :  { %v4897_v48 = vsel %vm4896_vm8, %v8796_v9, 16 }
0x4029   :  { %v4898_v52 = vsel %vm1901_vm11, %v4897_v48, 2147483647 }
0x402a   :  { %v4900_v54 = vshra.s32 %v4898_v52, 16  ;;  %v4899_v12 = vand.u32 65535, %v4898_v52 }
0x402c   :  { %v4902_v61 = vcvt.s32.f32 %v4900_v54  ;;  %v4901_v53 = vcvt.s32.f32 %v4899_v12 }
0x402e   :  { %4903 = vmin.xlane.f32.xlu0 %v4902_v61 }
0x40bb   :  { %v4904_v56 = vpop.xlane.xlu0 %4903 }
0x40bc   :  { %vm4905_vm9 = vcmp.eq.f32.partialorder %v4902_v61, %v4904_v56  ;;  %v4910_v3 = vcvt.f32.s32 %v4904_v56 }
0x40bd   :  { %v4906_v46 = vsel %vm4905_vm9, %v4901_v53, inf }
0x40be   :  { %4907 = vmin.xlane.f32.xlu0 %v4906_v46  ;;  %v4911_v14 = vshll.u32 %v4910_v3, 16 }
0x414b   :  { %v4908_v60 = vpop.xlane.xlu0 %4907 }
0x414c   :  { %v4909_v16 = vcvt.f32.s32 %v4908_v60 }
0x414e   :  { %v4912_v18 = vadd.s32 %v4911_v14, %v4909_v16 }
0x4150   :  { %vm4915_vm13 = vcmp.eq.s32.totalorder %v8796_v9, %v4912_v18  ;;  %v9216_v20 = vsel %vm4913_vm12, %v4912_v18, %v9135_v0 }
0x4151   :  { %v6224_v15 = vsel %vm4915_vm13, 1.0, %v8116_v10 }
0x4152   :  { %7099 = vmatmul.mubr.msk.f32.vlgmr.msra.gmra.mrb[50].mxu1 %vm1927_vm14, %v6224_v15 }
0x4153   :  { %7542 = vmatpush3.bf16.msra.mxu1 %v8668_v55  ;;  %7120 = vmatprep.mubr.msk.f32.mxu1 %vm8115_vm0, %v8116_v10 }
0x4154   :  { %7543 = vmatprep.subr.bf16.mxu1 %v8114_v4 }
0x4157   :  { %7545 = vmatpush3.bf16.msra.mxu1 %v8674_v58 }
0x4158   :  { %7552 = vmatprep.subr.bf16.mxu1 %v8114_v4 }
0x415a   :  { %7121 = vmatmul.mubr.msk.f32.vlgmr.msra.gmra.mrb[52].mxu1 %vm280_vm2, %v7754_v22 }
0x415b   :  { %7554 = vmatpush3.bf16.msra.mxu1 %v8699_v41  ;;  %7142 = vmatprep.mubr.msk.f32.mxu1 %vm8115_vm0, %v8116_v10 }
0x415c   :  { %7555 = vmatprep.subr.bf16.mxu1 %v8114_v4 }
0x415f   :  { %7557 = vmatpush3.bf16.msra.mxu1 %v8707_v49 }
0x4160   :  { %7564 = vmatprep.subr.bf16.mxu1 %v8114_v4 }
0x4225   :  { %v4987_v0 = vpop.f32.mrb[50].mxu1 }
0x4226   :  { %v7100_v50 = vpop.f32.mrb[51].mxu1  ;;  %7143 = vmatmul.mubr.msk.f32.vlgmr.msra.gmra.mrb[54].mxu1 %vm280_vm2, %v4987_v0 }
0x4227   :  { %7566 = vmatpush3.bf16.msra.mxu1 %v8755_v42  ;;  %7164 = vmatprep.mubr.msk.f32.mxu1 %vm8115_vm0, %v8116_v10 }
0x4228   :  { %7567 = vmatprep.subr.bf16.mxu1 %v8114_v4 }
0x422b   :  { %7569 = vmatpush3.bf16.msra.mxu1 %v8761_v45 }
0x422c   :  { %7573 = vmatprep.subr.bf16.mxu1 %v8114_v4 }
0x422d   :  { %v5136_v6 = vpop.f32.mrb[52].mxu1 }
0x422e   :  { %v5137_v23 = vadd.f32 %v9074_v63, %v5136_v6  ;;  %v7122_v59 = vpop.f32.mrb[53].mxu1 }
0x4230   :  { %v5140_v28 = vsel %vm1540_vm10, %v5137_v23, -inf }
0x4231   :  { %v5141_v26 = vrot.slane %v5140_v28, 4 }
0x4233   :  { %v5142_v5 = vmax.f32 %v5140_v28, %v5141_v26 }
0x4235   :  { %v5143_v7 = vrot.slane %v5142_v5, 2 }
0x4237   :  { %v5144_v32 = vmax.f32 %v5142_v5, %v5143_v7 }
0x4239   :  { %v5145_v36 = vrot.slane %v5144_v32, 1 }
0x423b   :  { %v5146_v13 = vmax.f32 %v5144_v32, %v5145_v36 }
0x423d   :  { %v5147_v29 = vsub.f32 %v5137_v23, %v5146_v13 }
0x423f   :  { %v5148_v21 = vmul.f32 1.442695, %v5147_v29 }
0x4241   :  { %7755 = vpow2.f32 %v5148_v21 }
0x424b   :  { %v7756_v44 = vpop.eup %7755 }
0x424c   :  { %v5150_v39 = vsel %vm1540_vm10, %v7756_v44, 0.0 }
0x424d   :  { %v5151_v40 = vrot.slane %v5150_v39, 4 }
0x424f   :  { %v5152_v57 = vadd.f32 %v5151_v40, %v5150_v39 }
0x4251   :  { %v5153_v43 = vrot.slane %v5152_v57, 2 }
0x4253   :  { %v5154_v48 = vadd.f32 %v5153_v43, %v5152_v57 }
0x4255   :  { %v5155_v52 = vrot.slane %v5154_v48, 1 }
0x4257   :  { %v5156_v54 = vadd.f32 %v5155_v52, %v5154_v48 }
0x4259   :  { %7757 = vrcp.f32 %v5156_v54 }
0x4263   :  { %v7758_v61 = vpop.eup %7757 }
0x4264   :  { %v5158_v12 = vmul.f32 %v7758_v61, %v7756_v44 }
0x4266   :  { %5161 = vperm.xlu1 %7632, %v5158_v12  }
0x42e5   :  { %v5162_v56 = vpop.permute.xlu1 %5161 }
0x42e6   :  { %v5164_v53 = vmul.f32 %v8993_v33, %v5162_v56 }
0x42e8   :  { %v5165_v46 = vsel %vm280_vm2, %v5164_v53, 0.0 }
0x42e9   :  { %v5166_v27 = vrot.slane %v5165_v46, 4 }
0x42eb   :  { %v5167_v2 = vadd.f32 %v5166_v27, %v5165_v46 }
0x42ed   :  { %v5168_v3 = vrot.slane %v5167_v2, 2 }
0x42ef   :  { %v5169_v62 = vadd.f32 %v5168_v3, %v5167_v2 }
0x42f1   :  { %v5170_v60 = vrot.slane %v5169_v62, 1 }
0x42f3   :  { %v5171_v14 = vadd.f32 %v5170_v60, %v5169_v62 }
0x42f5   :  { %7132 = vmatmul.mubr.msk.f32.vlgmr.msra.gmra.mrb[54].mxu0 %vm280_vm2, %v5171_v14 }
0x42f6   :  { %7560 = vmatpush3.bf16.msra.mxu0 %v8719_v11  ;;  %7153 = vmatprep.mubr.msk.f32.mxu0 %vm8115_vm0, %v8116_v10 }
0x42f7   :  { %7561 = vmatprep.subr.bf16.mxu0 %v8114_v4 }
0x42f9   :  { %v5314_v16 = vpop.f32.mrb[54].mxu1 }
0x42fa   :  { %7563 = vmatpush3.bf16.msra.mxu0 %v8723_v17  ;;  %v7144_v33 = vpop.f32.mrb[55].mxu1 }
0x42fb   :  { %7570 = vmatprep.subr.bf16.mxu0 %v8114_v4 }
0x42fd   :  { %7154 = vmatmul.mubr.msk.f32.vlgmr.msra.gmra.mrb[56].mxu0 %vm280_vm2, %v9188_v34 }
0x42fe   :  { %7572 = vmatpush3.bf16.msra.mxu0 %v8728_v19  ;;  %7171 = vmatprep.mubr.msk.f32.mxu0 %vm8115_vm0, %v8116_v10 }
0x42ff   :  { %7579 = vmatprep.subr.bf16.mxu0 %v8114_v4 }
0x43c8   :  { %v5241_v18 = vpop.f32.mrb[54].mxu0 }
0x43c9   :  { %v5315_v15 = vadd.f32 %v5314_v16, %v5241_v18  ;;  %v7133_v22 = vpop.f32.mrb[55].mxu0 }
0x43cb   :  { %v5318_v23 = vadd.f32 %v9096_v24, %v5315_v15 }
0x43d0   :  { %v5385_v0 = vpop.f32.mrb[56].mxu0 }
0x43d1   :  { %v5396_v50 = vadd.f32 %v5385_v0, %v8738_v25  ;;  %v7155_v6 = vpop.f32.mrb[57].mxu0  ;;  %v5389_v59 = vadd.f32 %v5385_v0, %v5318_v23 }
0x43d3   :  { %5398 = vrot.lane.b32.xlu0 %v5396_v50, %s8117_s24  ;;  %v6231_v34 = vmul.f32 -1.442695, %v5389_v59 }
0x43d5   :  { %7759 = vpow2.f32 %v6231_v34 }
0x43df   :  { %v7760_v19 = vpop.eup %7759 }
0x43e0   :  { %v5393_v28 = vadd.f32 1.0, %v7760_v19 }
0x43e2   :  { %7761 = vrcp.f32 %v5393_v28 }
0x43ec   :  { %v7762_v26 = vpop.eup %7761 }
0x43ed   :  { %v5408_v29 = vsub.f32 1.0, %v7762_v26  ;;  %v5414_v44 = vmul.f32 %v7762_v26, %v9184_v37 }
0x4445   :  { %v5399_v5 = vpop.permute.xlu0 %5398 }
0x4446   :  { %v5401_v7 = vmul.f32 %v7762_v26, %v5399_v5 }
0x4448   :  { %5403 = vrot.lane.b32.xlu1 %v5401_v7, %s8117_s24 }
0x44ba   :  { %v5404_v32 = vpop.permute.xlu1 %5403 }
0x44bb   :  { %v5406_v36 = vadd.f32 %v5404_v32, %v5318_v23 }
0x44bd   :  { %7763 = vtanh.f32 %v5406_v36 }
0x44c7   :  { %v7764_v13 = vpop.eup %7763 }
0x44c8   :  { %5410 = vrot.lane.b32.xlu1 %v7764_v13, %s8118_s2 }
0x453a   :  { %v5411_v21 = vpop.permute.xlu1 %5410 }
0x453b   :  { %v5413_v39 = vmul.f32 %v5411_v21, %v5408_v29  ;;  %v7782_v21 = vld [vmem:[#allocation3] sm:$0xff] }
0x453d   :  { %v9264_v40 = vadd.f32 %v5414_v44, %v5413_v39 }
0x453f   :  { %5417 = vrot.lane.b32.xlu0 %v9264_v40, %s8118_s2 }
0x45b1   :  { %v9268_v57 = vpop.permute.xlu0 %5417 }
0x45b2   :  { %7165 = vmatmul.mubr.msk.f32.vlgmr.msra.gmra.mrb[56].mxu1 %vm280_vm2, %v9268_v57 }
0x45b3   :  { %7575 = vmatpush3.bf16.msra.mxu1 %v8607_v31  ;;  %7182 = vmatprep.mubr.msk.f32.mxu1 %vm8115_vm0, %v8116_v10 }
0x45b4   :  { %7576 = vmatprep.subr.bf16.mxu1 %v8114_v4 }
0x45b7   :  { %7578 = vmatpush3.bf16.msra.mxu1 %v8613_v35 }
0x45b8   :  { %7585 = vmatprep.subr.bf16.mxu1 %v8114_v4 }
0x45ba   :  { %7183 = vmatmul.mubr.msk.f32.vlgmr.msra.gmra.mrb[58].mxu1 %vm280_vm2, %v9268_v57 }
0x45bb   :  { %7587 = vmatpush3.bf16.msra.mxu1 %v8697_v38  ;;  %7204 = vmatprep.mubr.msk.f32.mxu1 %vm8115_vm0, %v8116_v10 }
0x45bc   :  { %7588 = vmatprep.subr.bf16.mxu1 %v8114_v4 }
0x45bf   :  { %7590 = vmatpush3.bf16.msra.mxu1 %v8704_v47 }
0x45c0   :  { %7597 = vmatprep.subr.bf16.mxu1 %v8114_v4 }
0x4685   :  { %v5487_v31 = vpop.f32.mrb[56].mxu1 }
0x4686   :  { %v5488_v37 = vadd.f32 %v9124_v30, %v5487_v31  ;;  %v7166_v35 = vpop.f32.mrb[57].mxu1 }
0x4688   :  { %v5491_v43 = vsel %vm1901_vm11, %v5488_v37, -inf }
0x4689   :  { %5492 = vmax.xlane.f32.xlu1 %v5491_v43 }
0x468d   :  { %v5655_v48 = vpop.f32.mrb[58].mxu1 }
0x468e   :  { %v7184_v52 = vpop.f32.mrb[59].mxu1  ;;  %v5656_v2 = vadd.f32 %v9042_v51, %v5655_v48 }
0x4690   :  { %v5662_v3 = vrot.slane %v5656_v2, %v8683_v1 }
0x4692   :  { %v5663_v60 = vadd.f32 %v5662_v3, %v8686_v8 }
0x4694   :  { %7765 = vtanh.f32 %v5663_v60 }
0x469e   :  { %v7766_v1 = vpop.eup %7765 }
0x4716   :  { %v5493_v54 = vpop.xlane.xlu1 %5492 }
0x4717   :  { %vm5494_vm15 = vcmp.ge.f32.partialorder %v5488_v37, %v5493_v54 }
0x4718   :  { %v5495_v38 = vsel %vm5494_vm15, %v8796_v9, 16 }
0x4719   :  { %v5496_v61 = vsel %vm1901_vm11, %v5495_v38, 2147483647 }
0x471a   :  { %v5498_v12 = vshra.s32 %v5496_v61, 16  ;;  %v5497_v47 = vand.u32 65535, %v5496_v61 }
0x471c   :  { %v5500_v56 = vcvt.s32.f32 %v5498_v12  ;;  %v5499_v46 = vcvt.s32.f32 %v5497_v47 }
0x471e   :  { %5501 = vmin.xlane.f32.xlu0 %v5500_v56 }
0x47ab   :  { %v5502_v53 = vpop.xlane.xlu0 %5501 }
0x47ac   :  { %vm5503_vm1 = vcmp.eq.f32.partialorder %v5500_v56, %v5502_v53  ;;  %v5508_v62 = vcvt.f32.s32 %v5502_v53 }
0x47ad   :  { %v5504_v27 = vsel %vm5503_vm1, %v5499_v46, inf }
0x47ae   :  { %5505 = vmin.xlane.f32.xlu0 %v5504_v27  ;;  %v5509_v16 = vshll.u32 %v5508_v62, 16 }
0x483b   :  { %v5506_v14 = vpop.xlane.xlu0 %5505 }
0x483c   :  { %v5507_v33 = vcvt.f32.s32 %v5506_v14 }
0x483e   :  { %v5510_v18 = vadd.s32 %v5509_v16, %v5507_v33 }
0x4840   :  { %vm5513_vm4 = vcmp.eq.s32.totalorder %v8796_v9, %v5510_v18  ;;  %v9296_v15 = vsel %vm5511_vm3, %v5510_v18, %v9216_v20 }
0x4841   :  { %v6233_v22 = vsel %vm5513_vm4, 1.0, %v8116_v10 }
0x4842   :  { %7172 = vmatmul.mubr.msk.f32.vlgmr.msra.gmra.mrb[58].mxu0 %vm1927_vm14, %v6233_v22  ;;  %vm6111_vm14 = vcmask 57344  }
0x4843   :  { %7581 = vmatpush3.bf16.msra.mxu0 %v8668_v55  ;;  %7193 = vmatprep.mubr.msk.f32.mxu0 %vm8115_vm0, %v8116_v10 }
0x4844   :  { %7582 = vmatprep.subr.bf16.mxu0 %v8114_v4 }
0x4847   :  { %7584 = vmatpush3.bf16.msra.mxu0 %v8674_v58 }
0x4848   :  { %7591 = vmatprep.subr.bf16.mxu0 %v8114_v4 }
0x484a   :  { %7194 = vmatmul.mubr.msk.f32.vlgmr.msra.gmra.mrb[60].mxu0 %vm280_vm2, %v7766_v1 }
0x484b   :  { %7593 = vmatpush3.bf16.msra.mxu0 %v8699_v41  ;;  %7215 = vmatprep.mubr.msk.f32.mxu0 %vm8115_vm0, %v8116_v10 }
0x484c   :  { %7594 = vmatprep.subr.bf16.mxu0 %v8114_v4 }
0x484f   :  { %7596 = vmatpush3.bf16.msra.mxu0 %v8707_v49 }
0x4850   :  { %7603 = vmatprep.subr.bf16.mxu0 %v8114_v4 }
0x4915   :  { %v5585_v55 = vpop.f32.mrb[58].mxu0 }
0x4916   :  { %v7173_v8 = vpop.f32.mrb[59].mxu0  ;;  %7216 = vmatmul.mubr.msk.f32.vlgmr.msra.gmra.mrb[62].mxu0 %vm280_vm2, %v5585_v55 }
0x4917   :  { %7605 = vmatpush3.bf16.msra.mxu0 %v8755_v42  ;;  %7237 = vmatprep.mubr.msk.f32.mxu0 %vm8115_vm0, %v8116_v10 }
0x4918   :  { %7606 = vmatprep.subr.bf16.mxu0 %v8114_v4 }
0x491b   :  { %7608 = vmatpush3.bf16.msra.mxu0 %v8761_v45 }
0x491d   :  { %v5734_v58 = vpop.f32.mrb[60].mxu0 }
0x491e   :  { %v5735_v41 = vadd.f32 %v9074_v63, %v5734_v58  ;;  %v7195_v51 = vpop.f32.mrb[61].mxu0 }
0x4920   :  { %v5738_v49 = vsel %vm1540_vm10, %v5735_v41, -inf }
0x4921   :  { %v5739_v20 = vrot.slane %v5738_v49, 4 }
0x4923   :  { %v5740_v0 = vmax.f32 %v5738_v49, %v5739_v20 }
0x4925   :  { %v5741_v50 = vrot.slane %v5740_v0, 2 }
0x4927   :  { %v5742_v6 = vmax.f32 %v5740_v0, %v5741_v50 }
0x4929   :  { %v5743_v23 = vrot.slane %v5742_v6, 1 }
0x492b   :  { %v5744_v59 = vmax.f32 %v5742_v6, %v5743_v23 }
0x492d   :  { %v5745_v42 = vsub.f32 %v5735_v41, %v5744_v59 }
0x492f   :  { %v5746_v34 = vmul.f32 1.442695, %v5745_v42 }
0x4931   :  { %7767 = vpow2.f32 %v5746_v34 }
0x493b   :  { %v7768_v19 = vpop.eup %7767 }
0x493c   :  { %v5748_v28 = vsel %vm1540_vm10, %v7768_v19, 0.0  ;;  %vm6109_vm10 = vcmp.eq.s32.totalorder %v8796_v9, 7 }
0x493d   :  { %v5749_v26 = vrot.slane %v5748_v28, 4 }
0x493f   :  { %v5750_v45 = vadd.f32 %v5749_v26, %v5748_v28 }
0x4941   :  { %v5751_v5 = vrot.slane %v5750_v45, 2 }
0x4943   :  { %v5752_v7 = vadd.f32 %v5751_v5, %v5750_v45 }
0x4945   :  { %v5753_v63 = vrot.slane %v5752_v7, 1 }
0x4947   :  { %v5754_v32 = vadd.f32 %v5753_v63, %v5752_v7 }
0x4949   :  { %7769 = vrcp.f32 %v5754_v32 }
0x4953   :  { %v7770_v36 = vpop.eup %7769 }
0x4954   :  { %v5756_v13 = vmul.f32 %v7770_v36, %v7768_v19 }
0x4956   :  { %5759 = vperm.xlu1 %7632, %v5756_v13  }
0x49d5   :  { %v5760_v29 = vpop.permute.xlu1 %5759 }
0x49d6   :  { %v5762_v44 = vmul.f32 %v7782_v21, %v5760_v29 }
0x49d8   :  { %v5763_v39 = vsel %vm280_vm2, %v5762_v44, 0.0 }
0x49d9   :  { %v5764_v31 = vrot.slane %v5763_v39, 4 }
0x49db   :  { %v5765_v37 = vadd.f32 %v5764_v31, %v5763_v39 }
0x49dd   :  { %v5766_v35 = vrot.slane %v5765_v37, 2 }
0x49df   :  { %v5767_v43 = vadd.f32 %v5766_v35, %v5765_v37 }
0x49e1   :  { %v5768_v48 = vrot.slane %v5767_v43, 1 }
0x49e3   :  { %v5769_v52 = vadd.f32 %v5768_v48, %v5767_v43 }
0x49e5   :  { %7205 = vmatmul.mubr.msk.f32.vlgmr.msra.gmra.mrb[60].mxu1 %vm280_vm2, %v5769_v52 }
0x49e6   :  { %7599 = vmatpush3.bf16.msra.mxu1 %v8719_v11  ;;  %7226 = vmatprep.mubr.msk.f32.mxu1 %vm8115_vm0, %v8116_v10 }
0x49e7   :  { %7600 = vmatprep.subr.bf16.mxu1 %v8114_v4 }
0x49e9   :  { %v5912_v54 = vpop.f32.mrb[62].mxu0 }
0x49ea   :  { %7602 = vmatpush3.bf16.msra.mxu1 %v8723_v17  ;;  %v7217_v38 = vpop.f32.mrb[63].mxu0 }
0x49ed   :  { %7227 = vmatmul.mubr.msk.f32.vlgmr.msra.gmra.mrb[62].mxu1 %vm280_vm2, %v9268_v57 }
0x4ab8   :  { %v5839_v61 = vpop.f32.mrb[60].mxu1 }
0x4ab9   :  { %v5913_v12 = vadd.f32 %v5912_v54, %v5839_v61  ;;  %v7206_v56 = vpop.f32.mrb[61].mxu1 }
0x4abb   :  { %v5916_v10 = vadd.f32 %v9096_v24, %v5913_v12 }
0x4ac0   :  { %v5983_v47 = vpop.f32.mrb[62].mxu1 }
0x4ac1   :  { %v5994_v53 = vadd.f32 %v5983_v47, %v8738_v25  ;;  %v7228_v46 = vpop.f32.mrb[63].mxu1  ;;  %v5987_v11 = vadd.f32 %v5983_v47, %v5916_v10 }
0x4ac3   :  { %5996 = vrot.lane.b32.xlu0 %v5994_v53, %s8117_s24  ;;  %v6240_v4 = vmul.f32 -1.442695, %v5987_v11 }
0x4ac5   :  { %7771 = vpow2.f32 %v6240_v4 }
0x4acf   :  { %v7772_v27 = vpop.eup %7771 }
0x4ad0   :  { %v5991_v17 = vadd.f32 1.0, %v7772_v27 }
0x4ad2   :  { %7773 = vrcp.f32 %v5991_v17 }
0x4adc   :  { %v7774_v2 = vpop.eup %7773 }
0x4add   :  { %v6006_v14 = vsub.f32 1.0, %v7774_v2  ;;  %v6012_v24 = vmul.f32 %v7774_v2, %v9264_v40 }
0x4b35   :  { %v5997_v3 = vpop.permute.xlu0 %5996 }
0x4b36   :  { %v5999_v57 = vmul.f32 %v7774_v2, %v5997_v3 }
0x4b38   :  { %6001 = vrot.lane.b32.xlu1 %v5999_v57, %s8117_s24  ;;  %s6119_s24 = sshll.u32 %s8120_s18, 4  ;;  %s6120_s24 = int_to_ptr.vmem [resolvable:$true] %s6119_s24 }
0x4b39   :  { %s8063_s23 = scalar_lea.vmem %s6120_s24, 32  ;;  %p8064_p4 = scmp.lt.s32.totalorder %s6120_s24, %s6120_s24 }
0x4baa   :  { %v6002_v62 = vpop.permute.xlu1 %6001 }
0x4bab   :  { %v6004_v60 = vadd.f32 %v6002_v62, %v5916_v10 }
0x4bad   :  { %7775 = vtanh.f32 %v6004_v60 }
0x4bb7   :  { %v7776_v25 = vpop.eup %7775 }
0x4bb8   :  { %6008 = vrot.lane.b32.xlu1 %v7776_v25, %s8118_s2 }
0x4c2a   :  { %v6009_v16 = vpop.permute.xlu1 %6008 }
0x4c2b   :  { %v6011_v33 = vmul.f32 %v6009_v16, %v6006_v14 }
0x4c2d   :  { %v6013_v18 = vadd.f32 %v6012_v24, %v6011_v33 }
0x4c2f   :  { %6015 = vrot.lane.b32.xlu0 %v6013_v18, %s8118_s2  ;;  %s8059_s2 = scalar_lea.vmem %s6120_s24, 16 }
0x4c30   :  { %p8060_p3 = scmp.ne.s32.totalorder %s6120_s24, %s8059_s2  ;;  %p8065_p5 = scmp.lt.s32.totalorder %s8063_s23, %s8059_s2 }
0x4c32   :  { %p8066_p6 = por %p8065_p5, %p8064_p4 }
0x4c34   :  { %p8067_p7 = pnand %p8066_p6, %p8060_p3 }
0x4ca1   :  { %v6016_v22 = vpop.permute.xlu0 %6015 }
0x4ca2   :  { %7238 = vmatmul.mubr.msk.f32.vlgmr.msra.gmra.mrb[64].mxu0 %vm280_vm2, %v6016_v22 }
0x4d75   :  { %v6085_v1 = vpop.f32.mrb[64].mxu0 }
0x4d76   :  { %v6086_v55 = vadd.f32 %v9124_v30, %v6085_v1  ;;  %v7239_v8 = vpop.f32.mrb[65].mxu0 }
0x4d78   :  { %v6089_v58 = vsel %vm1901_vm11, %v6086_v55, -inf }
0x4d79   :  { %6090 = vmax.xlane.f32.xlu1 %v6089_v58 }
0x4e06   :  { %v6091_v41 = vpop.xlane.xlu1 %6090 }
0x4e07   :  { %vm6092_vm0 = vcmp.ge.f32.partialorder %v6086_v55, %v6091_v41 }
0x4e08   :  { %v6093_v51 = vsel %vm6092_vm0, %v8796_v9, 16 }
0x4e09   :  { %v6094_v40 = vsel %vm1901_vm11, %v6093_v51, 2147483647 }
0x4e0a   :  { %v6096_v49 = vshra.s32 %v6094_v40, 16  ;;  %v6095_v0 = vand.u32 65535, %v6094_v40 }
0x4e0c   :  { %v6098_v20 = vcvt.s32.f32 %v6096_v49  ;;  %v6097_v6 = vcvt.s32.f32 %v6095_v0 }
0x4e0e   :  { %6099 = vmin.xlane.f32.xlu0 %v6098_v20 }
0x4e9b   :  { %v6100_v50 = vpop.xlane.xlu0 %6099 }
0x4e9c   :  { %vm6101_vm2 = vcmp.eq.f32.partialorder %v6098_v20, %v6100_v50  ;;  %v6106_v30 = vcvt.f32.s32 %v6100_v50 }
0x4e9d   :  { %v6102_v23 = vsel %vm6101_vm2, %v6097_v6, inf }
0x4e9e   :  { %6103 = vmin.xlane.f32.xlu0 %v6102_v23  ;;  %v6107_v42 = vshll.u32 %v6106_v30, 16 }
0x4f2b   :  { %v6104_v59 = vpop.xlane.xlu0 %6103 }
0x4f2c   :  { %v6105_v34 = vcvt.f32.s32 %v6104_v59 }
0x4f2e   :  { %v6108_v19 = vadd.s32 %v6107_v42, %v6105_v34 }
0x4f30   :  { %v6110_v28 = vsel %vm6109_vm10, %v6108_v19, %v9296_v15 }
0x4f31   :  { %6112 = vst.msk [vmem:[#allocation27] sm:$0x1] %vm6111_vm14, %v6110_v28 }
0x4f32   :  { %8070 = shalt.err (!%p8067_p7)
}
0x4f33   :  { %s8071_s7 = scalar_lea.hbm %s9377_s20, 16 }
0x4f34   :  { %p8072_p8 = scmp.ne.s32.totalorder %s9377_s20, %s8071_s7  ;;  %p8075_p9 = scmp.lt.u32.totalorder %s8071_s7, %s9377_s20 }
0x4f36   :  { %p8077_p10 = pnand %p8075_p9, %p8072_p8 }
0x4f38   :  { %8080 = shalt.err (!%p8077_p10)
}
0x4f39   :  { %6122 = dma.vmem_to_hbm [thread:$0]  %s6120_s24, 16, %s9377_s20, [#allocation7]  }
0x4f3a   :  { %8097 = dma.done.wait [#allocation7], 16  }
0x4f3b   :  { %8098 = vsyncadd [#allocation7], 4294967280 }
0x4f3c   :  { %6126 = vsyncpa [#allocation6], 1 }
0x4f3d   :  { %6127 = vsyncpa [#allocation11], 1 }
0x4f3e   :  { %6128 = vsyncpa [#allocation14], 1 }
0x4f3f   :  { %6129 = vsyncpa [#allocation17], 1 }
0x4f40   :  { %6130 = vsyncpa [#allocation20], 1 }
0x4f41   :  { %6131 = vsyncpa [#allocation23], 1 }
0x4f42   :  { %6132 = vsyncpa [#allocation26], 1 }
0x4f43   :  { %6133 = vsyncpa [#allocation7], 1 }
0x4f44   :  { %6134 = vsyncpa [#allocation8], 1 }

</bundles_post_ra>
